<compile_context>
chip_gen: v7x
topology: tpu7x:2x2x1
jax: 0.10.0
libtpu: 0.0.40
codegen_flags: <defaults>
</compile_context>

<pallas_src>
import functools

import jax
import jax.numpy as jnp
from jax.experimental import pallas as pl
from jax.experimental.pallas import tpu as pltpu


def _round_up(x, m):
    return (x + m - 1) // m * m


def _cdiv(a, b):
    return -(-a // b)


# ---------------------------------------------------------------------------
# Kernels
# ---------------------------------------------------------------------------
def _gate_math_and_store(gates, c0, wc_ref, bc_ref, out_ref, co):
    """Shared tail: gates (f32, order [i|f|o|g]) -> h, c, y; store [h|c|y]."""
    # Sigmoid on one contiguous 3*co-lane slice, tanh on the trailing co lanes.
    ifo = jax.nn.sigmoid(gates[:, :3 * co])
    g_g = jnp.tanh(gates[:, 3 * co:4 * co])
    i_g = ifo[:, 0 * co:1 * co]
    f_g = ifo[:, 1 * co:2 * co]
    o_g = ifo[:, 2 * co:3 * co]

    c_new = i_g * g_g if c0 is None else f_g * c0 + i_g * g_g
    h_new = o_g * jnp.tanh(c_new)

    # 1x1 conv == per-pixel linear layer on the hidden state (MXU, f32 acc).
    y = (jnp.dot(h_new.astype(wc_ref.dtype), wc_ref[...],
                 preferred_element_type=jnp.float32)
         + bc_ref[...].astype(jnp.float32))

    # Packed [h | c | y] slab, exactly 3*co wide (no pad lanes, no zero fill).
    out_ref[:, 0 * co:1 * co] = h_new.astype(out_ref.dtype)
    out_ref[:, 1 * co:2 * co] = c_new.astype(out_ref.dtype)
    out_ref[:, 2 * co:3 * co] = y.astype(out_ref.dtype)


def _pxlstm_first_kernel(x_ref, w_ref, b_ref, wc_ref, bc_ref, out_ref):
    """Stateless step (h0 = c0 = 0): no state DMA and no W_hh matmul."""
    co = wc_ref.shape[0]
    gates = (jnp.dot(x_ref[...], w_ref[...],
                     preferred_element_type=jnp.float32)
             + b_ref[...].astype(jnp.float32))
    _gate_math_and_store(gates, None, wc_ref, bc_ref, out_ref, co)


def _pxlstm_step_kernel(xhc_ref, w_ref, b_ref, wc_ref, bc_ref, out_ref):
    """Stateful step on a packed [x | h0 | c0] slab.

    w_ref is [W_ih^T ; W_hh^T ; 0] with shape (ci + 2*co, 4*co): the trailing
    zero rows make the single slab matmul equal x@W_ih^T + h0@W_hh^T without
    slicing the MXU operand.
    """
    co = wc_ref.shape[0]
    xh_w = xhc_ref.shape[1] - co          # ci + co : start of the c0 lanes
    gates = (jnp.dot(xhc_ref[...], w_ref[...],
                     preferred_element_type=jnp.float32)
             + b_ref[...].astype(jnp.float32))
    c0 = xhc_ref[:, xh_w:].astype(jnp.float32)
    _gate_math_and_store(gates, c0, wc_ref, bc_ref, out_ref, co)


# ---------------------------------------------------------------------------
# Tiling helpers
# ---------------------------------------------------------------------------
def _vmem_bytes(tn, in_w, out_w, co, itemsize):
    """Per-step VMEM footprint incl. 128-lane padding & double buffering."""
    lane = lambda w: _round_up(w, 128)
    io = 2 * tn * (lane(in_w) + lane(out_w)) * itemsize       # 2x-buffered tiles
    interm = 4 * tn * lane(4 * co) * 4                        # f32 gate/state temps
    return io + interm + (1 << 20)                            # weights + slack


def _pick_tile(N, tn, in_w, out_w, co, itemsize):
    cap = _round_up(N, 128)
    tn_eff = min(_round_up(max(int(tn), 128), 128), cap)
    # Keep tiles >= 512 rows (~85% of HBM roofline per the measured ladder)
    # but aim for several grid steps so both v7x TensorCores pipeline DMA
    # against compute instead of getting a single exposed step each.
    if N >= 8 * 512:
        tn_eff = min(tn_eff, max(512, _round_up(_cdiv(N, 8), 128)))
    elif N >= 2 * 512:
        tn_eff = min(tn_eff, max(512, _round_up(_cdiv(N, 2), 128)))
    # Hard VMEM ceiling: stay under ~40 MiB (v7x: 64 MiB physical VMEM).
    while tn_eff > 128 and _vmem_bytes(tn_eff, in_w, out_w, co,
                                       itemsize) > (40 << 20):
        tn_eff = max(128, _round_up(tn_eff // 2, 128))
    n_tiles = _cdiv(N, tn_eff)
    # Prefer an even tile count so v7x's 2 TensorCores stay balanced.
    if n_tiles > 1 and n_tiles % 2:
        alt = max(128, _round_up(_cdiv(N, n_tiles + 1), 128))
        if _cdiv(N, alt) % 2 == 0:
            tn_eff = alt
            n_tiles = _cdiv(N, alt)
    return tn_eff, n_tiles * tn_eff


# ---------------------------------------------------------------------------
# Wrapper
# ---------------------------------------------------------------------------
@functools.partial(jax.jit, static_argnames=("tn", "return_packed_state"))
def pxlstm_forward(x, kparams, hc=None, *, tn=1024, return_packed_state=False):
    """x: (B, ci, H, W) NCHW.

    Returns (conv_out (B, co, H, W), (h, c)) matching the PyTorch module, or
    (conv_out, packed_hc (N, 2*co)) when return_packed_state=True.  `hc` may
    be a (h, c) tuple or a packed (N, 2*co) array from a previous call.
    Works in f32 (matching PyTorch) or bf16 (pass bf16 x).
    """
    w_first, w_step, bias, wc, bc = (p.astype(x.dtype) for p in kparams)
    B, ci, H, W = x.shape
    co = wc.shape[0]
    N = B * H * W
    dtype = x.dtype
    itemsize = jnp.dtype(dtype).itemsize

    # NCHW -> NHWC -> (N, ci), exactly like the PyTorch forward.
    flat = jnp.transpose(x, (0, 2, 3, 1)).reshape(N, ci)

    if hc is None:
        kern = _pxlstm_first_kernel
        inp = flat
        weight = w_first                                   # (ci, 4*co)
    else:
        kern = _pxlstm_step_kernel
        if isinstance(hc, (tuple, list)):
            h0, c0 = hc
            inp = jnp.concatenate(
                [flat, h0.astype(dtype), c0.astype(dtype)], axis=-1)
        else:                                              # packed (N, 2*co)
            inp = jnp.concatenate([flat, hc.astype(dtype)], axis=-1)
        weight = w_step                                    # (ci + 2*co, 4*co)

    in_w = inp.shape[1]
    out_w = 3 * co

    tn_eff, n_pad = _pick_tile(N, tn, in_w, out_w, co, itemsize)
    if n_pad != N:
        inp = jnp.pad(inp, ((0, n_pad - N), (0, 0)))

    grid = (n_pad // tn_eff,)
    tile = lambda i: (i, 0)
    full = lambda i: (0, 0)

    cp_kwargs = dict(dimension_semantics=("parallel",))
    vmem_est = _vmem_bytes(tn_eff, in_w, out_w, co, itemsize)
    if vmem_est > (16 << 20):   # raise past v5e's 16 MiB default scoped VMEM
        cp_kwargs["vmem_limit_bytes"] = int(min(vmem_est * 5 // 4, 48 << 20))

    slab = pl.pallas_call(
        kern,
        out_shape=jax.ShapeDtypeStruct((n_pad, out_w), dtype),
        grid_spec=pltpu.PrefetchScalarGridSpec(
            num_scalar_prefetch=0,
            grid=grid,
            in_specs=[
                pl.BlockSpec((tn_eff, in_w), tile),    # [x] or [x|h0|c0]
                pl.BlockSpec(weight.shape, full),      # stacked gate weight
                pl.BlockSpec((1, 4 * co), full),       # folded bias
                pl.BlockSpec((co, co), full),          # conv1x1 weight^T
                pl.BlockSpec((1, co), full),           # conv1x1 bias
            ],
            out_specs=pl.BlockSpec((tn_eff, out_w), tile),  # [h|c|y]
        ),
        compiler_params=pltpu.CompilerParams(**cp_kwargs),
    )(inp, weight, bias, wc, bc)

    y = slab[:N, 2 * co:3 * co]
    # (N, co) -> (B, H, W, co) -> NCHW (required by the module's interface).
    y_map = jnp.transpose(y.reshape(B, H, W, co), (0, 3, 1, 2))
    if return_packed_state:
        return y_map, slab[:N, :2 * co]
    return y_map, (slab[:N, :co], slab[:N, co:2 * co])


# ---------------------------------------------------------------------------
# Parameters (PyTorch-shaped) and kernel-layout preparation
# ---------------------------------------------------------------------------
def init_params(key, ci, co, dtype=jnp.float32):
    """Synthetic params with the exact PyTorch shapes of PxLSTM."""
    k = jax.random.split(key, 6)
    bound = 1.0 / (co ** 0.5)
    w_ih = jax.random.uniform(k[0], (4 * co, ci), dtype, -bound, bound)
    w_hh = jax.random.uniform(k[1], (4 * co, co), dtype, -bound, bound)
    b_ih = jax.random.uniform(k[2], (4 * co,), dtype, -bound, bound)
    b_hh = jax.random.uniform(k[3], (4 * co,), dtype, -bound, bound)
    w_conv = jax.random.uniform(k[4], (co, co, 1, 1), dtype, -bound, bound)
    b_conv = jax.random.uniform(k[5], (co,), dtype, -bound, bound)
    return (w_ih, w_hh, b_ih, b_hh, w_conv, b_conv)


def _reorder_gates(a):
    """PyTorch gate order [i,f,g,o] -> kernel order [i,f,o,g] along axis 0."""
    i, f, g, o = jnp.split(a, 4, axis=0)
    return jnp.concatenate([i, f, o, g], axis=0)


def prepare_params(raw, dtype=jnp.float32):
    """One-time conversion of PyTorch-shaped params to kernel layout."""
    w_ih, w_hh, b_ih, b_hh, w_conv, b_conv = raw
    co = w_hh.shape[1]
    w_ih_r = _reorder_gates(w_ih)
    w_hh_r = _reorder_gates(w_hh)
    w_first = jnp.transpose(w_ih_r)                              # (ci, 4*co)
    w_step = jnp.concatenate(
        [jnp.transpose(w_ih_r), jnp.transpose(w_hh_r),
         jnp.zeros((co, 4 * co), w_ih.dtype)], axis=0)           # (ci+2co, 4co)
    bias = _reorder_gates(b_ih + b_hh).reshape(1, 4 * co)
    wc = jnp.transpose(w_conv.reshape(co, co))                   # (co, co)
    bc = b_conv.reshape(1, co)
    return tuple(a.astype(dtype) for a in (w_first, w_step, bias, wc, bc))


def _reference(x, raw, hc=None):
    """Pure-JAX f32 reference of PxLSTM.forward (PyTorch layout/order)."""
    w_ih, w_hh, b_ih, b_hh, w_conv, b_conv = raw
    B, ci, H, W = x.shape
    co = w_hh.shape[1]
    flat = jnp.transpose(x, (0, 2, 3, 1)).reshape(B * H * W, ci)
    flat = flat.astype(jnp.float32)
    if hc is None:
        h0 = jnp.zeros((flat.shape[0], co), jnp.float32)
        c0 = jnp.zeros_like(h0)
    else:
        h0, c0 = hc
    gates = flat @ w_ih.T + b_ih + h0 @ w_hh.T + b_hh
    i_g = jax.nn.sigmoid(gates[:, 0 * co:1 * co])
    f_g = jax.nn.sigmoid(gates[:, 1 * co:2 * co])
    g_g = jnp.tanh(gates[:, 2 * co:3 * co])
    o_g = jax.nn.sigmoid(gates[:, 3 * co:4 * co])
    c = f_g * c0 + i_g * g_g
    h = o_g * jnp.tanh(c)
    y = h @ w_conv.reshape(co, co).T + b_conv
    y_map = jnp.transpose(y.reshape(B, H, W, co), (0, 3, 1, 2))
    return y_map, (h, c)


if __name__ == "__main__":
    B, ci, H, W = 2, 4, 16, 16
    co = 32

    key = jax.random.PRNGKey(0)
    kx, kp = jax.random.split(key)
    x = jax.random.normal(kx, (B, ci, H, W), jnp.float32)
    raw = init_params(kp, ci, co)
    kparams = prepare_params(raw)

    # --- step 1: f32, no initial state (stateless kernel, no zero-state DMA) -
    y1, (h1, c1) = pxlstm_forward(x, kparams)
    jax.block_until_ready((y1, h1, c1))
    y1_r, (h1_r, c1_r) = _reference(x, raw)
    assert y1.shape == (B, co, H, W) and h1.shape == (B * H * W, co)
    assert jnp.allclose(y1, y1_r, atol=2e-5, rtol=2e-5)
    assert jnp.allclose(h1, h1_r, atol=2e-5, rtol=2e-5)
    assert jnp.allclose(c1, c1_r, atol=2e-5, rtol=2e-5)

    # --- step 2: (h, c) tuple state (module-interface path) ---
    y2, (h2, c2) = pxlstm_forward(x, kparams, (h1, c1))
    jax.block_until_ready((y2, h2, c2))
    y2_r, (h2_r, c2_r) = _reference(x, raw, (h1_r, c1_r))
    assert jnp.allclose(y2, y2_r, atol=1e-4, rtol=1e-4)
    assert jnp.allclose(h2, h2_r, atol=1e-4, rtol=1e-4)
    assert jnp.allclose(c2, c2_r, atol=1e-4, rtol=1e-4)

    # --- steps 2 & 3 with the packed [h|c] carry (fast rollout path) ---
    y2p, hc2 = pxlstm_forward(x, kparams, (h1, c1), return_packed_state=True)
    y3p, hc3 = pxlstm_forward(x, kparams, hc2, return_packed_state=True)
    jax.block_until_ready((y3p, hc3))
    y3_r, (h3_r, c3_r) = _reference(x, raw, (h2_r, c2_r))
    assert jnp.allclose(y2p, y2_r, atol=1e-4, rtol=1e-4)
    assert jnp.allclose(y3p, y3_r, atol=1e-4, rtol=1e-4)
    assert jnp.allclose(hc3[:, :co], h3_r, atol=1e-4, rtol=1e-4)
    assert jnp.allclose(hc3[:, co:], c3_r, atol=1e-4, rtol=1e-4)

    # --- bf16 I/O path: halves HBM traffic; gate math still accumulates f32 --
    xb = x.astype(jnp.bfloat16)
    yb, (hb, cb) = pxlstm_forward(xb, kparams)
    jax.block_until_ready((yb, hb, cb))
    assert yb.dtype == jnp.bfloat16 and hb.dtype == jnp.bfloat16
    assert jnp.allclose(yb.astype(jnp.float32), y1_r, atol=5e-2, rtol=5e-2)
    assert jnp.allclose(cb.astype(jnp.float32), c1_r, atol=5e-2, rtol=5e-2)

    print("KERNEL_OK")
</pallas_src>

<mosaic_0001>
module attributes {stable_mosaic.version = 11 : i64} {
  func.func @_pxlstm_first_kernel(%arg0: i32, %arg1: memref<512x4xf32, #tpu.memory_space<vmem>>, %arg2: memref<4x128xf32, #tpu.memory_space<vmem>>, %arg3: memref<1x128xf32, #tpu.memory_space<vmem>>, %arg4: memref<32x32xf32, #tpu.memory_space<vmem>>, %arg5: memref<1x32xf32, #tpu.memory_space<vmem>>, %arg6: memref<512x96xf32, #tpu.memory_space<vmem>>) attributes {dimension_semantics = [#tpu.dimension_semantics<parallel>], iteration_bounds = array<i64: 1>, scalar_prefetch = 0 : i64, scratch_operands = 0 : i64, tpu.core_type = #tpu.core_type<tc>, window_params = [{transform_indices = @transform_0, window_bounds = array<i64: 512, 4>}, {pipeline_mode = #tpu.pipeline_mode<synchronous>, transform_indices = @transform_1, window_bounds = array<i64: 4, 128>}, {pipeline_mode = #tpu.pipeline_mode<synchronous>, transform_indices = @transform_2, window_bounds = array<i64: 1, 128>}, {pipeline_mode = #tpu.pipeline_mode<synchronous>, transform_indices = @transform_3, window_bounds = array<i64: 32, 32>}, {pipeline_mode = #tpu.pipeline_mode<synchronous>, transform_indices = @transform_4, window_bounds = array<i64: 1, 32>}, {transform_indices = @transform_5, window_bounds = array<i64: 512, 96>}]} {
    %c0 = arith.constant 0 : index
    %c0_0 = arith.constant 0 : index
    %0 = vector.load %arg1[%c0, %c0_0] : memref<512x4xf32, #tpu.memory_space<vmem>>, vector<512x4xf32>
    %c0_1 = arith.constant 0 : index
    %c0_2 = arith.constant 0 : index
    %1 = vector.load %arg2[%c0_1, %c0_2] : memref<4x128xf32, #tpu.memory_space<vmem>>, vector<4x128xf32>
    %cst = arith.constant dense<0.000000e+00> : vector<512x128xf32>
    %2 = tpu.matmul %0, %1, %cst {dimension_numbers = #tpu.dot_dimension_numbers<[1], [0], [0], [1], [0, 0, 1, 1], [], []>} : vector<512x4xf32>, vector<4x128xf32>, vector<512x128xf32> -> vector<512x128xf32>
    %c0_3 = arith.constant 0 : index
    %c0_4 = arith.constant 0 : index
    %3 = vector.load %arg3[%c0_3, %c0_4] : memref<1x128xf32, #tpu.memory_space<vmem>>, vector<1x128xf32>
    %4 = vector.broadcast %3 : vector<1x128xf32> to vector<512x128xf32>
    %5 = arith.addf %2, %4 : vector<512x128xf32>
    %6 = vector.extract_strided_slice %5 {offsets = [0, 0], sizes = [512, 96], strides = [1, 1]} : vector<512x128xf32> to vector<512x96xf32>
    %7 = arith.negf %6 : vector<512x96xf32>
    %8 = math.exp %7 : vector<512x96xf32>
    %cst_5 = arith.constant 1.000000e+00 : f32
    %9 = vector.broadcast %cst_5 : f32 to vector<512x96xf32>
    %10 = arith.addf %9, %8 : vector<512x96xf32>
    %11 = arith.divf %9, %10 : vector<512x96xf32>
    %12 = vector.extract_strided_slice %5 {offsets = [0, 96], sizes = [512, 32], strides = [1, 1]} : vector<512x128xf32> to vector<512x32xf32>
    %13 = math.tanh %12 : vector<512x32xf32>
    %14 = vector.extract_strided_slice %11 {offsets = [0, 0], sizes = [512, 32], strides = [1, 1]} : vector<512x96xf32> to vector<512x32xf32>
    %15 = vector.extract_strided_slice %11 {offsets = [0, 64], sizes = [512, 32], strides = [1, 1]} : vector<512x96xf32> to vector<512x32xf32>
    %16 = arith.mulf %14, %13 : vector<512x32xf32>
    %17 = math.tanh %16 : vector<512x32xf32>
    %18 = arith.mulf %15, %17 : vector<512x32xf32>
    %c0_6 = arith.constant 0 : index
    %c0_7 = arith.constant 0 : index
    %19 = vector.load %arg4[%c0_6, %c0_7] : memref<32x32xf32, #tpu.memory_space<vmem>>, vector<32x32xf32>
    %cst_8 = arith.constant dense<0.000000e+00> : vector<512x32xf32>
    %20 = tpu.matmul %18, %19, %cst_8 {dimension_numbers = #tpu.dot_dimension_numbers<[1], [0], [0], [1], [0, 0, 1, 1], [], []>} : vector<512x32xf32>, vector<32x32xf32>, vector<512x32xf32> -> vector<512x32xf32>
    %c0_9 = arith.constant 0 : index
    %c0_10 = arith.constant 0 : index
    %21 = vector.load %arg5[%c0_9, %c0_10] : memref<1x32xf32, #tpu.memory_space<vmem>>, vector<1x32xf32>
    %22 = vector.broadcast %21 : vector<1x32xf32> to vector<512x32xf32>
    %23 = arith.addf %20, %22 : vector<512x32xf32>
    %c0_11 = arith.constant 0 : index
    %c0_12 = arith.constant 0 : index
    %24 = vector.load %arg6[%c0_11, %c0_12] : memref<512x96xf32, #tpu.memory_space<vmem>>, vector<512x32xf32>
    tpu.vector_store %arg6[%c0_11, %c0_12], %18 {strides = array<i32>} : memref<512x96xf32, #tpu.memory_space<vmem>>, vector<512x32xf32>,
    %c0_13 = arith.constant 0 : index
    %c32 = arith.constant 32 : index
    %25 = vector.load %arg6[%c0_13, %c32] : memref<512x96xf32, #tpu.memory_space<vmem>>, vector<512x32xf32>
    tpu.vector_store %arg6[%c0_13, %c32], %16 {strides = array<i32>} : memref<512x96xf32, #tpu.memory_space<vmem>>, vector<512x32xf32>,
    %c0_14 = arith.constant 0 : index
    %c64 = arith.constant 64 : index
    %26 = vector.load %arg6[%c0_14, %c64] : memref<512x96xf32, #tpu.memory_space<vmem>>, vector<512x32xf32>
    tpu.vector_store %arg6[%c0_14, %c64], %23 {strides = array<i32>} : memref<512x96xf32, #tpu.memory_space<vmem>>, vector<512x32xf32>,
    return
  }
  func.func @transform_0(%arg0: i32) -> (i32, i32) {
    %c0_i32 = arith.constant 0 : i32
    %c0_i32_0 = arith.constant 0 : i32
    return %arg0, %c0_i32 : i32, i32
  }
  func.func @transform_1(%arg0: i32) -> (i32, i32) {
    %c0_i32 = arith.constant 0 : i32
    %c0_i32_0 = arith.constant 0 : i32
    %c0_i32_1 = arith.constant 0 : i32
    return %c0_i32, %c0_i32_0 : i32, i32
  }
  func.func @transform_2(%arg0: i32) -> (i32, i32) {
    %c0_i32 = arith.constant 0 : i32
    %c0_i32_0 = arith.constant 0 : i32
    %c0_i32_1 = arith.constant 0 : i32
    return %c0_i32, %c0_i32_0 : i32, i32
  }
  func.func @transform_3(%arg0: i32) -> (i32, i32) {
    %c0_i32 = arith.constant 0 : i32
    %c0_i32_0 = arith.constant 0 : i32
    %c0_i32_1 = arith.constant 0 : i32
    return %c0_i32, %c0_i32_0 : i32, i32
  }
  func.func @transform_4(%arg0: i32) -> (i32, i32) {
    %c0_i32 = arith.constant 0 : i32
    %c0_i32_0 = arith.constant 0 : i32
    %c0_i32_1 = arith.constant 0 : i32
    return %c0_i32, %c0_i32_0 : i32, i32
  }
  func.func @transform_5(%arg0: i32) -> (i32, i32) {
    %c0_i32 = arith.constant 0 : i32
    %c0_i32_0 = arith.constant 0 : i32
    return %arg0, %c0_i32 : i32, i32
  }
}

</mosaic_0001>

<bundles_post_ra>
// kernel: pxlstm_forward.1
= control target key start
LH: loop header
LB: loop body
LE: loop exit
PB: predicated region body
PF: predicated region fallthrough
CT: control target
= control target key end

     0   :  { %vm285_vm0 = vcmask 1043456   ;;  %vm92_vm1 = vcmask 31744   ;;  %vm2029_vm2 = vcmask 261120   ;;  %vm2927_vm3 = vcmask 523520   ;;  %s7085_s1 = inlined_call_operand.vmem [shape: f32[4,128], index: 1, kind: input, shape index: {}]   ;;  %s7086_s0 = inlined_call_operand.vmem [shape: f32[512,4], index: 0, kind: input, shape index: {}]   ;;  %s7087_s2 = inlined_call_operand.vmem [shape: f32[1,128], index: 2, kind: input, shape index: {}]   ;;  %s7088_s3 = inlined_call_operand.vmem [shape: f32[32,32], index: 3, kind: input, shape index: {}]   ;;  %s7089_s5 = inlined_call_operand.vmem [shape: f32[512,96], index: 5, kind: output, shape index: {}]   ;;  %s7090_s4 = inlined_call_operand.vmem [shape: f32[1,32], index: 4, kind: input, shape index: {}]  }
   0x1   :  { %v84_v0 = vld [vmem:[%s7085_s1] sm:$0xf]  ;;  %v21_v2 = vld [vmem:[%s7086_s0 + $0x8] sm:$0xff]  ;;  %v22_v3 = vld [vmem:[%s7086_s0 + $0x10] sm:$0xff]  ;;  %vm3248_vm4 = vcmask 785920  }
   0x2   :  { %v20_v1 = vld [vmem:[%s7086_s0] sm:$0xff]  ;;  %3645 = vmatprep.subr.msk.mxu0 %vm285_vm0, %v84_v0  ;;  %v23_v4 = vld [vmem:[%s7086_s0 + $0x18] sm:$0xff]  ;;  %v25_v6 = vld [vmem:[%s7086_s0 + $0x28] sm:$0xff] }
   0x3   :  { %3647 = vmatprep.mubr.msk.f32.mxu0 %vm92_vm1, %v20_v1  ;;  %3646 = vmatpush3.msk.msra.mxu0 %vm285_vm0, %v84_v0  ;;  %v24_v5 = vld [vmem:[%s7086_s0 + $0x20] sm:$0xff]  ;;  %v26_v7 = vld [vmem:[%s7086_s0 + $0x30] sm:$0xff]  ;;  %v27_v8 = vld [vmem:[%s7086_s0 + $0x38] sm:$0xff] }
   0x4   :  { %3648 = vmatmul.mubr.msk.f32.vlgmr.msra.gmra.mrb[0].mxu0 %vm92_vm1, %v21_v2  ;;  %v28_v9 = vld [vmem:[%s7086_s0 + $0x40] sm:$0xff]  ;;  %v29_v10 = vld [vmem:[%s7086_s0 + $0x48] sm:$0xff]  ;;  %v30_v11 = vld [vmem:[%s7086_s0 + $0x50] sm:$0xff] }
   0x5   :  { %3650 = vmatprep.mubr.msk.f32.mxu0 %vm92_vm1, %v22_v3  ;;  %v31_v12 = vld [vmem:[%s7086_s0 + $0x58] sm:$0xff]  ;;  %v32_v13 = vld [vmem:[%s7086_s0 + $0x60] sm:$0xff]  ;;  %v33_v14 = vld [vmem:[%s7086_s0 + $0x68] sm:$0xff] }
   0x6   :  { %v34_v15 = vld [vmem:[%s7086_s0 + $0x70] sm:$0xff]  ;;  %v35_v16 = vld [vmem:[%s7086_s0 + $0x78] sm:$0xff]  ;;  %v36_v17 = vld [vmem:[%s7086_s0 + $0x80] sm:$0xff] }
   0x7   :  { %v37_v18 = vld [vmem:[%s7086_s0 + $0x88] sm:$0xff]  ;;  %v38_v19 = vld [vmem:[%s7086_s0 + $0x90] sm:$0xff]  ;;  %v39_v20 = vld [vmem:[%s7086_s0 + $0x98] sm:$0xff] }
   0x8   :  { %3651 = vmatmul.mubr.msk.f32.gmra.mrb[2].mxu0 %vm92_vm1, %v23_v4  ;;  %v40_v21 = vld [vmem:[%s7086_s0 + $0xa0] sm:$0xff]  ;;  %v41_v22 = vld [vmem:[%s7086_s0 + $0xa8] sm:$0xff]  ;;  %v42_v23 = vld [vmem:[%s7086_s0 + $0xb0] sm:$0xff] }
   0x9   :  { %3653 = vmatprep.mubr.msk.f32.mxu0 %vm92_vm1, %v24_v5  ;;  %v43_v24 = vld [vmem:[%s7086_s0 + $0xb8] sm:$0xff]  ;;  %v44_v25 = vld [vmem:[%s7086_s0 + $0xc0] sm:$0xff]  ;;  %v45_v26 = vld [vmem:[%s7086_s0 + $0xc8] sm:$0xff] }
   0xa   :  { %v46_v27 = vld [vmem:[%s7086_s0 + $0xd0] sm:$0xff]  ;;  %v47_v28 = vld [vmem:[%s7086_s0 + $0xd8] sm:$0xff]  ;;  %v48_v29 = vld [vmem:[%s7086_s0 + $0xe0] sm:$0xff] }
   0xb   :  { %v49_v30 = vld [vmem:[%s7086_s0 + $0xe8] sm:$0xff]  ;;  %v50_v31 = vld [vmem:[%s7086_s0 + $0xf0] sm:$0xff]  ;;  %v51_v32 = vld [vmem:[%s7086_s0 + $0xf8] sm:$0xff] }
   0xc   :  { %3654 = vmatmul.mubr.msk.f32.gmra.mrb[4].mxu0 %vm92_vm1, %v25_v6  ;;  %v52_v33 = vld [vmem:[%s7086_s0 + $0x100] sm:$0xff]  ;;  %v53_v34 = vld [vmem:[%s7086_s0 + $0x108] sm:$0xff]  ;;  %v54_v35 = vld [vmem:[%s7086_s0 + $0x110] sm:$0xff] }
   0xd   :  { %3656 = vmatprep.mubr.msk.f32.mxu0 %vm92_vm1, %v26_v7  ;;  %v55_v36 = vld [vmem:[%s7086_s0 + $0x118] sm:$0xff]  ;;  %v56_v37 = vld [vmem:[%s7086_s0 + $0x120] sm:$0xff]  ;;  %v57_v38 = vld [vmem:[%s7086_s0 + $0x128] sm:$0xff] }
   0xe   :  { %v58_v39 = vld [vmem:[%s7086_s0 + $0x130] sm:$0xff]  ;;  %v59_v40 = vld [vmem:[%s7086_s0 + $0x138] sm:$0xff]  ;;  %v60_v41 = vld [vmem:[%s7086_s0 + $0x140] sm:$0xff] }
   0xf   :  { %v61_v42 = vld [vmem:[%s7086_s0 + $0x148] sm:$0xff]  ;;  %v62_v43 = vld [vmem:[%s7086_s0 + $0x150] sm:$0xff]  ;;  %v63_v44 = vld [vmem:[%s7086_s0 + $0x158] sm:$0xff] }
  0x10   :  { %3657 = vmatmul.mubr.msk.f32.gmra.mrb[6].mxu0 %vm92_vm1, %v27_v8  ;;  %v64_v45 = vld [vmem:[%s7086_s0 + $0x160] sm:$0xff]  ;;  %v65_v46 = vld [vmem:[%s7086_s0 + $0x168] sm:$0xff]  ;;  %v66_v47 = vld [vmem:[%s7086_s0 + $0x170] sm:$0xff] }
  0x11   :  { %3659 = vmatprep.mubr.msk.f32.mxu0 %vm92_vm1, %v28_v9  ;;  %v67_v48 = vld [vmem:[%s7086_s0 + $0x178] sm:$0xff]  ;;  %v68_v49 = vld [vmem:[%s7086_s0 + $0x180] sm:$0xff]  ;;  %v69_v50 = vld [vmem:[%s7086_s0 + $0x188] sm:$0xff] }
  0x12   :  { %v70_v51 = vld [vmem:[%s7086_s0 + $0x190] sm:$0xff]  ;;  %v71_v52 = vld [vmem:[%s7086_s0 + $0x198] sm:$0xff]  ;;  %v72_v53 = vld [vmem:[%s7086_s0 + $0x1a0] sm:$0xff] }
  0x13   :  { %v73_v54 = vld [vmem:[%s7086_s0 + $0x1a8] sm:$0xff]  ;;  %v74_v55 = vld [vmem:[%s7086_s0 + $0x1b0] sm:$0xff]  ;;  %v75_v56 = vld [vmem:[%s7086_s0 + $0x1b8] sm:$0xff] }
  0x14   :  { %3660 = vmatmul.mubr.msk.f32.gmra.mrb[8].mxu0 %vm92_vm1, %v29_v10  ;;  %v76_v57 = vld [vmem:[%s7086_s0 + $0x1c0] sm:$0xff]  ;;  %v77_v58 = vld [vmem:[%s7086_s0 + $0x1c8] sm:$0xff]  ;;  %v78_v59 = vld [vmem:[%s7086_s0 + $0x1d0] sm:$0xff] }
  0x15   :  { %3662 = vmatprep.mubr.msk.f32.mxu0 %vm92_vm1, %v30_v11  ;;  %v79_v60 = vld [vmem:[%s7086_s0 + $0x1d8] sm:$0xff]  ;;  %v80_v61 = vld [vmem:[%s7086_s0 + $0x1e0] sm:$0xff]  ;;  %v81_v62 = vld [vmem:[%s7086_s0 + $0x1e8] sm:$0xff] }
  0x16   :  { %v82_v63 = vld [vmem:[%s7086_s0 + $0x1f0] sm:$0xff]  ;;  %v83_v0 = vld [vmem:[%s7086_s0 + $0x1f8] sm:$0xff]  ;;  %v4663_v1 = vld [vmem:[%s7087_s2] ss:$0 sm:$0xff]  ;;  %s4369_s0 = smov 32   ;;  %s4370_s2 = smov 64  }
  0x18   :  { %3663 = vmatmul.mubr.msk.f32.gmra.mrb[10].mxu0 %vm92_vm1, %v31_v12 }
  0x19   :  { %3665 = vmatprep.mubr.msk.f32.mxu0 %vm92_vm1, %v32_v13 }
  0x1c   :  { %3666 = vmatmul.mubr.msk.f32.gmra.mrb[12].mxu0 %vm92_vm1, %v33_v14 }
  0x1d   :  { %3668 = vmatprep.mubr.msk.f32.mxu0 %vm92_vm1, %v34_v15 }
  0x20   :  { %3669 = vmatmul.mubr.msk.f32.gmra.mrb[14].mxu0 %vm92_vm1, %v35_v16 }
  0x21   :  { %3671 = vmatprep.mubr.msk.f32.mxu0 %vm92_vm1, %v36_v17 }
  0x24   :  { %3672 = vmatmul.mubr.msk.f32.gmra.mrb[16].mxu0 %vm92_vm1, %v37_v18 }
  0x25   :  { %3674 = vmatprep.mubr.msk.f32.mxu0 %vm92_vm1, %v38_v19 }
  0x28   :  { %3675 = vmatmul.mubr.msk.f32.gmra.mrb[18].mxu0 %vm92_vm1, %v39_v20 }
  0x29   :  { %3677 = vmatprep.mubr.msk.f32.mxu0 %vm92_vm1, %v40_v21 }
  0x2c   :  { %3678 = vmatmul.mubr.msk.f32.gmra.mrb[20].mxu0 %vm92_vm1, %v41_v22 }
  0x2d   :  { %3680 = vmatprep.mubr.msk.f32.mxu0 %vm92_vm1, %v42_v23 }
  0x30   :  { %3681 = vmatmul.mubr.msk.f32.gmra.mrb[22].mxu0 %vm92_vm1, %v43_v24 }
  0x31   :  { %3683 = vmatprep.mubr.msk.f32.mxu0 %vm92_vm1, %v44_v25 }
  0x34   :  { %3684 = vmatmul.mubr.msk.f32.gmra.mrb[24].mxu0 %vm92_vm1, %v45_v26 }
  0x35   :  { %3686 = vmatprep.mubr.msk.f32.mxu0 %vm92_vm1, %v46_v27 }
  0x38   :  { %3687 = vmatmul.mubr.msk.f32.gmra.mrb[26].mxu0 %vm92_vm1, %v47_v28 }
  0x39   :  { %3689 = vmatprep.mubr.msk.f32.mxu0 %vm92_vm1, %v48_v29 }
  0x3c   :  { %3690 = vmatmul.mubr.msk.f32.gmra.mrb[28].mxu0 %vm92_vm1, %v49_v30 }
  0x3d   :  { %3692 = vmatprep.mubr.msk.f32.mxu0 %vm92_vm1, %v50_v31 }
  0x40   :  { %3693 = vmatmul.mubr.msk.f32.gmra.mrb[30].mxu0 %vm92_vm1, %v51_v32 }
  0x41   :  { %3695 = vmatprep.mubr.msk.f32.mxu0 %vm92_vm1, %v52_v33 }
  0x44   :  { %3696 = vmatmul.mubr.msk.f32.gmra.mrb[32].mxu0 %vm92_vm1, %v53_v34 }
  0x45   :  { %3698 = vmatprep.mubr.msk.f32.mxu0 %vm92_vm1, %v54_v35 }
  0x48   :  { %3699 = vmatmul.mubr.msk.f32.gmra.mrb[34].mxu0 %vm92_vm1, %v55_v36 }
  0x49   :  { %3701 = vmatprep.mubr.msk.f32.mxu0 %vm92_vm1, %v56_v37 }
  0x4c   :  { %3702 = vmatmul.mubr.msk.f32.gmra.mrb[36].mxu0 %vm92_vm1, %v57_v38 }
  0x4d   :  { %3704 = vmatprep.mubr.msk.f32.mxu0 %vm92_vm1, %v58_v39 }
  0x50   :  { %3705 = vmatmul.mubr.msk.f32.gmra.mrb[38].mxu0 %vm92_vm1, %v59_v40 }
  0x51   :  { %3707 = vmatprep.mubr.msk.f32.mxu0 %vm92_vm1, %v60_v41 }
  0x54   :  { %3708 = vmatmul.mubr.msk.f32.gmra.mrb[40].mxu0 %vm92_vm1, %v61_v42 }
  0x55   :  { %3710 = vmatprep.mubr.msk.f32.mxu0 %vm92_vm1, %v62_v43 }
  0x58   :  { %3711 = vmatmul.mubr.msk.f32.gmra.mrb[42].mxu0 %vm92_vm1, %v63_v44 }
  0x59   :  { %3713 = vmatprep.mubr.msk.f32.mxu0 %vm92_vm1, %v64_v45 }
  0x5c   :  { %3714 = vmatmul.mubr.msk.f32.gmra.mrb[44].mxu0 %vm92_vm1, %v65_v46 }
  0x5d   :  { %3716 = vmatprep.mubr.msk.f32.mxu0 %vm92_vm1, %v66_v47 }
  0x60   :  { %3717 = vmatmul.mubr.msk.f32.gmra.mrb[46].mxu0 %vm92_vm1, %v67_v48 }
  0x61   :  { %3719 = vmatprep.mubr.msk.f32.mxu0 %vm92_vm1, %v68_v49 }
  0x64   :  { %3720 = vmatmul.mubr.msk.f32.gmra.mrb[48].mxu0 %vm92_vm1, %v69_v50 }
  0x65   :  { %3722 = vmatprep.mubr.msk.f32.mxu0 %vm92_vm1, %v70_v51 }
  0x68   :  { %3723 = vmatmul.mubr.msk.f32.gmra.mrb[50].mxu0 %vm92_vm1, %v71_v52 }
  0x69   :  { %3725 = vmatprep.mubr.msk.f32.mxu0 %vm92_vm1, %v72_v53 }
  0x6c   :  { %3726 = vmatmul.mubr.msk.f32.gmra.mrb[52].mxu0 %vm92_vm1, %v73_v54 }
  0x6d   :  { %3728 = vmatprep.mubr.msk.f32.mxu0 %vm92_vm1, %v74_v55 }
  0x70   :  { %3729 = vmatmul.mubr.msk.f32.gmra.mrb[54].mxu0 %vm92_vm1, %v75_v56 }
  0x71   :  { %3731 = vmatprep.mubr.msk.f32.mxu0 %vm92_vm1, %v76_v57 }
  0x74   :  { %3732 = vmatmul.mubr.msk.f32.gmra.mrb[56].mxu0 %vm92_vm1, %v77_v58 }
  0x75   :  { %3734 = vmatprep.mubr.msk.f32.mxu0 %vm92_vm1, %v78_v59 }
  0x78   :  { %3735 = vmatmul.mubr.msk.f32.gmra.mrb[58].mxu0 %vm92_vm1, %v79_v60 }
  0x79   :  { %3737 = vmatprep.mubr.msk.f32.mxu0 %vm92_vm1, %v80_v61 }
  0x7c   :  { %3738 = vmatmul.mubr.msk.f32.gmra.mrb[60].mxu0 %vm92_vm1, %v81_v62 }
  0x7d   :  { %3740 = vmatprep.mubr.msk.f32.mxu0 %vm92_vm1, %v82_v63 }
  0x80   :  { %3741 = vmatmul.mubr.msk.f32.gmra.mrb[62].mxu0 %vm92_vm1, %v83_v0 }
  0xd7   :  { %v3649_v2 = vpop.f32.mrb[0].mxu0 }
  0xd8   :  { %v4666_v3 = vadd.f32 %v3649_v2, %v4663_v1  ;;  %v355_v4 = vpop.f32.mrb[1].mxu0 }
  0xd9   :  { %v4669_v5 = vadd.f32 %v4663_v1, %v355_v4 }
  0xda   :  { %3857 = vtanh.f32 %v4666_v3 }
  0xdb   :  { %v3652_v6 = vpop.f32.mrb[2].mxu0  ;;  %3859 = vtanh.f32 %v4669_v5 }
  0xdc   :  { %v4673_v7 = vadd.f32 %v3652_v6, %v4663_v1  ;;  %v365_v8 = vpop.f32.mrb[3].mxu0 }
  0xdd   :  { %v4678_v9 = vadd.f32 %v4663_v1, %v365_v8 }
  0xde   :  { %3861 = vtanh.f32 %v4673_v7 }
  0xdf   :  { %v3655_v10 = vpop.f32.mrb[4].mxu0  ;;  %3863 = vtanh.f32 %v4678_v9 }
  0xe0   :  { %v4681_v11 = vadd.f32 %v3655_v10, %v4663_v1  ;;  %v375_v12 = vpop.f32.mrb[5].mxu0 }
  0xe1   :  { %v4684_v13 = vadd.f32 %v4663_v1, %v375_v12 }
  0xe3   :  { %3865 = vtanh.f32 %v4684_v13  ;;  %v3658_v14 = vpop.f32.mrb[6].mxu0 }
  0xe4   :  { %v3858_v15 = vpop.eup %3857  ;;  %3867 = vtanh.f32 %v4681_v11  ;;  %v4690_v16 = vadd.f32 %v3658_v14, %v4663_v1  ;;  %v385_v17 = vpop.f32.mrb[7].mxu0 }
  0xe5   :  { %v4693_v18 = vadd.f32 %v4663_v1, %v385_v17  ;;  %1188 = vrot.lane.b32.xlu0 %v3858_v15, %s4369_s0  ;;  %v3860_v19 = vpop.eup %3859 }
  0xe7   :  { %3869 = vtanh.f32 %v4693_v18  ;;  %v3661_v20 = vpop.f32.mrb[8].mxu0 }
  0xe8   :  { %v3862_v21 = vpop.eup %3861  ;;  %3871 = vtanh.f32 %v4690_v16  ;;  %v395_v22 = vpop.f32.mrb[9].mxu0  ;;  %v4701_v23 = vadd.f32 %v3661_v20, %v4663_v1 }
  0xe9   :  { %1192 = vrot.lane.b32.xlu1 %v3862_v21, %s4369_s0  ;;  %1186 = vrot.lane.b32.xlu0 %v3860_v19, %s4369_s0  ;;  %v3864_v25 = vpop.eup %3863  ;;  %v4707_v29 = vadd.f32 %v4663_v1, %v395_v22 }
  0xea   :  { %3873 = vtanh.f32 %v4701_v23 }
  0xeb   :  { %v3664_v24 = vpop.f32.mrb[10].mxu0  ;;  %3875 = vtanh.f32 %v4707_v29 }
  0xec   :  { %v405_v26 = vpop.f32.mrb[11].mxu0  ;;  %v4711_v34 = vadd.f32 %v3664_v24, %v4663_v1 }
  0xed   :  { %v3866_v27 = vpop.eup %3865  ;;  %1190 = vrot.lane.b32.xlu1 %v3864_v25, %s4369_s0  ;;  %v4718_v37 = vadd.f32 %v4663_v1, %v405_v26 }
  0xee   :  { %v3868_v28 = vpop.eup %3867  ;;  %1194 = vrot.lane.b32.xlu0 %v3866_v27, %s4369_s0  ;;  %3877 = vtanh.f32 %v4711_v34 }
  0xef   :  { %v3667_v30 = vpop.f32.mrb[12].mxu0  ;;  %3879 = vtanh.f32 %v4718_v37 }
  0xf0   :  { %v415_v31 = vpop.f32.mrb[13].mxu0  ;;  %v4721_v39 = vadd.f32 %v3667_v30, %v4663_v1 }
  0xf1   :  { %v3870_v32 = vpop.eup %3869  ;;  %1196 = vrot.lane.b32.xlu1 %v3868_v28, %s4369_s0  ;;  %v4726_v42 = vadd.f32 %v4663_v1, %v415_v31 }
  0xf2   :  { %v3872_v33 = vpop.eup %3871  ;;  %1198 = vrot.lane.b32.xlu0 %v3870_v32, %s4369_s0  ;;  %3881 = vtanh.f32 %v4721_v39 }
  0xf3   :  { %v3670_v35 = vpop.f32.mrb[14].mxu0  ;;  %3883 = vtanh.f32 %v4726_v42 }
  0xf4   :  { %v425_v36 = vpop.f32.mrb[15].mxu0  ;;  %v3874_v41 = vpop.eup %3873  ;;  %v4730_v46 = vadd.f32 %v3670_v35, %v4663_v1 }
  0xf5   :  { %1200 = vrot.lane.b32.xlu1 %v3872_v33, %s4369_s0  ;;  %v3876_v45 = vpop.eup %3875  ;;  %v4735_v50 = vadd.f32 %v4663_v1, %v425_v36 }
  0xf6   :  { %1202 = vrot.lane.b32.xlu0 %v3876_v45, %s4369_s0  ;;  %3885 = vtanh.f32 %v4730_v46 }
  0xf7   :  { %v3673_v38 = vpop.f32.mrb[16].mxu0  ;;  %3887 = vtanh.f32 %v4735_v50 }
  0xf8   :  { %v435_v40 = vpop.f32.mrb[17].mxu0  ;;  %v3878_v48 = vpop.eup %3877  ;;  %v4740_v51 = vadd.f32 %v3673_v38, %v4663_v1 }
  0xf9   :  { %1204 = vrot.lane.b32.xlu1 %v3874_v41, %s4369_s0  ;;  %v3880_v53 = vpop.eup %3879  ;;  %v4745_v56 = vadd.f32 %v4663_v1, %v435_v40 }
  0xfa   :  { %1206 = vrot.lane.b32.xlu0 %v3880_v53, %s4369_s0  ;;  %3889 = vtanh.f32 %v4740_v51 }
  0xfb   :  { %v3676_v43 = vpop.f32.mrb[18].mxu0  ;;  %3891 = vtanh.f32 %v4745_v56 }
  0xfc   :  { %v445_v44 = vpop.f32.mrb[19].mxu0  ;;  %v3882_v55 = vpop.eup %3881  ;;  %v4751_v60 = vadd.f32 %v3676_v43, %v4663_v1 }
  0xfd   :  { %1208 = vrot.lane.b32.xlu1 %v3878_v48, %s4369_s0  ;;  %v3884_v59 = vpop.eup %3883  ;;  %v4755_v0 = vadd.f32 %v4663_v1, %v445_v44 }
  0xfe   :  { %1210 = vrot.lane.b32.xlu0 %v3884_v59, %s4369_s0  ;;  %3893 = vtanh.f32 %v4751_v60 }
  0xff   :  { %v3679_v47 = vpop.f32.mrb[20].mxu0  ;;  %3895 = vtanh.f32 %v4755_v0 }
 0x100   :  { %v455_v49 = vpop.f32.mrb[21].mxu0  ;;  %v3886_v62 = vpop.eup %3885  ;;  %v4760_v6 = vadd.f32 %v3679_v47, %v4663_v1 }
 0x101   :  { %1212 = vrot.lane.b32.xlu1 %v3882_v55, %s4369_s0  ;;  %v3888_v2 = vpop.eup %3887  ;;  %v4766_v12 = vadd.f32 %v4663_v1, %v455_v49 }
 0x102   :  { %1214 = vrot.lane.b32.xlu0 %v3888_v2, %s4369_s0  ;;  %3897 = vtanh.f32 %v4760_v6 }
 0x103   :  { %v3682_v52 = vpop.f32.mrb[22].mxu0  ;;  %3899 = vtanh.f32 %v4766_v12 }
 0x104   :  { %v465_v54 = vpop.f32.mrb[23].mxu0  ;;  %v3890_v10 = vpop.eup %3889  ;;  %v4771_v19 = vadd.f32 %v3682_v52, %v4663_v1 }
 0x105   :  { %1216 = vrot.lane.b32.xlu1 %v3886_v62, %s4369_s0  ;;  %v3892_v15 = vpop.eup %3891  ;;  %v4775_v24 = vadd.f32 %v4663_v1, %v465_v54 }
 0x106   :  { %1218 = vrot.lane.b32.xlu0 %v3892_v15, %s4369_s0  ;;  %3901 = vtanh.f32 %v4771_v19 }
 0x107   :  { %v3685_v57 = vpop.f32.mrb[24].mxu0  ;;  %3903 = vtanh.f32 %v4775_v24 }
 0x108   :  { %v475_v58 = vpop.f32.mrb[25].mxu0  ;;  %v3894_v21 = vpop.eup %3893  ;;  %v4780_v27 = vadd.f32 %v3685_v57, %v4663_v1 }
 0x109   :  { %1220 = vrot.lane.b32.xlu1 %v3890_v10, %s4369_s0  ;;  %v3896_v25 = vpop.eup %3895  ;;  %v4785_v31 = vadd.f32 %v4663_v1, %v475_v58 }
 0x10a   :  { %1222 = vrot.lane.b32.xlu0 %v3896_v25, %s4369_s0  ;;  %3905 = vtanh.f32 %v4780_v27 }
 0x10b   :  { %v3688_v61 = vpop.f32.mrb[26].mxu0  ;;  %3907 = vtanh.f32 %v4785_v31 }
 0x10c   :  { %v485_v63 = vpop.f32.mrb[27].mxu0  ;;  %v3898_v30 = vpop.eup %3897  ;;  %v4790_v36 = vadd.f32 %v3688_v61, %v4663_v1 }
 0x10d   :  { %1224 = vrot.lane.b32.xlu1 %v3894_v21, %s4369_s0  ;;  %v3900_v35 = vpop.eup %3899  ;;  %v4799_v43 = vadd.f32 %v4663_v1, %v485_v63 }
 0x10e   :  { %1226 = vrot.lane.b32.xlu0 %v3900_v35, %s4369_s0  ;;  %3909 = vtanh.f32 %v4790_v36 }
 0x10f   :  { %v3691_v4 = vpop.f32.mrb[28].mxu0  ;;  %3911 = vtanh.f32 %v4799_v43 }
 0x110   :  { %v495_v8 = vpop.f32.mrb[29].mxu0  ;;  %v3902_v40 = vpop.eup %3901  ;;  %v4806_v47 = vadd.f32 %v3691_v4, %v4663_v1 }
 0x111   :  { %1228 = vrot.lane.b32.xlu1 %v3898_v30, %s4369_s0  ;;  %v3904_v44 = vpop.eup %3903  ;;  %v4813_v52 = vadd.f32 %v4663_v1, %v495_v8 }
 0x112   :  { %1230 = vrot.lane.b32.xlu0 %v3904_v44, %s4369_s0  ;;  %3913 = vtanh.f32 %v4806_v47 }
 0x113   :  { %v3694_v14 = vpop.f32.mrb[30].mxu0  ;;  %3915 = vtanh.f32 %v4813_v52 }
 0x114   :  { %v505_v17 = vpop.f32.mrb[31].mxu0  ;;  %v3906_v49 = vpop.eup %3905  ;;  %v4822_v57 = vadd.f32 %v3694_v14, %v4663_v1 }
 0x115   :  { %1232 = vrot.lane.b32.xlu1 %v3902_v40, %s4369_s0  ;;  %v3908_v55 = vpop.eup %3907  ;;  %v4831_v62 = vadd.f32 %v4663_v1, %v505_v17 }
 0x116   :  { %1234 = vrot.lane.b32.xlu0 %v3908_v55, %s4369_s0  ;;  %3917 = vtanh.f32 %v4822_v57 }
 0x117   :  { %v3697_v20 = vpop.f32.mrb[32].mxu0  ;;  %3919 = vtanh.f32 %v4831_v62 }
 0x118   :  { %v515_v22 = vpop.f32.mrb[33].mxu0  ;;  %v3910_v59 = vpop.eup %3909  ;;  %v4838_v4 = vadd.f32 %v3697_v20, %v4663_v1 }
 0x119   :  { %1236 = vrot.lane.b32.xlu1 %v3906_v49, %s4369_s0  ;;  %v3912_v63 = vpop.eup %3911  ;;  %v4845_v14 = vadd.f32 %v4663_v1, %v515_v22 }
 0x11a   :  { %1238 = vrot.lane.b32.xlu0 %v3912_v63, %s4369_s0  ;;  %3921 = vtanh.f32 %v4838_v4 }
 0x11b   :  { %v3700_v26 = vpop.f32.mrb[34].mxu0  ;;  %3923 = vtanh.f32 %v4845_v14 }
 0x11c   :  { %v525_v28 = vpop.f32.mrb[35].mxu0  ;;  %v3914_v10 = vpop.eup %3913  ;;  %v4854_v21 = vadd.f32 %v3700_v26, %v4663_v1 }
 0x11d   :  { %1240 = vrot.lane.b32.xlu1 %v3910_v59, %s4369_s0  ;;  %v3916_v20 = vpop.eup %3915  ;;  %v4863_v35 = vadd.f32 %v4663_v1, %v525_v28 }
 0x11e   :  { %7181 = vst [vmem:[#allocation2_spill] sm:$0xff] %v4854_v21  ;;  %1242 = vrot.lane.b32.xlu0 %v3916_v20, %s4369_s0  ;;  %3925 = vtanh.f32 %v4854_v21 }
 0x11f   :  { %v3703_v32 = vpop.f32.mrb[36].mxu0  ;;  %7182 = vst [vmem:[#allocation3_spill] sm:$0xff] %v4863_v35  ;;  %3927 = vtanh.f32 %v4863_v35 }
 0x120   :  { %v535_v33 = vpop.f32.mrb[37].mxu0  ;;  %v3918_v22 = vpop.eup %3917  ;;  %v4870_v26 = vadd.f32 %v3703_v32, %v4663_v1 }
 0x121   :  { %1244 = vrot.lane.b32.xlu1 %v3914_v10, %s4369_s0  ;;  %v3920_v40 = vpop.eup %3919  ;;  %v4877_v28 = vadd.f32 %v4663_v1, %v535_v33 }
 0x122   :  { %7183 = vst [vmem:[#allocation4_spill] sm:$0xff] %v4870_v26  ;;  %1246 = vrot.lane.b32.xlu0 %v3920_v40, %s4369_s0  ;;  %3929 = vtanh.f32 %v4870_v26 }
 0x123   :  { %v4794_v38 = vpop.f32.mrb[38].mxu0  ;;  %7184 = vst [vmem:[#allocation5_spill] sm:$0xff] %v4877_v28  ;;  %3931 = vtanh.f32 %v4877_v28 }
 0x124   :  { %v4796_v41 = vpop.f32.mrb[39].mxu0  ;;  %v3922_v55 = vpop.eup %3921  ;;  %v4887_v10 = vadd.f32 %v4794_v38, %v4663_v1 }
 0x125   :  { %1248 = vrot.lane.b32.xlu1 %v3918_v22, %s4369_s0  ;;  %v3924_v32 = vpop.eup %3923  ;;  %v4897_v40 = vadd.f32 %v4663_v1, %v4796_v41 }
 0x126   :  { %7185 = vst [vmem:[#allocation6_spill] sm:$0xff] %v4887_v10  ;;  %1250 = vrot.lane.b32.xlu0 %v3924_v32, %s4369_s0  ;;  %3933 = vtanh.f32 %v4887_v10 }
 0x127   :  { %v4803_v45 = vpop.f32.mrb[40].mxu0  ;;  %7186 = vst [vmem:[#allocation7_spill] sm:$0xff] %v4897_v40  ;;  %3935 = vtanh.f32 %v4897_v40  ;;  %v3383_v40 = vmul.f32 -1.442695, %v4669_v5 }
 0x128   :  { %v4809_v48 = vpop.f32.mrb[41].mxu0  ;;  %v3926_v33 = vpop.eup %3925  ;;  %v4905_v32 = vadd.f32 %v4803_v45, %v4663_v1 }
 0x129   :  { %1252 = vrot.lane.b32.xlu1 %v3922_v55, %s4369_s0  ;;  %v3928_v55 = vpop.eup %3927  ;;  %v4913_v41 = vadd.f32 %v4663_v1, %v4809_v48 }
 0x12a   :  { %7187 = vst [vmem:[#allocation8_spill] sm:$0xff] %v4905_v32  ;;  %1254 = vrot.lane.b32.xlu0 %v3928_v55, %s4369_s0  ;;  %3937 = vtanh.f32 %v4905_v32  ;;  %v3384_v55 = vmul.f32 -1.442695, %v4666_v3  ;;  %v3386_v3 = vmul.f32 -1.442695, %v4673_v7 }
 0x12b   :  { %v4816_v53 = vpop.f32.mrb[42].mxu0  ;;  %3939 = vtanh.f32 %v4913_v41 }
 0x12c   :  { %v4819_v54 = vpop.f32.mrb[43].mxu0  ;;  %v3930_v26 = vpop.eup %3929  ;;  %v4924_v35 = vadd.f32 %v4816_v53, %v4663_v1  ;;  %3941 = vpow2.f32 %v3384_v55  ;;  %v3388_v55 = vmul.f32 -1.442695, %v4681_v11 }
 0x12d   :  { %1256 = vrot.lane.b32.xlu1 %v3926_v33, %s4369_s0  ;;  %v3932_v45 = vpop.eup %3931  ;;  %v4935_v32 = vadd.f32 %v4663_v1, %v4819_v54 }
 0x12e   :  { %1258 = vrot.lane.b32.xlu0 %v3932_v45, %s4369_s0  ;;  %3943 = vtanh.f32 %v4924_v35  ;;  %v3385_v45 = vmul.f32 -1.442695, %v4678_v9 }
 0x12f   :  { %v4826_v58 = vpop.f32.mrb[44].mxu0  ;;  %3945 = vpow2.f32 %v3383_v40  ;;  %v3387_v40 = vmul.f32 -1.442695, %v4684_v13 }
 0x130   :  { %v4828_v61 = vpop.f32.mrb[45].mxu0  ;;  %v4943_v5 = vadd.f32 %v4826_v58, %v4663_v1  ;;  %3947 = vtanh.f32 %v4935_v32 }
 0x131   :  { %1260 = vrot.lane.b32.xlu1 %v3930_v26, %s4369_s0  ;;  %v3934_v26 = vpop.eup %3933  ;;  %3949 = vpow2.f32 %v3386_v3  ;;  %v4950_v7 = vadd.f32 %v4663_v1, %v4828_v61 }
 0x132   :  { %v3936_v53 = vpop.eup %3935  ;;  %7188 = vst [vmem:[#allocation9_spill] sm:$0xff] %v4943_v5  ;;  %3951 = vpow2.f32 %v3385_v45  ;;  %v3390_v45 = vmul.f32 -1.442695, %v4690_v16 }
 0x133   :  { %v4835_v2 = vpop.f32.mrb[46].mxu0  ;;  %1262 = vrot.lane.b32.xlu0 %v3936_v53, %s4369_s0  ;;  %7189 = vst [vmem:[#allocation10_spill] sm:$0xff] %v4950_v7  ;;  %3953 = vtanh.f32 %v4943_v5 }
 0x134   :  { %v4841_v8 = vpop.f32.mrb[47].mxu0  ;;  %v3938_v54 = vpop.eup %3937  ;;  %3955 = vpow2.f32 %v3388_v55 }
 0x135   :  { %1264 = vrot.lane.b32.xlu1 %v3934_v26, %s4369_s0  ;;  %v3940_v58 = vpop.eup %3939  ;;  %v4959_v26 = vadd.f32 %v4835_v2, %v4663_v1  ;;  %3957 = vtanh.f32 %v4950_v7  ;;  %v4970_v13 = vadd.f32 %v4663_v1, %v4841_v8 }
 0x136   :  { %v3942_v61 = vpop.eup %3941  ;;  %3959 = vpow2.f32 %v3387_v40 }
 0x137   :  { %v4848_v15 = vpop.f32.mrb[48].mxu0  ;;  %7190 = vst [vmem:[#allocation11_spill] sm:$0xff] %v4959_v26  ;;  %1266 = vrot.lane.b32.xlu0 %v3940_v58, %s4369_s0  ;;  %7191 = vst [vmem:[#allocation12_spill] sm:$0xff] %v4970_v13  ;;  %3961 = vtanh.f32 %v4959_v26  ;;  %v3389_v58 = vmul.f32 -1.442695, %v4693_v18 }
 0x138   :  { %v4851_v17 = vpop.f32.mrb[49].mxu0  ;;  %v3944_v53 = vpop.eup %3943  ;;  %3963 = vpow2.f32 %v3390_v45  ;;  %v4979_v16 = vadd.f32 %v4848_v15, %v4663_v1  ;;  %v3392_v18 = vmul.f32 -1.442695, %v4701_v23 }
 0x139   :  { %1268 = vrot.lane.b32.xlu1 %v3938_v54, %s4369_s0  ;;  %v3946_v2 = vpop.eup %3945  ;;  %v867_v54 = vadd.f32 1.0, %v3942_v61  ;;  %3965 = vtanh.f32 %v4970_v13  ;;  %v4988_v45 = vadd.f32 %v4663_v1, %v4851_v17 }
 0x13a   :  { %v3948_v55 = vpop.eup %3947 }
 0x13b   :  { %v4858_v25 = vpop.f32.mrb[50].mxu0  ;;  %v3950_v5 = vpop.eup %3949  ;;  %1270 = vrot.lane.b32.xlu0 %v3948_v55, %s4369_s0  ;;  %3967 = vrcp.f32 %v867_v54  ;;  %7192 = vst [vmem:[#allocation13_spill] sm:$0xff] %v4988_v45 }
 0x13c   :  { %v4860_v30 = vpop.f32.mrb[51].mxu0  ;;  %v3952_v40 = vpop.eup %3951  ;;  %3969 = vpow2.f32 %v3389_v58  ;;  %v869_v26 = vadd.f32 1.0, %v3950_v5  ;;  %v4996_v23 = vadd.f32 %v4858_v25, %v4663_v1  ;;  %v3391_v58 = vmul.f32 -1.442695, %v4707_v29 }
 0x13d   :  { %1272 = vrot.lane.b32.xlu1 %v3944_v53, %s4369_s0  ;;  %v866_v53 = vadd.f32 1.0, %v3946_v2  ;;  %v3954_v61 = vpop.eup %3953  ;;  %3971 = vtanh.f32 %v4979_v16  ;;  %v868_v13 = vadd.f32 1.0, %v3952_v40  ;;  %v5005_v40 = vadd.f32 %v4663_v1, %v4860_v30 }
 0x13e   :  { %v3956_v15 = vpop.eup %3955  ;;  %v3394_v29 = vmul.f32 -1.442695, %v4711_v34 }
 0x13f   :  { %v4867_v44 = vpop.f32.mrb[52].mxu0  ;;  %v3958_v2 = vpop.eup %3957  ;;  %3973 = vrcp.f32 %v866_v53  ;;  %7193 = vst [vmem:[#allocation14_spill] sm:$0xff] %v5005_v40 }
 0x140   :  { %v4873_v49 = vpop.f32.mrb[53].mxu0  ;;  %3975 = vpow2.f32 %v3392_v18  ;;  %1274 = vrot.lane.b32.xlu0 %v3958_v2, %s4369_s0  ;;  %v3960_v54 = vpop.eup %3959 }
 0x141   :  { %1276 = vrot.lane.b32.xlu1 %v3954_v61, %s4369_s0  ;;  %3977 = vtanh.f32 %v4988_v45  ;;  %v3962_v5 = vpop.eup %3961  ;;  %v871_v61 = vadd.f32 1.0, %v3956_v15  ;;  %v870_v53 = vadd.f32 1.0, %v3960_v54 }
 0x142   :  { %3979 = vrcp.f32 %v869_v26  ;;  %v3964_v25 = vpop.eup %3963  ;;  %v5016_v26 = vadd.f32 %v4867_v44, %v4663_v1 }
 0x143   :  { %v4880_v59 = vpop.f32.mrb[54].mxu0  ;;  %3981 = vrcp.f32 %v868_v13  ;;  %v3966_v2 = vpop.eup %3965  ;;  %v873_v15 = vadd.f32 1.0, %v3964_v25 }
 0x144   :  { %v4883_v63 = vpop.f32.mrb[55].mxu0  ;;  %3983 = vtanh.f32 %v4996_v23  ;;  %7194 = vst [vmem:[#allocation15_spill] sm:$0xff] %v5016_v26  ;;  %1278 = vrot.lane.b32.xlu0 %v3966_v2, %s4369_s0 }
 0x145   :  { %1280 = vrot.lane.b32.xlu1 %v3962_v5, %s4369_s0  ;;  %3985 = vpow2.f32 %v3391_v58  ;;  %v5012_v45 = vpop.eup %3967  ;;  %v3393_v58 = vmul.f32 -1.442695, %v4718_v37  ;;  %v5027_v5 = vadd.f32 %v4663_v1, %v4873_v49 }
 0x146   :  { %3987 = vrcp.f32 %v871_v61  ;;  %v3970_v13 = vpop.eup %3969 }
 0x147   :  { %v4891_v20 = vpop.f32.mrb[56].mxu0  ;;  %3989 = vtanh.f32 %v5005_v40  ;;  %v3972_v54 = vpop.eup %3971  ;;  %7195 = vst [vmem:[#allocation16_spill] sm:$0xff] %v5027_v5  ;;  %v872_v61 = vadd.f32 1.0, %v3970_v13 }
 0x148   :  { %v4893_v22 = vpop.f32.mrb[57].mxu0  ;;  %3991 = vrcp.f32 %v870_v53  ;;  %v3396_v53 = vmul.f32 -1.442695, %v4721_v39  ;;  %v3395_v39 = vmul.f32 -1.442695, %v4726_v42 }
 0x149   :  { %v5023_v34 = vpop.eup %3973  ;;  %3993 = vpow2.f32 %v3394_v29  ;;  %1284 = vrot.lane.b32.xlu1 %v3972_v54, %s4369_s0  ;;  %v5038_v29 = vadd.f32 %v4880_v59, %v4663_v1  ;;  %v3397_v42 = vmul.f32 -1.442695, %v4735_v50 }
 0x14a   :  { %v3976_v44 = vpop.eup %3975  ;;  %3995 = vtanh.f32 %v5016_v26 }
 0x14b   :  { %v4901_v38 = vpop.f32.mrb[58].mxu0  ;;  %v3978_v2 = vpop.eup %3977  ;;  %3997 = vrcp.f32 %v873_v15  ;;  %7196 = vst [vmem:[#allocation17_spill] sm:$0xff] %v5038_v29  ;;  %v875_v54 = vadd.f32 1.0, %v3976_v44 }
 0x14c   :  { %v4908_v28 = vpop.f32.mrb[59].mxu0  ;;  %v5034_v37 = vpop.eup %3979  ;;  %3999 = vpow2.f32 %v3393_v58  ;;  %1282 = vrot.lane.b32.xlu0 %v3978_v2, %s4369_s0  ;;  %v5049_v58 = vadd.f32 %v4663_v1, %v4883_v63  ;;  %v3398_v2 = vmul.f32 -1.442695, %v4730_v46  ;;  %v5063_v63 = vadd.f32 %v4891_v20, %v4663_v1 }
 0x14d   :  { %v5043_v13 = vpop.eup %3981  ;;  %4001 = vtanh.f32 %v5027_v5 }
 0x14e   :  { %v3984_v26 = vpop.eup %3983  ;;  %4003 = vrcp.f32 %v872_v61  ;;  %7197 = vst [vmem:[#allocation18_spill] sm:$0xff] %v5049_v58  ;;  %7198 = vst [vmem:[#allocation19_spill] sm:$0xff] %v5063_v63 }
 0x14f   :  { %v4916_v33 = vpop.f32.mrb[60].mxu0  ;;  %v3986_v15 = vpop.eup %3985  ;;  %4005 = vpow2.f32 %v3396_v53  ;;  %1288 = vrot.lane.b32.xlu1 %v3984_v26, %s4369_s0 }
 0x150   :  { %v4919_v10 = vpop.f32.mrb[61].mxu0  ;;  %v5052_v59 = vpop.eup %3987  ;;  %4007 = vtanh.f32 %v5038_v29  ;;  %v874_v53 = vadd.f32 1.0, %v3986_v15 }
 0x151   :  { %v3990_v5 = vpop.eup %3989  ;;  %4009 = vrcp.f32 %v875_v54  ;;  %v3400_v54 = vmul.f32 -1.442695, %v4740_v51 }
 0x152   :  { %v5059_v61 = vpop.eup %3991  ;;  %4011 = vpow2.f32 %v3395_v39  ;;  %1286 = vrot.lane.b32.xlu0 %v3990_v5, %s4369_s0  ;;  %v5074_v39 = vadd.f32 %v4663_v1, %v4893_v22  ;;  %v3399_v5 = vmul.f32 -1.442695, %v4745_v56  ;;  %v3402_v56 = vmul.f32 -1.442695, %v4751_v60 }
 0x153   :  { %v4928_v48 = vpop.f32.mrb[62].mxu0  ;;  %v3994_v46 = vpop.eup %3993  ;;  %4013 = vtanh.f32 %v5049_v58 }
 0x154   :  { %v4931_v21 = vpop.f32.mrb[63].mxu0  ;;  %v3996_v29 = vpop.eup %3995  ;;  %4015 = vpow2.f32 %v3398_v2  ;;  %7199 = vst [vmem:[#allocation20_spill] sm:$0xff] %v5074_v39  ;;  %v877_v2 = vadd.f32 1.0, %v3994_v46 }
 0x155   :  { %v5070_v50 = vpop.eup %3997  ;;  %4017 = vpow2.f32 %v3397_v42  ;;  %1292 = vrot.lane.b32.xlu1 %v3996_v29, %s4369_s0  ;;  %v5085_v42 = vadd.f32 %v4901_v38, %v4663_v1 }
 0x156   :  { %v4000_v20 = vpop.eup %3999  ;;  %4019 = vtanh.f32 %v5063_v63 }
 0x157   :  { %v4962_v11 = vpop.permute.xlu0 %1188  ;;  %v4002_v58 = vpop.eup %4001  ;;  %4021 = vrcp.f32 %v874_v53  ;;  %7200 = vst [vmem:[#allocation21_spill] sm:$0xff] %v5085_v42  ;;  %v876_v40 = vadd.f32 1.0, %v4000_v20  ;;  %v5096_v53 = vadd.f32 %v4663_v1, %v4908_v28  ;;  %v3401_v20 = vmul.f32 -1.442695, %v4755_v0 }
 0x158   :  { %v5081_v51 = vpop.eup %4003  ;;  %4023 = vpow2.f32 %v3400_v54  ;;  %1290 = vrot.lane.b32.xlu0 %v4002_v58, %s4369_s0  ;;  %v5116_v0 = vadd.f32 %v4663_v1, %v4919_v10 }
 0x159   :  { %v4006_v29 = vpop.eup %4005  ;;  %4025 = vtanh.f32 %v5074_v39  ;;  %7201 = vst [vmem:[#allocation22_spill] sm:$0xff] %v5096_v53 }
 0x15a   :  { %v4008_v63 = vpop.eup %4007  ;;  %4027 = vpow2.f32 %v3399_v5  ;;  %v879_v58 = vadd.f32 1.0, %v4006_v29  ;;  %7203 = vst [vmem:[#allocation24_spill] sm:$0xff] %v5116_v0 }
 0x15b   :  { %v4953_v9 = vpop.permute.xlu1 %1192  ;;  %v4982_v8 = vpop.permute.xlu0 %1186  ;;  %4029 = vrcp.f32 %v877_v2  ;;  %1296 = vrot.lane.b32.xlu1 %v4008_v63, %s4369_s0  ;;  %v5105_v2 = vadd.f32 %v4916_v33, %v4663_v1 }
 0x15c   :  { %v5092_v46 = vpop.eup %4009  ;;  %4031 = vtanh.f32 %v5085_v42 }
 0x15d   :  { %v4012_v38 = vpop.eup %4011  ;;  %4033 = vpow2.f32 %v3402_v56  ;;  %7202 = vst [vmem:[#allocation23_spill] sm:$0xff] %v5105_v2  ;;  %v3404_v56 = vmul.f32 -1.442695, %v4760_v6  ;;  %v3403_v6 = vmul.f32 -1.442695, %v4766_v12 }
 0x15e   :  { %v4014_v60 = vpop.eup %4013  ;;  %4035 = vrcp.f32 %v876_v40  ;;  %v878_v29 = vadd.f32 1.0, %v4012_v38 }
 0x15f   :  { %v4965_v3 = vpop.permute.xlu1 %1190  ;;  %v4016_v5 = vpop.eup %4015  ;;  %1294 = vrot.lane.b32.xlu0 %v4014_v60, %s4369_s0  ;;  %4037 = vtanh.f32 %v5096_v53 }
 0x160   :  { %v4999_v17 = vpop.permute.xlu0 %1194  ;;  %v4018_v63 = vpop.eup %4017  ;;  %4039 = vrcp.f32 %v879_v58  ;;  %v881_v40 = vadd.f32 1.0, %v4016_v5 }
 0x161   :  { %v4020_v42 = vpop.eup %4019  ;;  %4041 = vpow2.f32 %v3401_v20  ;;  %v880_v58 = vadd.f32 1.0, %v4018_v63 }
 0x162   :  { %v5112_v39 = vpop.eup %4021  ;;  %1300 = vrot.lane.b32.xlu1 %v4020_v42, %s4369_s0  ;;  %4043 = vtanh.f32 %v5105_v2  ;;  %v5131_v42 = vadd.f32 %v4928_v48, %v4663_v1  ;;  %v5142_v48 = vadd.f32 %v4663_v1, %v4931_v21  ;;  %v5155_v1 = vmul.f32 %v5012_v45, %v4962_v11 }
 0x163   :  { %v4975_v7 = vpop.permute.xlu1 %1196  ;;  %v4024_v33 = vpop.eup %4023  ;;  %4045 = vrcp.f32 %v878_v29 }
 0x164   :  { %v5019_v30 = vpop.permute.xlu0 %1198  ;;  %v4026_v60 = vpop.eup %4025  ;;  %4047 = vpow2.f32 %v3404_v56  ;;  %v883_v29 = vadd.f32 1.0, %v4024_v33  ;;  %7204 = vst [vmem:[#allocation25_spill] sm:$0xff] %v5142_v48  ;;  %7206 = vst [vmem:[#allocation27_spill] sm:$0xff] %v5155_v1 }
 0x165   :  { %v4028_v53 = vpop.eup %4027  ;;  %1298 = vrot.lane.b32.xlu0 %v4026_v60, %s4369_s0  ;;  %4049 = vtanh.f32 %v5116_v0  ;;  %v3406_v60 = vmul.f32 -1.442695, %v4771_v19  ;;  %v5151_v19 = vmul.f32 %v5023_v34, %v4982_v8  ;;  %v3405_v8 = vmul.f32 -1.442695, %v4775_v24 }
 0x166   :  { %v5126_v10 = vpop.eup %4029  ;;  %4051 = vrcp.f32 %v881_v40  ;;  %v882_v56 = vadd.f32 1.0, %v4028_v53  ;;  %v5180_v24 = vmul.f32 %v5034_v37, %v4953_v9 }
 0x167   :  { %v4992_v55 = vpop.permute.xlu1 %1200  ;;  %v4032_v5 = vpop.eup %4031  ;;  %4053 = vrcp.f32 %v880_v58  ;;  %7205 = vst [vmem:[#allocation26_spill] sm:$0xff] %v5151_v19 }
 0x168   :  { %v5041_v49 = vpop.permute.xlu0 %1202  ;;  %v4034_v63 = vpop.eup %4033  ;;  %1304 = vrot.lane.b32.xlu1 %v4032_v5, %s4369_s0  ;;  %4055 = vpow2.f32 %v3403_v6  ;;  %7208 = vst [vmem:[#allocation29_spill] sm:$0xff] %v5180_v24 }
 0x169   :  { %v5134_v12 = vpop.eup %4035  ;;  %4057 = vtanh.f32 %v5131_v42  ;;  %v885_v53 = vadd.f32 1.0, %v4034_v63 }
 0x16a   :  { %v4038_v0 = vpop.eup %4037  ;;  %4059 = vrcp.f32 %v883_v29 }
 0x16b   :  { %v5009_v18 = vpop.permute.xlu1 %1204  ;;  %v5144_v33 = vpop.eup %4039  ;;  %1302 = vrot.lane.b32.xlu0 %v4038_v0, %s4369_s0  ;;  %4061 = vrcp.f32 %v882_v56  ;;  %v5162_v0 = vmul.f32 %v5043_v13, %v4965_v3 }
 0x16c   :  { %v5066_v26 = vpop.permute.xlu0 %1206  ;;  %v4042_v58 = vpop.eup %4041  ;;  %4063 = vpow2.f32 %v3406_v60  ;;  %v3408_v60 = vmul.f32 -1.442695, %v4780_v27  ;;  %v5185_v27 = vmul.f32 %v5059_v61, %v4999_v17 }
 0x16d   :  { %v4044_v6 = vpop.eup %4043  ;;  %4065 = vtanh.f32 %v5142_v48  ;;  %7207 = vst [vmem:[#allocation28_spill] sm:$0xff] %v5162_v0  ;;  %v884_v56 = vadd.f32 1.0, %v4042_v58 }
 0x16e   :  { %v5157_v21 = vpop.eup %4045  ;;  %1308 = vrot.lane.b32.xlu1 %v4044_v6, %s4369_s0  ;;  %4067 = vrcp.f32 %v885_v53  ;;  %7209 = vst [vmem:[#allocation30_spill] sm:$0xff] %v5185_v27 }
 0x16f   :  { %v5031_v25 = vpop.permute.xlu1 %1208  ;;  %v4048_v5 = vpop.eup %4047  ;;  %4069 = vtanh.f32 %v5151_v19 }
 0x170   :  { %v5088_v22 = vpop.permute.xlu0 %1210  ;;  %v4050_v63 = vpop.eup %4049  ;;  %4071 = vtanh.f32 %v5155_v1  ;;  %v887_v58 = vadd.f32 1.0, %v4048_v5  ;;  %v3407_v1 = vmul.f32 -1.442695, %v4785_v31  ;;  %v5198_v5 = vmul.f32 %v5052_v59, %v4975_v7 }
 0x171   :  { %v5169_v11 = vpop.eup %4051  ;;  %1306 = vrot.lane.b32.xlu0 %v4050_v63, %s4369_s0  ;;  %4073 = vtanh.f32 %v5162_v0  ;;  %v5205_v31 = vmul.f32 %v5081_v51, %v5019_v30  ;;  %v3410_v0 = vmul.f32 -1.442695, %v4790_v36  ;;  %v5222_v36 = vmul.f32 %v5112_v39, %v5041_v49 }
 0x172   :  { %v5176_v6 = vpop.eup %4053  ;;  %4075 = vpow2.f32 %v3405_v8  ;;  %7210 = vst [vmem:[#allocation31_spill] sm:$0xff] %v5198_v5  ;;  %v3412_v49 = vmul.f32 -1.442695, %v4806_v47  ;;  %v5250_v47 = vmul.f32 %v5126_v10, %v5031_v25  ;;  %v3411_v25 = vmul.f32 -1.442695, %v4813_v52 }
 0x173   :  { %v5056_v44 = vpop.permute.xlu1 %1212  ;;  %v4056_v53 = vpop.eup %4055  ;;  %4077 = vrcp.f32 %v884_v56  ;;  %7211 = vst [vmem:[#allocation32_spill] sm:$0xff] %v5205_v31  ;;  %7213 = vst [vmem:[#allocation34_spill] sm:$0xff] %v5222_v36 }
 0x174   :  { %v5108_v28 = vpop.permute.xlu0 %1214  ;;  %v4058_v19 = vpop.eup %4057  ;;  %4079 = vpow2.f32 %v3408_v60  ;;  %v886_v17 = vadd.f32 1.0, %v4056_v53  ;;  %v5214_v53 = vmul.f32 %v5070_v50, %v4992_v55  ;;  %v3409_v55 = vmul.f32 -1.442695, %v4799_v43  ;;  %7216 = vst [vmem:[#allocation37_spill] sm:$0xff] %v5250_v47 }
 0x175   :  { %v5187_v63 = vpop.eup %4059  ;;  %1312 = vrot.lane.b32.xlu1 %v4058_v19, %s4369_s0  ;;  %4081 = vtanh.f32 %v5180_v24  ;;  %v5240_v43 = vmul.f32 %v5134_v12, %v5066_v26  ;;  %v5275_v52 = vmul.f32 %v5176_v6, %v5108_v28 }
 0x176   :  { %v5193_v48 = vpop.eup %4061  ;;  %4083 = vrcp.f32 %v887_v58  ;;  %7212 = vst [vmem:[#allocation33_spill] sm:$0xff] %v5214_v53 }
 0x177   :  { %v5079_v15 = vpop.permute.xlu1 %1216  ;;  %v4064_v8 = vpop.eup %4063  ;;  %4085 = vtanh.f32 %v5185_v27  ;;  %7215 = vst [vmem:[#allocation36_spill] sm:$0xff] %v5240_v43  ;;  %7219 = vst [vmem:[#allocation40_spill] sm:$0xff] %v5275_v52 }
 0x178   :  { %v5124_v20 = vpop.permute.xlu0 %1218  ;;  %v4066_v60 = vpop.eup %4065  ;;  %4087 = vpow2.f32 %v3407_v1  ;;  %v889_v27 = vadd.f32 1.0, %v4064_v8 }
 0x179   :  { %v5207_v19 = vpop.eup %4067  ;;  %1310 = vrot.lane.b32.xlu1 %v4066_v60, %s4369_s0  ;;  %4089 = vtanh.f32 %v5198_v5 }
 0x17a   :  { %v4070_v7 = vpop.eup %4069  ;;  %4091 = vrcp.f32 %v886_v17 }
 0x17b   :  { %v5100_v54 = vpop.permute.xlu1 %1220  ;;  %v4072_v58 = vpop.eup %4071  ;;  %1570 = vrot.lane.b32.xlu0 %v4070_v7, %s4370_s2  ;;  %4093 = vtanh.f32 %v5205_v31  ;;  %v5233_v7 = vmul.f32 %v5092_v46, %v5009_v18 }
 0x17c   :  { %v5147_v40 = vpop.permute.xlu0 %1222  ;;  %v4074_v1 = vpop.eup %4073  ;;  %4095 = vpow2.f32 %v3410_v0 }
 0x17d   :  { %v4076_v60 = vpop.eup %4075  ;;  %1572 = vrot.lane.b32.xlu1 %v4072_v58, %s4370_s2  ;;  %4097 = vtanh.f32 %v5214_v53  ;;  %7214 = vst [vmem:[#allocation35_spill] sm:$0xff] %v5233_v7 }
 0x17e   :  { %v5228_v8 = vpop.eup %4077  ;;  %4099 = vrcp.f32 %v889_v27  ;;  %v888_v53 = vadd.f32 1.0, %v4076_v60 }
 0x17f   :  { %v5120_v38 = vpop.permute.xlu1 %1224  ;;  %v4080_v31 = vpop.eup %4079  ;;  %1574 = vrot.lane.b32.xlu0 %v4074_v1, %s4370_s2  ;;  %4101 = vtanh.f32 %v5222_v36 }
 0x180   :  { %v5174_v3 = vpop.permute.xlu0 %1226  ;;  %v4082_v0 = vpop.eup %4081  ;;  %4103 = vpow2.f32 %v3409_v55  ;;  %v891_v36 = vadd.f32 1.0, %v4080_v31  ;;  %v5258_v55 = vmul.f32 %v5157_v21, %v5088_v22 }
 0x181   :  { %v5242_v58 = vpop.eup %4083  ;;  %1576 = vrot.lane.b32.xlu1 %v4082_v0, %s4370_s2  ;;  %4105 = vtanh.f32 %v5233_v7 }
 0x182   :  { %v4086_v27 = vpop.eup %4085  ;;  %4107 = vpow2.f32 %v3412_v49  ;;  %7217 = vst [vmem:[#allocation38_spill] sm:$0xff] %v5258_v55  ;;  %v5267_v49 = vmul.f32 %v5144_v33, %v5056_v44  ;;  %v3414_v44 = vmul.f32 -1.442695, %v4822_v57  ;;  %v5292_v57 = vmul.f32 %v5193_v48, %v5124_v20 }
 0x183   :  { %v5137_v2 = vpop.permute.xlu1 %1228  ;;  %v4088_v1 = vpop.eup %4087  ;;  %1578 = vrot.lane.b32.xlu0 %v4086_v27, %s4370_s2  ;;  %4109 = vtanh.f32 %v5240_v43 }
 0x184   :  { %v5200_v56 = vpop.permute.xlu0 %1230  ;;  %v4090_v60 = vpop.eup %4089  ;;  %4111 = vrcp.f32 %v888_v53  ;;  %7218 = vst [vmem:[#allocation39_spill] sm:$0xff] %v5267_v49  ;;  %v890_v43 = vadd.f32 1.0, %v4088_v1  ;;  %7221 = vst [vmem:[#allocation42_spill] sm:$0xff] %v5292_v57 }
 0x185   :  { %v5260_v0 = vpop.eup %4091  ;;  %1580 = vrot.lane.b32.xlu1 %v4090_v60, %s4370_s2  ;;  %4113 = vtanh.f32 %v5250_v47  ;;  %v5286_v60 = vmul.f32 %v5169_v11, %v5079_v15 }
 0x186   :  { %v4094_v31 = vpop.eup %4093  ;;  %4115 = vrcp.f32 %v891_v36 }
 0x187   :  { %v5166_v29 = vpop.permute.xlu1 %1232  ;;  %v4096_v27 = vpop.eup %4095  ;;  %1582 = vrot.lane.b32.xlu0 %v4094_v31, %s4370_s2  ;;  %4117 = vtanh.f32 %v5258_v55  ;;  %7220 = vst [vmem:[#allocation41_spill] sm:$0xff] %v5286_v60 }
 0x188   :  { %v5226_v17 = vpop.permute.xlu0 %1234  ;;  %v4098_v7 = vpop.eup %4097  ;;  %4119 = vpow2.f32 %v3411_v25  ;;  %v893_v28 = vadd.f32 1.0, %v4096_v27  ;;  %v3413_v25 = vmul.f32 -1.442695, %v4831_v62 }
 0x189   :  { %v5277_v53 = vpop.eup %4099  ;;  %1584 = vrot.lane.b32.xlu1 %v4098_v7, %s4370_s2  ;;  %4121 = vtanh.f32 %v5267_v49 }
 0x18a   :  { %v4102_v1 = vpop.eup %4101  ;;  %4123 = vrcp.f32 %v890_v43  ;;  %v5301_v43 = vmul.f32 %v5187_v63, %v5100_v54 }
 0x18b   :  { %v5191_v9 = vpop.permute.xlu1 %1236  ;;  %v4104_v31 = vpop.eup %4103  ;;  %1586 = vrot.lane.b32.xlu0 %v4102_v1, %s4370_s2  ;;  %4125 = vtanh.f32 %v5275_v52 }
 0x18c   :  { %v5253_v26 = vpop.permute.xlu0 %1238  ;;  %v4106_v55 = vpop.eup %4105  ;;  %4127 = vpow2.f32 %v3414_v44  ;;  %7222 = vst [vmem:[#allocation43_spill] sm:$0xff] %v5301_v43  ;;  %v892_v20 = vadd.f32 1.0, %v4104_v31 }
 0x18d   :  { %v4108_v7 = vpop.eup %4107  ;;  %1588 = vrot.lane.b32.xlu1 %v4106_v55, %s4370_s2  ;;  %4129 = vtanh.f32 %v5286_v60  ;;  %v5311_v55 = vmul.f32 %v5228_v8, %v5147_v40 }
 0x18e   :  { %v4110_v49 = vpop.eup %4109  ;;  %4131 = vrcp.f32 %v893_v28  ;;  %v895_v52 = vadd.f32 1.0, %v4108_v7  ;;  %v3416_v28 = vmul.f32 -1.442695, %v4838_v4  ;;  %v5328_v7 = vmul.f32 %v5260_v0, %v5174_v3 }
 0x18f   :  { %v5217_v30 = vpop.permute.xlu1 %1240  ;;  %v5303_v27 = vpop.eup %4111  ;;  %1590 = vrot.lane.b32.xlu0 %v4110_v49, %s4370_s2  ;;  %4133 = vtanh.f32 %v5292_v57  ;;  %7223 = vst [vmem:[#allocation44_spill] sm:$0xff] %v5311_v55  ;;  %v5319_v49 = vmul.f32 %v5207_v19, %v5120_v38  ;;  %v3415_v38 = vmul.f32 -1.442695, %v4845_v14 }
 0x190   :  { %v5281_v36 = vpop.permute.xlu0 %1242  ;;  %v4114_v62 = vpop.eup %4113  ;;  %4135 = vpow2.f32 %v3413_v25  ;;  %7225 = vst [vmem:[#allocation46_spill] sm:$0xff] %v5328_v7  ;;  %v5345_v14 = vmul.f32 %v5303_v27, %v5200_v56 }
 0x191   :  { %v5313_v1 = vpop.eup %4115  ;;  %1592 = vrot.lane.b32.xlu1 %v4114_v62, %s4370_s2  ;;  %4137 = vtanh.f32 %v5301_v43  ;;  %7224 = vst [vmem:[#allocation45_spill] sm:$0xff] %v5319_v49  ;;  %v5339_v62 = vmul.f32 %v5242_v58, %v5137_v2 }
 0x192   :  { %v4118_v54 = vpop.eup %4117  ;;  %4139 = vrcp.f32 %v892_v20  ;;  %7227 = vst [vmem:[#allocation48_spill] sm:$0xff] %v5345_v14 }
 0x193   :  { %v5245_v18 = vpop.permute.xlu1 %1244  ;;  %v4120_v31 = vpop.eup %4119  ;;  %1594 = vrot.lane.b32.xlu0 %v4118_v54, %s4370_s2  ;;  %4141 = vtanh.f32 %v5311_v55  ;;  %7226 = vst [vmem:[#allocation47_spill] sm:$0xff] %v5339_v62 }
 0x194   :  { %v5306_v44 = vpop.permute.xlu0 %1246  ;;  %v4122_v57 = vpop.eup %4121  ;;  %4143 = vrcp.f32 %v895_v52  ;;  %v894_v55 = vadd.f32 1.0, %v4120_v31 }
 0x195   :  { %v5330_v25 = vpop.eup %4123  ;;  %1596 = vrot.lane.b32.xlu1 %v4122_v57, %s4370_s2  ;;  %4145 = vtanh.f32 %v5319_v49  ;;  %v7228_v57 = vld [vmem:[#allocation2_spill] sm:$0xff] }
 0x196   :  { %v4126_v4 = vpop.eup %4125  ;;  %4147 = vpow2.f32 %v3416_v28  ;;  %v3418_v49 = vmul.f32 -1.442695, %v7228_v57  ;;  %v5356_v28 = vmul.f32 %v5277_v53, %v5166_v29  ;;  %v5370_v29 = vmul.f32 %v5313_v1, %v5191_v9 }
 0x197   :  { %v5270_v22 = vpop.permute.xlu1 %1248  ;;  %v4128_v54 = vpop.eup %4127  ;;  %1598 = vrot.lane.b32.xlu0 %v4126_v4, %s4370_s2  ;;  %4149 = vtanh.f32 %v5328_v7 }
 0x198   :  { %v5334_v20 = vpop.permute.xlu0 %1250  ;;  %v4130_v3 = vpop.eup %4129  ;;  %4151 = vpow2.f32 %v3415_v38  ;;  %7229 = vst [vmem:[#allocation2_spill] sm:$0xff] %v5356_v28  ;;  %v897_v56 = vadd.f32 1.0, %v4128_v54  ;;  %7232 = vst [vmem:[#allocation51_spill] sm:$0xff] %v5370_v29 }
 0x199   :  { %v5347_v52 = vpop.eup %4131  ;;  %1600 = vrot.lane.b32.xlu1 %v4130_v3, %s4370_s2  ;;  %4153 = vtanh.f32 %v5339_v62  ;;  %v5364_v3 = vmul.f32 %v5330_v25, %v5226_v17  ;;  %v7235_v17 = vld [vmem:[#allocation3_spill] sm:$0xff] }
 0x19a   :  { %v4134_v31 = vpop.eup %4133  ;;  %4155 = vrcp.f32 %v894_v55  ;;  %v5376_v54 = vmul.f32 %v5347_v52, %v5217_v30 }
 0x19b   :  { %v5296_v15 = vpop.permute.xlu1 %1252  ;;  %v4136_v4 = vpop.eup %4135  ;;  %1602 = vrot.lane.b32.xlu0 %v4134_v31, %s4370_s2  ;;  %4157 = vtanh.f32 %v5345_v14  ;;  %7230 = vst [vmem:[#allocation49_spill] sm:$0xff] %v5364_v3  ;;  %v3417_v14 = vmul.f32 -1.442695, %v7235_v17  ;;  %v7237_v17 = vld [vmem:[#allocation4_spill] sm:$0xff] }
 0x19c   :  { %v5359_v7 = vpop.permute.xlu0 %1254  ;;  %v4138_v38 = vpop.eup %4137  ;;  %4159 = vpow2.f32 %v3418_v49  ;;  %7233 = vst [vmem:[#allocation52_spill] sm:$0xff] %v5376_v54  ;;  %v896_v62 = vadd.f32 1.0, %v4136_v4  ;;  %v3420_v43 = vmul.f32 -1.442695, %v7237_v17  ;;  %v7240_v17 = vld [vmem:[#allocation5_spill] sm:$0xff] }
 0x19d   :  { %v5366_v57 = vpop.eup %4139  ;;  %1604 = vrot.lane.b32.xlu1 %v4138_v38, %s4370_s2  ;;  %4161 = vtanh.f32 %v5356_v28 }
 0x19e   :  { %7231 = vst [vmem:[#allocation50_spill] sm:$0xff] %v5366_v57  ;;  %v4142_v55 = vpop.eup %4141  ;;  %4163 = vrcp.f32 %v897_v56 }
 0x19f   :  { %v5323_v40 = vpop.permute.xlu1 %1256  ;;  %v5378_v31 = vpop.eup %4143  ;;  %1606 = vrot.lane.b32.xlu0 %v4142_v55, %s4370_s2  ;;  %4165 = vtanh.f32 %v5364_v3 }
 0x1a0   :  { %7234 = vst [vmem:[#allocation53_spill] sm:$0xff] %v5378_v31  ;;  %v4146_v9 = vpop.eup %4145  ;;  %v5387_v38 = vmul.f32 %v5378_v31, %v5245_v18  ;;  %4167 = vtanh.f32 %v5370_v29  ;;  %v5391_v30 = vpop.permute.xlu0 %1258  ;;  %v5398_v18 = vmul.f32 %v5366_v57, %v5253_v26 }
 0x1a1   :  { %v4148_v28 = vpop.eup %4147  ;;  %1608 = vrot.lane.b32.xlu1 %v4146_v9, %s4370_s2  ;;  %4169 = vtanh.f32 %v5376_v54 }
 0x1a2   :  { %7236 = vst [vmem:[#allocation3_spill] sm:$0xff] %v5387_v38  ;;  %v4150_v56 = vpop.eup %4149  ;;  %4171 = vpow2.f32 %v3417_v14  ;;  %7238 = vst [vmem:[#allocation4_spill] sm:$0xff] %v5398_v18  ;;  %v899_v9 = vadd.f32 1.0, %v4148_v28 }
 0x1a3   :  { %v5351_v2 = vpop.permute.xlu1 %1260  ;;  %v4152_v55 = vpop.eup %4151  ;;  %1610 = vrot.lane.b32.xlu0 %v4150_v56, %s4370_s2  ;;  %4173 = vtanh.f32 %v5387_v38  ;;  %v3419_v56 = vmul.f32 -1.442695, %v7240_v17  ;;  %v7243_v17 = vld [vmem:[#allocation6_spill] sm:$0xff] }
 0x1a4   :  { %v4154_v3 = vpop.eup %4153  ;;  %4175 = vrcp.f32 %v896_v62 }
 0x1a5   :  { %v5401_v4 = vpop.eup %4155  ;;  %1612 = vrot.lane.b32.xlu1 %v4154_v3, %s4370_s2  ;;  %4177 = vpow2.f32 %v3420_v43  ;;  %v5408_v60 = vpop.permute.xlu0 %1262  ;;  %v898_v3 = vadd.f32 1.0, %v4152_v55 }
 0x1a6   :  { %7239 = vst [vmem:[#allocation54_spill] sm:$0xff] %v5401_v4  ;;  %v4158_v14 = vpop.eup %4157  ;;  %4179 = vtanh.f32 %v5398_v18  ;;  %v5413_v62 = vmul.f32 %v5401_v4, %v5281_v36 }
 0x1a7   :  { %v5382_v49 = vpop.permute.xlu1 %1264  ;;  %v4160_v29 = vpop.eup %4159  ;;  %1614 = vrot.lane.b32.xlu0 %v4158_v14, %s4370_s2  ;;  %4181 = vrcp.f32 %v899_v9  ;;  %v3422_v14 = vmul.f32 -1.442695, %v7243_v17 }
 0x1a8   :  { %v4162_v26 = vpop.eup %4161  ;;  %7241 = vst [vmem:[#allocation5_spill] sm:$0xff] %v5413_v62  ;;  %4183 = vpow2.f32 %v3419_v56  ;;  %v901_v55 = vadd.f32 1.0, %v4160_v29 }
 0x1a9   :  { %v5415_v28 = vpop.eup %4163  ;;  %1616 = vrot.lane.b32.xlu1 %v4162_v26, %s4370_s2  ;;  %4185 = vtanh.f32 %v5413_v62  ;;  %v5428_v26 = vpop.permute.xlu0 %1266 }
 0x1aa   :  { %7242 = vst [vmem:[#allocation55_spill] sm:$0xff] %v5415_v28  ;;  %v4166_v43 = vpop.eup %4165  ;;  %v5425_v36 = vmul.f32 %v5415_v28, %v5270_v22  ;;  %4187 = vrcp.f32 %v898_v3 }
 0x1ab   :  { %v5404_v54 = vpop.permute.xlu1 %1268  ;;  %v4168_v38 = vpop.eup %4167  ;;  %1618 = vrot.lane.b32.xlu0 %v4166_v43, %s4370_s2  ;;  %4189 = vpow2.f32 %v3422_v14  ;;  %v7246_v43 = vld [vmem:[#allocation7_spill] sm:$0xff]  ;;  %v7249_v14 = vld [vmem:[#allocation8_spill] sm:$0xff] }
 0x1ac   :  { %v4170_v18 = vpop.eup %4169  ;;  %7244 = vst [vmem:[#allocation6_spill] sm:$0xff] %v5425_v36  ;;  %v3421_v5 = vmul.f32 -1.442695, %v7246_v43  ;;  %4191 = vtanh.f32 %v5425_v36  ;;  %v3424_v43 = vmul.f32 -1.442695, %v7249_v14 }
 0x1ad   :  { %v4172_v9 = vpop.eup %4171  ;;  %1620 = vrot.lane.b32.xlu1 %v4168_v38, %s4370_s2  ;;  %4193 = vrcp.f32 %v901_v55 }
 0x1ae   :  { %v4174_v56 = vpop.eup %4173  ;;  %v900_v29 = vadd.f32 1.0, %v4172_v9  ;;  %4195 = vpow2.f32 %v3421_v5  ;;  %v3423_v5 = vmul.f32 -1.442695, %v4913_v41  ;;  %v3426_v41 = vmul.f32 -1.442695, %v4924_v35 }
 0x1af   :  { %v5420_v47 = vpop.permute.xlu1 %1272  ;;  %v5430_v17 = vpop.eup %4175  ;;  %1624 = vrot.lane.b32.xlu0 %v4170_v18, %s4370_s2 }
 0x1b0   :  { %7245 = vst [vmem:[#allocation56_spill] sm:$0xff] %v5430_v17  ;;  %v5436_v62 = vmul.f32 %v5430_v17, %v5306_v44  ;;  %v4178_v22 = vpop.eup %4177  ;;  %v5446_v18 = vpop.permute.xlu0 %1270 }
 0x1b1   :  { %1628 = vrot.lane.b32.xlu1 %v4174_v56, %s4370_s2  ;;  %v4180_v3 = vpop.eup %4179  ;;  %v903_v55 = vadd.f32 1.0, %v4178_v22 }
 0x1b2   :  { %7247 = vst [vmem:[#allocation7_spill] sm:$0xff] %v5436_v62  ;;  %v5442_v24 = vpop.eup %4181  ;;  %4197 = vtanh.f32 %v5436_v62 }
 0x1b3   :  { %v5440_v38 = vpop.permute.xlu1 %1276  ;;  %7248 = vst [vmem:[#allocation57_spill] sm:$0xff] %v5442_v24  ;;  %1622 = vrot.lane.b32.xlu0 %v4180_v3, %s4370_s2  ;;  %v5451_v44 = vmul.f32 %v5442_v24, %v5296_v15  ;;  %v4184_v9 = vpop.eup %4183  ;;  %4199 = vrcp.f32 %v900_v29 }
 0x1b4   :  { %v4186_v56 = vpop.eup %4185  ;;  %4201 = vpow2.f32 %v3424_v43  ;;  %v902_v29 = vadd.f32 1.0, %v4184_v9  ;;  %v5464_v22 = vpop.permute.xlu0 %1274 }
 0x1b5   :  { %7250 = vst [vmem:[#allocation8_spill] sm:$0xff] %v5451_v44  ;;  %v5453_v36 = vpop.eup %4187  ;;  %4203 = vtanh.f32 %v5451_v44 }
 0x1b6   :  { %7251 = vst [vmem:[#allocation58_spill] sm:$0xff] %v5453_v36  ;;  %v5461_v14 = vmul.f32 %v5453_v36, %v5334_v20  ;;  %v4190_v15 = vpop.eup %4189  ;;  %4205 = vrcp.f32 %v903_v55 }
 0x1b7   :  { %1626 = vrot.lane.b32.xlu0 %v4186_v56, %s4370_s2  ;;  %v5457_v3 = vpop.permute.xlu1 %1280  ;;  %v4192_v62 = vpop.eup %4191  ;;  %4207 = vpow2.f32 %v3423_v5  ;;  %v905_v55 = vadd.f32 1.0, %v4190_v15  ;;  %v3425_v5 = vmul.f32 -1.442695, %v4935_v32 }
 0x1b8   :  { %7252 = vst [vmem:[#allocation59_spill] sm:$0xff] %v5461_v14  ;;  %v5466_v24 = vpop.eup %4193  ;;  %4209 = vtanh.f32 %v5461_v14  ;;  %v5481_v35 = vpop.permute.xlu0 %1278 }
 0x1b9   :  { %7253 = vst [vmem:[#allocation60_spill] sm:$0xff] %v5466_v24  ;;  %v5473_v20 = vmul.f32 %v5466_v24, %v5323_v40  ;;  %v4196_v43 = vpop.eup %4195  ;;  %4211 = vrcp.f32 %v902_v29 }
 0x1ba   :  { %4213 = vpow2.f32 %v3426_v41  ;;  %v904_v15 = vadd.f32 1.0, %v4196_v43  ;;  %v7257_v41 = vld [vmem:[#allocation9_spill] sm:$0xff] }
 0x1bb   :  { %1632 = vrot.lane.b32.xlu0 %v4192_v62, %s4370_s2  ;;  %7254 = vst [vmem:[#allocation61_spill] sm:$0xff] %v5473_v20  ;;  %v5475_v9 = vpop.permute.xlu1 %1284  ;;  %4215 = vtanh.f32 %v5473_v20  ;;  %v3428_v24 = vmul.f32 -1.442695, %v7257_v41 }
 0x1bc   :  { %v4198_v56 = vpop.eup %4197  ;;  %4217 = vrcp.f32 %v905_v55 }
 0x1bd   :  { %v5477_v44 = vpop.eup %4199  ;;  %4219 = vpow2.f32 %v3425_v5  ;;  %v7259_v5 = vld [vmem:[#allocation10_spill] sm:$0xff] }
 0x1be   :  { %v5485_v62 = vmul.f32 %v5477_v44, %v5359_v7  ;;  %v4202_v40 = vpop.eup %4201  ;;  %v5499_v43 = vpop.permute.xlu0 %1282  ;;  %v3427_v41 = vmul.f32 -1.442695, %v7259_v5 }
 0x1bf   :  { %1630 = vrot.lane.b32.xlu0 %v4198_v56, %s4370_s2  ;;  %v4204_v29 = vpop.eup %4203  ;;  %v907_v55 = vadd.f32 1.0, %v4202_v40 }
 0x1c0   :  { %7255 = vst [vmem:[#allocation62_spill] sm:$0xff] %v5485_v62  ;;  %v5488_v14 = vpop.eup %4205  ;;  %4221 = vtanh.f32 %v5485_v62 }
 0x1c1   :  { %7256 = vst [vmem:[#allocation63_spill] sm:$0xff] %v5488_v14  ;;  %v5492_v32 = vpop.permute.xlu1 %1288  ;;  %v5497_v7 = vmul.f32 %v5488_v14, %v5351_v2  ;;  %v4208_v56 = vpop.eup %4207  ;;  %4223 = vrcp.f32 %v904_v15 }
 0x1c2   :  { %v4210_v20 = vpop.eup %4209  ;;  %4225 = vpow2.f32 %v3428_v24  ;;  %v906_v15 = vadd.f32 1.0, %v4208_v56  ;;  %v7262_v24 = vld [vmem:[#allocation11_spill] sm:$0xff] }
 0x1c3   :  { %1636 = vrot.lane.b32.xlu0 %v4204_v29, %s4370_s2  ;;  %7258 = vst [vmem:[#allocation9_spill] sm:$0xff] %v5497_v7  ;;  %v5501_v36 = vpop.eup %4211  ;;  %4227 = vtanh.f32 %v5497_v7  ;;  %v3430_v17 = vmul.f32 -1.442695, %v7262_v24 }
 0x1c4   :  { %v5507_v29 = vmul.f32 %v5501_v36, %v5391_v30  ;;  %v4214_v2 = vpop.eup %4213  ;;  %4229 = vrcp.f32 %v907_v55 }
 0x1c5   :  { %v4216_v62 = vpop.eup %4215  ;;  %4231 = vpow2.f32 %v3427_v41  ;;  %v909_v56 = vadd.f32 1.0, %v4214_v2  ;;  %v7264_v41 = vld [vmem:[#allocation12_spill] sm:$0xff] }
 0x1c6   :  { %7260 = vst [vmem:[#allocation10_spill] sm:$0xff] %v5507_v29  ;;  %v5512_v14 = vpop.eup %4217  ;;  %4233 = vtanh.f32 %v5507_v29  ;;  %v3429_v28 = vmul.f32 -1.442695, %v7264_v41 }
 0x1c7   :  { %1634 = vrot.lane.b32.xlu0 %v4210_v20, %s4370_s2  ;;  %v5510_v40 = vpop.permute.xlu1 %1292  ;;  %7261 = vst [vmem:[#allocation64_spill] sm:$0xff] %v5512_v14  ;;  %v5516_v20 = vpop.permute.xlu0 %1286  ;;  %v5521_v30 = vmul.f32 %v5512_v14, %v5382_v49  ;;  %4235 = vrcp.f32 %v906_v15 }
 0x1c8   :  { %v4220_v55 = vpop.eup %4219  ;;  %4237 = vpow2.f32 %v3430_v17  ;;  %v3432_v17 = vmul.f32 -1.442695, %v4979_v16 }
 0x1c9   :  { %7263 = vst [vmem:[#allocation11_spill] sm:$0xff] %v5521_v30  ;;  %4239 = vtanh.f32 %v5521_v30  ;;  %v908_v15 = vadd.f32 1.0, %v4220_v55 }
 0x1ca   :  { %v4222_v5 = vpop.eup %4221  ;;  %4241 = vrcp.f32 %v909_v56 }
 0x1cb   :  { %1640 = vrot.lane.b32.xlu0 %v4216_v62, %s4370_s2  ;;  %v5523_v7 = vpop.eup %4223  ;;  %v5534_v2 = vpop.permute.xlu0 %1290  ;;  %4243 = vpow2.f32 %v3429_v28  ;;  %v7269_v28 = vld [vmem:[#allocation13_spill] sm:$0xff] }
 0x1cc   :  { %v5531_v24 = vmul.f32 %v5523_v7, %v5408_v60  ;;  %v4226_v49 = vpop.eup %4225  ;;  %v3431_v4 = vmul.f32 -1.442695, %v7269_v28 }
 0x1cd   :  { %v5527_v62 = vpop.permute.xlu1 %1296  ;;  %v4228_v29 = vpop.eup %4227  ;;  %v911_v56 = vadd.f32 1.0, %v4226_v49 }
 0x1ce   :  { %7265 = vst [vmem:[#allocation12_spill] sm:$0xff] %v5531_v24  ;;  %v5536_v14 = vpop.eup %4229  ;;  %4245 = vtanh.f32 %v5531_v24 }
 0x1cf   :  { %1638 = vrot.lane.b32.xlu0 %v4222_v5, %s4370_s2  ;;  %7266 = vst [vmem:[#allocation65_spill] sm:$0xff] %v5536_v14  ;;  %v5543_v60 = vmul.f32 %v5536_v14, %v5404_v54  ;;  %v4232_v5 = vpop.eup %4231  ;;  %4247 = vrcp.f32 %v908_v15 }
 0x1d0   :  { %v4234_v41 = vpop.eup %4233  ;;  %4249 = vpow2.f32 %v3432_v17  ;;  %v910_v49 = vadd.f32 1.0, %v4232_v5  ;;  %v3434_v17 = vmul.f32 -1.442695, %v4996_v23  ;;  %v7274_v23 = vld [vmem:[#allocation14_spill] sm:$0xff] }
 0x1d1   :  { %7267 = vst [vmem:[#allocation66_spill] sm:$0xff] %v5543_v60  ;;  %v5547_v30 = vpop.eup %4235  ;;  %v5550_v16 = vpop.permute.xlu0 %1294  ;;  %4251 = vtanh.f32 %v5543_v60 }
 0x1d2   :  { %7268 = vst [vmem:[#allocation67_spill] sm:$0xff] %v5547_v30  ;;  %v4238_v54 = vpop.eup %4237  ;;  %4253 = vrcp.f32 %v911_v56 }
 0x1d3   :  { %1644 = vrot.lane.b32.xlu0 %v4228_v29, %s4370_s2  ;;  %v5555_v29 = vmul.f32 %v5547_v30, %v5428_v26  ;;  %v4240_v15 = vpop.eup %4239  ;;  %4255 = vpow2.f32 %v3431_v4  ;;  %v913_v56 = vadd.f32 1.0, %v4238_v54  ;;  %v3433_v4 = vmul.f32 -1.442695, %v7274_v23 }
 0x1d4   :  { %v5545_v55 = vpop.permute.xlu1 %1300  ;;  %v5558_v24 = vpop.eup %4241 }
 0x1d5   :  { %7270 = vst [vmem:[#allocation13_spill] sm:$0xff] %v5555_v29  ;;  %7271 = vst [vmem:[#allocation68_spill] sm:$0xff] %v5558_v24  ;;  %4257 = vtanh.f32 %v5555_v29  ;;  %v5567_v26 = vmul.f32 %v5558_v24, %v5420_v47 }
 0x1d6   :  { %4259 = vrcp.f32 %v910_v49 }
 0x1d7   :  { %1642 = vrot.lane.b32.xlu0 %v4234_v41, %s4370_s2  ;;  %7272 = vst [vmem:[#allocation69_spill] sm:$0xff] %v5567_v26  ;;  %v4244_v41 = vpop.eup %4243  ;;  %v5569_v5 = vpop.permute.xlu0 %1298  ;;  %4261 = vpow2.f32 %v3434_v17  ;;  %v1826_v17 = vld [vmem:[%s7088_s3] sm:$0xff] }
 0x1d8   :  { %v4246_v60 = vpop.eup %4245  ;;  %4263 = vtanh.f32 %v5567_v26  ;;  %v912_v49 = vadd.f32 1.0, %v4244_v41 }
 0x1d9   :  { %v5571_v14 = vpop.eup %4247  ;;  %4265 = vrcp.f32 %v913_v56 }
 0x1da   :  { %v5562_v28 = vpop.permute.xlu1 %1304  ;;  %7273 = vst [vmem:[#allocation70_spill] sm:$0xff] %v5571_v14  ;;  %v4250_v47 = vpop.eup %4249  ;;  %4267 = vpow2.f32 %v3433_v4  ;;  %v1828_v4 = vld [vmem:[%s7088_s3 + $0x10] sm:$0xff] }
 0x1db   :  { %1648 = vrot.lane.b32.xlu0 %v4240_v15, %s4370_s2  ;;  %v5577_v15 = vmul.f32 %v5571_v14, %v5446_v18  ;;  %v4252_v29 = vpop.eup %4251  ;;  %v7277_v18 = vld [vmem:[#allocation15_spill] sm:$0xff]  ;;  %v915_v31 = vadd.f32 1.0, %v4250_v47 }
 0x1dc   :  { %v5588_v23 = vpop.eup %4253  ;;  %v3436_v24 = vmul.f32 -1.442695, %v7277_v18 }
 0x1dd   :  { %7275 = vst [vmem:[#allocation14_spill] sm:$0xff] %v5577_v15  ;;  %7276 = vst [vmem:[#allocation71_spill] sm:$0xff] %v5588_v23  ;;  %v5591_v26 = vpop.permute.xlu0 %1302  ;;  %4269 = vtanh.f32 %v5577_v15  ;;  %v5597_v56 = vmul.f32 %v5588_v23, %v5440_v38  ;;  %v4256_v14 = vpop.eup %4255 }
 0x1de   :  { %4271 = vrcp.f32 %v912_v49  ;;  %v914_v15 = vadd.f32 1.0, %v4256_v14 }
 0x1df   :  { %1646 = vrot.lane.b32.xlu0 %v4246_v60, %s4370_s2  ;;  %v1827_v60 = vld [vmem:[%s7088_s3 + $0x8] sm:$0xff]  ;;  %7278 = vst [vmem:[#allocation15_spill] sm:$0xff] %v5597_v56  ;;  %v4258_v57 = vpop.eup %4257  ;;  %4273 = vpow2.f32 %v3436_v24 }
 0x1e0   :  { %v5580_v54 = vpop.permute.xlu1 %1308  ;;  %v3847_v41 = vpack.c.bf16 %v1827_v60, %v1826_v17  ;;  %v5605_v17 = vpop.eup %4259  ;;  %v7280_v60 = vld [vmem:[#allocation16_spill] sm:$0xff]  ;;  %4275 = vtanh.f32 %v5597_v56 }
 0x1e1   :  { %7279 = vst [vmem:[#allocation72_spill] sm:$0xff] %v5605_v17  ;;  %v3435_v38 = vmul.f32 -1.442695, %v7280_v60  ;;  %v5613_v18 = vmul.f32 %v5605_v17, %v5464_v22  ;;  %4277 = vrcp.f32 %v915_v31 }
 0x1e2   :  { %3848 = vmatprep.subr.bf16.mxu1 %v3847_v41 }
 0x1e3   :  { %1652 = vrot.lane.b32.xlu0 %v4252_v29, %s4370_s2  ;;  %3850 = vmatpush3.bf16.msra.mxu1 %v3847_v41  ;;  %v1829_v29 = vld [vmem:[%s7088_s3 + $0x18] sm:$0xff]  ;;  %7281 = vst [vmem:[#allocation16_spill] sm:$0xff] %v5613_v18  ;;  %v4262_v41 = vpop.eup %4261  ;;  %v5616_v23 = vpop.permute.xlu0 %1306  ;;  %4279 = vpow2.f32 %v3435_v38  ;;  %v7285_v38 = vld [vmem:[#allocation18_spill] sm:$0xff] }
 0x1e4   :  { %v3851_v47 = vpack.c.bf16 %v1829_v29, %v1828_v4  ;;  %v4264_v24 = vpop.eup %4263  ;;  %4281 = vtanh.f32 %v5613_v18  ;;  %v917_v22 = vadd.f32 1.0, %v4262_v41 }
 0x1e5   :  { %v5618_v60 = vpop.eup %4265  ;;  %4283 = vrcp.f32 %v914_v15 }
 0x1e6   :  { %3852 = vmatprep.subr.bf16.mxu1 %v3851_v47  ;;  %7282 = vst [vmem:[#allocation73_spill] sm:$0xff] %v5618_v60  ;;  %v5627_v31 = vmul.f32 %v5618_v60, %v5457_v3  ;;  %v4268_v14 = vpop.eup %4267 }
 0x1e7   :  { %1650 = vrot.lane.b32.xlu0 %v4258_v57, %s4370_s2  ;;  %v5609_v49 = vpop.permute.xlu1 %1312  ;;  %3854 = vmatpush3.bf16.msra.mxu1 %v3851_v47  ;;  %v7283_v57 = vld [vmem:[#allocation17_spill] sm:$0xff]  ;;  %v4270_v47 = vpop.eup %4269  ;;  %v916_v41 = vadd.f32 1.0, %v4268_v14 }
 0x1e8   :  { %v3438_v30 = vmul.f32 -1.442695, %v7283_v57  ;;  %7284 = vst [vmem:[#allocation17_spill] sm:$0xff] %v5627_v31  ;;  %v5629_v56 = vpop.eup %4271  ;;  %v3437_v57 = vmul.f32 -1.442695, %v7285_v38 }
 0x1e9   :  { %v5635_v18 = vmul.f32 %v5629_v56, %v5481_v35  ;;  %v4274_v15 = vpop.eup %4273 }
 0x1ea   :  { %4285 = vpow2.f32 %v3438_v30  ;;  %v4276_v17 = vpop.eup %4275 }
 0x1eb   :  { %1656 = vrot.lane.b32.xlu0 %v4264_v24, %s4370_s2  ;;  %v5622_v4 = vpop.permute.xlu1 %1310  ;;  %4287 = vtanh.f32 %v5627_v31  ;;  %v5640_v30 = vpop.eup %4277 }
 0x1ec   :  { %4289 = vrcp.f32 %v917_v22  ;;  %v5647_v35 = vmul.f32 %v5640_v30, %v5475_v9  ;;  %v919_v22 = vadd.f32 1.0, %v4274_v15 }
 0x1ed   :  { %v1571_v29 = vpop.permute.xlu0 %1570  ;;  %4291 = vpow2.f32 %v3437_v57  ;;  %v4280_v14 = vpop.eup %4279 }
 0x1ee   :  { %4293 = vtanh.f32 %v5635_v18  ;;  %7287 = vst [vmem:[#allocation18_spill] sm:$0xff] %v5647_v35  ;;  %v4282_v31 = vpop.eup %4281  ;;  %v918_v15 = vadd.f32 1.0, %v4280_v14 }
 0x1ef   :  { %1654 = vrot.lane.b32.xlu0 %v4270_v47, %s4370_s2  ;;  %v1573_v24 = vpop.permute.xlu1 %1572  ;;  %v7286_v47 = vld [vmem:[#allocation19_spill] sm:$0xff]  ;;  %4295 = vrcp.f32 %v916_v41  ;;  %v5651_v57 = vpop.eup %4283 }
 0x1f0   :  { %v1763_v3 = vmul.f32 %v5012_v45, %v1573_v24  ;;  %v3440_v38 = vmul.f32 -1.442695, %v7286_v47  ;;  %v1762_v45 = vmul.f32 %v5023_v34, %v1571_v29  ;;  %v5657_v9 = vmul.f32 %v5651_v57, %v5499_v43 }
 0x1f1   :  { %v1575_v60 = vpop.permute.xlu0 %1574 }
 0x1f2   :  { %1903 = vrot.lane.b32.xlu1 %v1763_v3, %s4370_s2  ;;  %4297 = vpow2.f32 %v3440_v38  ;;  %v1764_v43 = vmul.f32 %v5043_v13, %v1575_v60 }
 0x1f3   :  { %1660 = vrot.lane.b32.xlu0 %v4276_v17, %s4370_s2  ;;  %v1577_v24 = vpop.permute.xlu1 %1576  ;;  %v7288_v17 = vld [vmem:[#allocation20_spill] sm:$0xff]  ;;  %4299 = vtanh.f32 %v5647_v35 }
 0x1f4   :  { %v3439_v47 = vmul.f32 -1.442695, %v7288_v17  ;;  %v1765_v34 = vmul.f32 %v5034_v37, %v1577_v24  ;;  %v4286_v29 = vpop.eup %4285  ;;  %4301 = vrcp.f32 %v919_v22 }
 0x1f5   :  { %v1579_v3 = vpop.permute.xlu0 %1578  ;;  %v921_v22 = vadd.f32 1.0, %v4286_v29 }
 0x1f6   :  { %1901 = vrot.lane.b32.xlu1 %v1762_v45, %s4370_s2  ;;  %v4288_v45 = vpop.eup %4287  ;;  %4303 = vpow2.f32 %v3439_v47 }
 0x1f7   :  { %1658 = vrot.lane.b32.xlu0 %v4282_v31, %s4370_s2  ;;  %v5664_v38 = vpop.eup %4289  ;;  %v7289_v31 = vld [vmem:[#allocation21_spill] sm:$0xff]  ;;  %4305 = vtanh.f32 %v5657_v9  ;;  %v1581_v24 = vpop.permute.xlu1 %1580 }
 0x1f8   :  { %v3442_v17 = vmul.f32 -1.442695, %v7289_v31  ;;  %v5671_v37 = vmul.f32 %v5664_v38, %v5492_v32  ;;  %v4292_v14 = vpop.eup %4291  ;;  %4307 = vrcp.f32 %v918_v15  ;;  %v1767_v13 = vmul.f32 %v5052_v59, %v1581_v24 }
 0x1f9   :  { %v5661_v41 = vpop.permute.xlu0 %1582  ;;  %v4294_v35 = vpop.eup %4293  ;;  %v920_v29 = vadd.f32 1.0, %v4292_v14 }
 0x1fa   :  { %1907 = vrot.lane.b32.xlu1 %v1765_v34, %s4370_s2  ;;  %7290 = vst [vmem:[#allocation19_spill] sm:$0xff] %v5671_v37  ;;  %v5677_v47 = vpop.eup %4295  ;;  %4309 = vpow2.f32 %v3442_v17 }
 0x1fb   :  { %1664 = vrot.lane.b32.xlu0 %v4288_v45, %s4370_s2  ;;  %v7291_v45 = vld [vmem:[#allocation22_spill] sm:$0xff]  ;;  %v5683_v32 = vmul.f32 %v5677_v47, %v5516_v20  ;;  %4311 = vtanh.f32 %v5671_v37  ;;  %v1766_v20 = vmul.f32 %v5059_v61, %v1579_v3  ;;  %v1585_v24 = vpop.permute.xlu1 %1584 }
 0x1fc   :  { %v3441_v31 = vmul.f32 -1.442695, %v7291_v45  ;;  %v4298_v60 = vpop.eup %4297  ;;  %4313 = vrcp.f32 %v921_v22  ;;  %v1769_v61 = vmul.f32 %v5070_v50, %v1585_v24 }
 0x1fd   :  { %v5674_v34 = vpop.permute.xlu0 %1586  ;;  %v923_v22 = vadd.f32 1.0, %v4298_v60 }
 0x1fe   :  { %1905 = vrot.lane.b32.xlu1 %v1764_v43, %s4370_s2  ;;  %v4300_v43 = vpop.eup %4299  ;;  %4315 = vpow2.f32 %v3441_v31 }
 0x1ff   :  { %1662 = vrot.lane.b32.xlu0 %v4294_v35, %s4370_s2  ;;  %v5690_v17 = vpop.eup %4301  ;;  %v7292_v35 = vld [vmem:[#allocation23_spill] sm:$0xff]  ;;  %4317 = vtanh.f32 %v5683_v32  ;;  %v1589_v24 = vpop.permute.xlu1 %1588 }
 0x200   :  { %v3444_v45 = vmul.f32 -1.442695, %v7292_v35  ;;  %v5697_v59 = vmul.f32 %v5690_v17, %v5510_v40  ;;  %v4304_v14 = vpop.eup %4303  ;;  %4319 = vrcp.f32 %v920_v29 }
 0x201   :  { %v5687_v15 = vpop.permute.xlu0 %1590  ;;  %v4306_v37 = vpop.eup %4305  ;;  %v922_v60 = vadd.f32 1.0, %v4304_v14 }
 0x202   :  { %1911 = vrot.lane.b32.xlu1 %v1767_v13, %s4370_s2  ;;  %v5703_v31 = vpop.eup %4307  ;;  %4321 = vpow2.f32 %v3444_v45 }
 0x203   :  { %1668 = vrot.lane.b32.xlu0 %v4300_v43, %s4370_s2  ;;  %v7293_v43 = vld [vmem:[#allocation24_spill] sm:$0xff]  ;;  %v5709_v40 = vmul.f32 %v5703_v31, %v5534_v2  ;;  %4323 = vtanh.f32 %v5697_v59  ;;  %v1768_v2 = vmul.f32 %v5081_v51, %v5661_v41  ;;  %v1771_v51 = vmul.f32 %v5092_v46, %v1589_v24  ;;  %v1593_v24 = vpop.permute.xlu1 %1592 }
 0x204   :  { %v3443_v35 = vmul.f32 -1.442695, %v7293_v43  ;;  %v4310_v3 = vpop.eup %4309  ;;  %4325 = vrcp.f32 %v923_v22  ;;  %v1770_v46 = vmul.f32 %v5112_v39, %v5674_v34  ;;  %v1773_v39 = vmul.f32 %v5126_v10, %v1593_v24 }
 0x205   :  { %v5700_v13 = vpop.permute.xlu0 %1594  ;;  %v925_v22 = vadd.f32 1.0, %v4310_v3  ;;  %v1772_v10 = vmul.f32 %v5134_v12, %v5687_v15 }
 0x206   :  { %1909 = vrot.lane.b32.xlu1 %v1766_v20, %s4370_s2  ;;  %v4312_v20 = vpop.eup %4311  ;;  %4327 = vpow2.f32 %v3443_v35 }
 0x207   :  { %1666 = vrot.lane.b32.xlu0 %v4306_v37, %s4370_s2  ;;  %v5716_v45 = vpop.eup %4313  ;;  %v3446_v37 = vmul.f32 -1.442695, %v5131_v42  ;;  %4329 = vtanh.f32 %v5709_v40 }
 0x208   :  { %v5723_v50 = vmul.f32 %v5716_v45, %v5527_v62  ;;  %v4316_v14 = vpop.eup %4315  ;;  %4331 = vrcp.f32 %v922_v60 }
 0x209   :  { %v5713_v29 = vpop.permute.xlu0 %1598  ;;  %v4318_v35 = vpop.eup %4317  ;;  %4333 = vpow2.f32 %v3446_v37  ;;  %v924_v3 = vadd.f32 1.0, %v4316_v14 }
 0x20a   :  { %1915 = vrot.lane.b32.xlu1 %v1769_v61, %s4370_s2  ;;  %v5730_v42 = vpop.eup %4319  ;;  %v7294_v61 = vld [vmem:[#allocation25_spill] sm:$0xff]  ;;  %4335 = vtanh.f32 %v5723_v50 }
 0x20b   :  { %1672 = vrot.lane.b32.xlu0 %v4312_v20, %s4370_s2  ;;  %v3445_v20 = vmul.f32 -1.442695, %v7294_v61  ;;  %v5736_v62 = vmul.f32 %v5730_v42, %v5550_v16  ;;  %4337 = vrcp.f32 %v925_v22 }
 0x20c   :  { %v4322_v41 = vpop.eup %4321 }
 0x20d   :  { %v5727_v43 = vpop.permute.xlu0 %1602  ;;  %4339 = vpow2.f32 %v3445_v20  ;;  %v927_v22 = vadd.f32 1.0, %v4322_v41 }
 0x20e   :  { %1913 = vrot.lane.b32.xlu1 %v1768_v2, %s4370_s2  ;;  %v4324_v2 = vpop.eup %4323  ;;  %4341 = vtanh.f32 %v5736_v62 }
 0x20f   :  { %1670 = vrot.lane.b32.xlu0 %v4318_v35, %s4370_s2  ;;  %v5743_v37 = vpop.eup %4325  ;;  %4343 = vrcp.f32 %v924_v3 }
 0x210   :  { %v5749_v16 = vmul.f32 %v5743_v37, %v5545_v55  ;;  %v4328_v14 = vpop.eup %4327 }
 0x211   :  { %v5740_v60 = vpop.permute.xlu0 %1606  ;;  %v4330_v61 = vpop.eup %4329 }
 0x212   :  { %1919 = vrot.lane.b32.xlu1 %v1771_v51, %s4370_s2  ;;  %v5756_v20 = vpop.eup %4331  ;;  %4345 = vtanh.f32 %v5749_v16  ;;  %v926_v51 = vadd.f32 1.0, %v4328_v14 }
 0x213   :  { %1676 = vrot.lane.b32.xlu0 %v4324_v2, %s4370_s2  ;;  %v5761_v55 = vmul.f32 %v5756_v20, %v5569_v5  ;;  %v4334_v34 = vpop.eup %4333  ;;  %4347 = vrcp.f32 %v927_v22  ;;  %v1597_v22 = vpop.permute.xlu1 %1596 }
 0x214   :  { %v4336_v3 = vpop.eup %4335  ;;  %v929_v14 = vadd.f32 1.0, %v4334_v34  ;;  %v1775_v12 = vmul.f32 %v5144_v33, %v1597_v22  ;;  %v1774_v33 = vmul.f32 %v5157_v21, %v5700_v13 }
 0x215   :  { %v5753_v35 = vpop.permute.xlu0 %1610  ;;  %v5768_v2 = vpop.eup %4337  ;;  %4349 = vtanh.f32 %v5761_v55 }
 0x216   :  { %1917 = vrot.lane.b32.xlu1 %v1770_v46, %s4370_s2  ;;  %v5774_v5 = vmul.f32 %v5768_v2, %v5562_v28  ;;  %4351 = vrcp.f32 %v926_v51 }
 0x217   :  { %1674 = vrot.lane.b32.xlu0 %v4330_v61, %s4370_s2  ;;  %v4340_v46 = vpop.eup %4339 }
 0x218   :  { %v4342_v61 = vpop.eup %4341  ;;  %4353 = vtanh.f32 %v5774_v5  ;;  %v928_v15 = vadd.f32 1.0, %v4340_v46 }
 0x219   :  { %v5765_v41 = vpop.permute.xlu0 %1614  ;;  %4355 = vrcp.f32 %v929_v14 }
 0x21a   :  { %1923 = vrot.lane.b32.xlu1 %v1773_v39, %s4370_s2  ;;  %v5781_v39 = vpop.eup %4343 }
 0x21b   :  { %1680 = vrot.lane.b32.xlu0 %v4336_v3, %s4370_s2  ;;  %v5786_v28 = vmul.f32 %v5781_v39, %v5591_v26 }
 0x21c   :  { %v4346_v51 = vpop.eup %4345 }
 0x21d   :  { %v5778_v24 = vpop.permute.xlu0 %1618  ;;  %v5793_v3 = vpop.eup %4347  ;;  %4357 = vtanh.f32 %v5786_v28 }
 0x21e   :  { %1921 = vrot.lane.b32.xlu1 %v1772_v10, %s4370_s2  ;;  %v5799_v26 = vmul.f32 %v5793_v3, %v5580_v54  ;;  %4359 = vrcp.f32 %v928_v15  ;;  %v1601_v10 = vpop.permute.xlu1 %1600 }
 0x21f   :  { %1678 = vrot.lane.b32.xlu0 %v4342_v61, %s4370_s2  ;;  %v4350_v14 = vpop.eup %4349  ;;  %v1777_v54 = vmul.f32 %v5169_v11, %v1601_v10 }
 0x220   :  { %v5806_v22 = vpop.eup %4351  ;;  %4361 = vtanh.f32 %v5799_v26 }
 0x221   :  { %v5790_v34 = vpop.permute.xlu0 %1624  ;;  %v5811_v61 = vmul.f32 %v5806_v22, %v5616_v23  ;;  %v1776_v23 = vmul.f32 %v5176_v6, %v5713_v29  ;;  %v1778_v29 = vmul.f32 %v5193_v48, %v5727_v43  ;;  %v1780_v48 = vmul.f32 %v5228_v8, %v5740_v60 }
 0x222   :  { %1927 = vrot.lane.b32.xlu1 %v1775_v12, %s4370_s2  ;;  %v4354_v13 = vpop.eup %4353 }
 0x223   :  { %1684 = vrot.lane.b32.xlu0 %v4346_v51, %s4370_s2  ;;  %v5818_v12 = vpop.eup %4355  ;;  %4363 = vtanh.f32 %v5811_v61  ;;  %v1605_v51 = vpop.permute.xlu1 %1604 }
 0x224   :  { %v5824_v15 = vmul.f32 %v5818_v12, %v5609_v49  ;;  %v1779_v49 = vmul.f32 %v5187_v63, %v1605_v51 }
 0x225   :  { %v5803_v46 = vpop.permute.xlu0 %1622 }
 0x226   :  { %1925 = vrot.lane.b32.xlu1 %v1774_v33, %s4370_s2  ;;  %4365 = vtanh.f32 %v5824_v15 }
 0x227   :  { %1682 = vrot.lane.b32.xlu0 %v4350_v14, %s4370_s2  ;;  %v4358_v33 = vpop.eup %4357 }
 0x228   :  { %v5831_v10 = vpop.eup %4359 }
 0x229   :  { %v5815_v21 = vpop.permute.xlu0 %1626  ;;  %v5837_v14 = vmul.f32 %v5831_v10, %v5622_v4 }
 0x22a   :  { %1931 = vrot.lane.b32.xlu1 %v1777_v54, %s4370_s2  ;;  %v4362_v6 = vpop.eup %4361 }
 0x22b   :  { %1688 = vrot.lane.b32.xlu0 %v4354_v13, %s4370_s2  ;;  %4367 = vtanh.f32 %v5837_v14  ;;  %v1609_v13 = vpop.permute.xlu1 %1608 }
 0x22c   :  { %v1781_v63 = vmul.f32 %v5207_v19, %v1609_v13 }
 0x22d   :  { %v5828_v11 = vpop.permute.xlu0 %1632 }
 0x22e   :  { %1929 = vrot.lane.b32.xlu1 %v1776_v23, %s4370_s2 }
 0x22f   :  { %1686 = vrot.lane.b32.xlu0 %v4358_v33, %s4370_s2  ;;  %v4364_v33 = vpop.eup %4363  ;;  %v1613_v43 = vpop.permute.xlu1 %1612 }
 0x230   :  { %v4366_v51 = vpop.eup %4365  ;;  %v1783_v19 = vmul.f32 %v5242_v58, %v1613_v43 }
 0x231   :  { %v5840_v54 = vpop.permute.xlu0 %1630 }
 0x232   :  { %1935 = vrot.lane.b32.xlu1 %v1779_v49, %s4370_s2 }
 0x233   :  { %1692 = vrot.lane.b32.xlu0 %v4362_v6, %s4370_s2  ;;  %v1617_v8 = vpop.permute.xlu1 %1616 }
 0x235   :  { %v5847_v23 = vpop.permute.xlu0 %1636  ;;  %v4368_v6 = vpop.eup %4367 }
 0x236   :  { %1933 = vrot.lane.b32.xlu1 %v1778_v29, %s4370_s2 }
 0x237   :  { %1690 = vrot.lane.b32.xlu0 %v4364_v33, %s4370_s2  ;;  %v1782_v33 = vmul.f32 %v5260_v0, %v5753_v35  ;;  %v1621_v0 = vpop.permute.xlu1 %1620 }
 0x239   :  { %v5852_v4 = vpop.permute.xlu0 %1634 }
 0x23a   :  { %1939 = vrot.lane.b32.xlu1 %v1781_v63, %s4370_s2  ;;  %v1785_v63 = vmul.f32 %v5277_v53, %v1617_v8 }
 0x23b   :  { %1696 = vrot.lane.b32.xlu0 %v4366_v51, %s4370_s2 }
 0x23d   :  { %v5858_v49 = vpop.permute.xlu0 %1640 }
 0x23e   :  { %1937 = vrot.lane.b32.xlu1 %v1780_v48, %s4370_s2  ;;  %v1787_v48 = vmul.f32 %v5313_v1, %v1621_v0 }
 0x23f   :  { %1694 = vrot.lane.b32.xlu0 %v4368_v6, %s4370_s2 }
 0x241   :  { %v1639_v29 = vpop.permute.xlu0 %1638 }
 0x242   :  { %v1796_v13 = vmul.f32 %v5477_v44, %v1639_v29  ;;  %1943 = vrot.lane.b32.xlu1 %v1783_v19, %s4370_s2  ;;  %v1784_v44 = vmul.f32 %v5303_v27, %v5765_v41  ;;  %v1789_v41 = vmul.f32 %v5347_v52, %v5790_v34  ;;  %v7295_v19 = vld [vmem:[#allocation67_spill] sm:$0xff]  ;;  %v7299_v34 = vld [vmem:[#allocation54_spill] sm:$0xff] }
 0x244   :  { %1969 = vrot.lane.b32.xlu0 %v1796_v13, %s4370_s2  ;;  %v7297_v13 = vld [vmem:[#allocation53_spill] sm:$0xff] }
 0x245   :  { %v5868_v60 = vpop.permute.xlu0 %1644 }
 0x246   :  { %1941 = vrot.lane.b32.xlu1 %v1782_v33, %s4370_s2 }
 0x249   :  { %v1643_v51 = vpop.permute.xlu0 %1642 }
 0x24a   :  { %v1798_v58 = vmul.f32 %v5501_v36, %v1643_v51  ;;  %1947 = vrot.lane.b32.xlu1 %v1785_v63, %s4370_s2  ;;  %v1786_v36 = vmul.f32 %v5330_v25, %v5778_v24  ;;  %v1629_v25 = vpop.permute.xlu1 %1628  ;;  %v7298_v63 = vld [vmem:[#allocation70_spill] sm:$0xff]  ;;  %v1790_v51 = vmul.f32 %v7299_v34, %v5815_v21  ;;  %v7301_v21 = vld [vmem:[#allocation72_spill] sm:$0xff]  ;;  %v7306_v34 = vld [vmem:[#allocation63_spill] sm:$0xff] }
 0x24b   :  { %v1791_v33 = vmul.f32 %v7297_v13, %v1629_v25  ;;  %v7304_v25 = vld [vmem:[#allocation57_spill] sm:$0xff] }
 0x24c   :  { %1973 = vrot.lane.b32.xlu0 %v1798_v58, %s4370_s2  ;;  %v1795_v13 = vmul.f32 %v7304_v25, %v5847_v23 }
 0x24d   :  { %v5877_v35 = vpop.permute.xlu0 %1648 }
 0x24e   :  { %1945 = vrot.lane.b32.xlu1 %v1784_v44, %s4370_s2  ;;  %v7300_v44 = vld [vmem:[#allocation55_spill] sm:$0xff] }
 0x24f   :  { %v1793_v0 = vmul.f32 %v7300_v44, %v5828_v11 }
 0x251   :  { %v1647_v43 = vpop.permute.xlu0 %1646 }
 0x252   :  { %v1800_v53 = vmul.f32 %v5523_v7, %v1647_v43  ;;  %1951 = vrot.lane.b32.xlu1 %v1787_v48, %s4370_s2  ;;  %v7296_v7 = vld [vmem:[#allocation50_spill] sm:$0xff] }
 0x253   :  { %v1788_v29 = vmul.f32 %v7296_v7, %v5803_v46 }
 0x254   :  { %1977 = vrot.lane.b32.xlu0 %v1800_v53, %s4370_s2 }
 0x255   :  { %v5886_v27 = vpop.permute.xlu0 %1652 }
 0x256   :  { %1949 = vrot.lane.b32.xlu1 %v1786_v36, %s4370_s2  ;;  %v7302_v36 = vld [vmem:[#allocation56_spill] sm:$0xff] }
 0x259   :  { %v1651_v6 = vpop.permute.xlu0 %1650 }
 0x25a   :  { %v1802_v1 = vmul.f32 %v7295_v19, %v1651_v6  ;;  %1955 = vrot.lane.b32.xlu1 %v1789_v41, %s4370_s2  ;;  %v1792_v41 = vmul.f32 %v7302_v36, %v5840_v54  ;;  %v7303_v19 = vld [vmem:[#allocation58_spill] sm:$0xff] }
 0x25c   :  { %1981 = vrot.lane.b32.xlu0 %v1802_v1, %s4370_s2  ;;  %v1794_v1 = vmul.f32 %v7303_v19, %v5852_v4  ;;  %v7310_v19 = vld [vmem:[#allocation71_spill] sm:$0xff] }
 0x25d   :  { %v5896_v24 = vpop.permute.xlu0 %1656 }
 0x25e   :  { %1953 = vrot.lane.b32.xlu1 %v1788_v29, %s4370_s2 }
 0x261   :  { %v1655_v8 = vpop.permute.xlu0 %1654 }
 0x262   :  { %v1804_v52 = vmul.f32 %v7298_v63, %v1655_v8  ;;  %1959 = vrot.lane.b32.xlu1 %v1791_v33, %s4370_s2 }
 0x264   :  { %1985 = vrot.lane.b32.xlu0 %v1804_v52, %s4370_s2  ;;  %v1904_v46 = vpop.permute.xlu1 %1903 }
 0x265   :  { %v5905_v58 = vpop.permute.xlu0 %1660  ;;  %2608 = vst.msk [vmem:[%s7089_s5 + $0x8] sm:$0xff] %vm2029_vm2, %v1904_v46 }
 0x266   :  { %1957 = vrot.lane.b32.xlu1 %v1790_v51, %s4370_s2  ;;  %v1799_v51 = vmul.f32 %v7306_v34, %v5868_v60 }
 0x268   :  { %v1902_v48 = vpop.permute.xlu1 %1901 }
 0x269   :  { %v1659_v43 = vpop.permute.xlu0 %1658  ;;  %2607 = vst.msk [vmem:[%s7089_s5] sm:$0xff] %vm2029_vm2, %v1902_v48  ;;  %3751 = vmatprep.mubr.msk.f32.mxu1 %vm2029_vm2, %v1902_v48 }
 0x26a   :  { %v1806_v53 = vmul.f32 %v7301_v21, %v1659_v43  ;;  %3752 = vmatmul.mubr.msk.f32.vlgmr.msra.gmra.mrb[0].mxu1 %vm2029_vm2, %v1904_v46  ;;  %1963 = vrot.lane.b32.xlu1 %v1793_v0, %s4370_s2  ;;  %v7308_v43 = vld [vmem:[#allocation65_spill] sm:$0xff] }
 0x26b   :  { %v1803_v21 = vmul.f32 %v7308_v43, %v5886_v27  ;;  %v7312_v43 = vld [vmem:[#allocation27_spill] sm:$0xff] }
 0x26c   :  { %1989 = vrot.lane.b32.xlu0 %v1806_v53, %s4370_s2  ;;  %v1908_v11 = vpop.permute.xlu1 %1907 }
 0x26d   :  { %v1665_v6 = vpop.permute.xlu0 %1664  ;;  %2610 = vst.msk [vmem:[%s7089_s5 + $0x18] sm:$0xff] %vm2029_vm2, %v1908_v11 }
 0x26e   :  { %1961 = vrot.lane.b32.xlu1 %v1792_v41, %s4370_s2 }
 0x270   :  { %v1906_v7 = vpop.permute.xlu1 %1905 }
 0x271   :  { %v1663_v29 = vpop.permute.xlu0 %1662  ;;  %2609 = vst.msk [vmem:[%s7089_s5 + $0x10] sm:$0xff] %vm2029_vm2, %v1906_v7  ;;  %3754 = vmatprep.mubr.msk.f32.mxu1 %vm2029_vm2, %v1906_v7 }
 0x272   :  { %v1808_v54 = vmul.f32 %v5629_v56, %v1663_v29  ;;  %3755 = vmatmul.mubr.msk.f32.gmra.mrb[2].mxu1 %vm2029_vm2, %v1908_v11  ;;  %1965 = vrot.lane.b32.xlu1 %v1794_v1, %s4370_s2  ;;  %v7305_v56 = vld [vmem:[#allocation60_spill] sm:$0xff]  ;;  %v1807_v1 = vmul.f32 %v7310_v19, %v5905_v58  ;;  %v7311_v29 = vld [vmem:[#allocation73_spill] sm:$0xff] }
 0x273   :  { %v1797_v8 = vmul.f32 %v7305_v56, %v5858_v49  ;;  %v7318_v19 = vld [vmem:[#allocation33_spill] sm:$0xff] }
 0x274   :  { %1993 = vrot.lane.b32.xlu0 %v1808_v54, %s4370_s2  ;;  %v1912_v4 = vpop.permute.xlu1 %1911 }
 0x275   :  { %v1669_v33 = vpop.permute.xlu0 %1668  ;;  %2612 = vst.msk [vmem:[%s7089_s5 + $0x28] sm:$0xff] %vm2029_vm2, %v1912_v4 }
 0x276   :  { %1967 = vrot.lane.b32.xlu1 %v1795_v13, %s4370_s2  ;;  %v1811_v13 = vmul.f32 %v5640_v30, %v1669_v33 }
 0x278   :  { %v1910_v63 = vpop.permute.xlu1 %1909 }
 0x279   :  { %v1667_v52 = vpop.permute.xlu0 %1666  ;;  %2611 = vst.msk [vmem:[%s7089_s5 + $0x20] sm:$0xff] %vm2029_vm2, %v1910_v63  ;;  %3757 = vmatprep.mubr.msk.f32.mxu1 %vm2029_vm2, %v1910_v63 }
 0x27a   :  { %v1810_v23 = vmul.f32 %v5651_v57, %v1667_v52  ;;  %3758 = vmatmul.mubr.msk.f32.gmra.mrb[4].mxu1 %vm2029_vm2, %v1912_v4  ;;  %1971 = vrot.lane.b32.xlu1 %v1797_v8, %s4370_s2  ;;  %v7307_v57 = vld [vmem:[#allocation64_spill] sm:$0xff] }
 0x27b   :  { %v1801_v44 = vmul.f32 %v7307_v57, %v5877_v35 }
 0x27c   :  { %1997 = vrot.lane.b32.xlu0 %v1810_v23, %s4370_s2  ;;  %v1916_v49 = vpop.permute.xlu1 %1915 }
 0x27d   :  { %v1673_v46 = vpop.permute.xlu0 %1672  ;;  %2614 = vst.msk [vmem:[%s7089_s5 + $0x38] sm:$0xff] %vm2029_vm2, %v1916_v49 }
 0x27e   :  { %1975 = vrot.lane.b32.xlu1 %v1799_v51, %s4370_s2  ;;  %v1813_v56 = vmul.f32 %v5664_v38, %v1673_v46 }
 0x280   :  { %v1914_v0 = vpop.permute.xlu1 %1913 }
 0x281   :  { %v1671_v48 = vpop.permute.xlu0 %1670  ;;  %2613 = vst.msk [vmem:[%s7089_s5 + $0x30] sm:$0xff] %vm2029_vm2, %v1914_v0  ;;  %3760 = vmatprep.mubr.msk.f32.mxu1 %vm2029_vm2, %v1914_v0 }
 0x282   :  { %v1812_v60 = vmul.f32 %v5677_v47, %v1671_v48  ;;  %3761 = vmatmul.mubr.msk.f32.gmra.mrb[6].mxu1 %vm2029_vm2, %v1916_v49  ;;  %1979 = vrot.lane.b32.xlu1 %v1801_v44, %s4370_s2  ;;  %v7309_v47 = vld [vmem:[#allocation68_spill] sm:$0xff] }
 0x283   :  { %v1805_v36 = vmul.f32 %v7309_v47, %v5896_v24 }
 0x284   :  { %2001 = vrot.lane.b32.xlu0 %v1812_v60, %s4370_s2  ;;  %v1920_v35 = vpop.permute.xlu1 %1919 }
 0x285   :  { %v1677_v53 = vpop.permute.xlu0 %1676  ;;  %2616 = vst.msk [vmem:[%s7089_s5 + $0x48] sm:$0xff] %vm2029_vm2, %v1920_v35 }
 0x286   :  { %1983 = vrot.lane.b32.xlu1 %v1803_v21, %s4370_s2  ;;  %v1815_v33 = vmul.f32 %v5690_v17, %v1677_v53  ;;  %v7315_v53 = vld [vmem:[#allocation28_spill] sm:$0xff] }
 0x288   :  { %v1918_v41 = vpop.permute.xlu1 %1917 }
 0x289   :  { %v1675_v11 = vpop.permute.xlu0 %1674  ;;  %2615 = vst.msk [vmem:[%s7089_s5 + $0x40] sm:$0xff] %vm2029_vm2, %v1918_v41  ;;  %3763 = vmatprep.mubr.msk.f32.mxu1 %vm2029_vm2, %v1918_v41  ;;  %v7316_v41 = vld [vmem:[#allocation31_spill] sm:$0xff] }
 0x28a   :  { %v1814_v27 = vmul.f32 %v5703_v31, %v1675_v11  ;;  %3764 = vmatmul.mubr.msk.f32.gmra.mrb[8].mxu1 %vm2029_vm2, %v1920_v35  ;;  %1987 = vrot.lane.b32.xlu1 %v1805_v36, %s4370_s2  ;;  %v1809_v31 = vmul.f32 %v7311_v29, %v1665_v6  ;;  %v7314_v35 = vld [vmem:[#allocation29_spill] sm:$0xff]  ;;  %v7317_v11 = vld [vmem:[#allocation30_spill] sm:$0xff]  ;;  %v7320_v29 = vld [vmem:[#allocation35_spill] sm:$0xff] }
 0x28c   :  { %2005 = vrot.lane.b32.xlu0 %v1814_v27, %s4370_s2  ;;  %v1924_v24 = vpop.permute.xlu1 %1923 }
 0x28d   :  { %v1681_v7 = vpop.permute.xlu0 %1680  ;;  %2618 = vst.msk [vmem:[%s7089_s5 + $0x58] sm:$0xff] %vm2029_vm2, %v1924_v24 }
 0x28e   :  { %1991 = vrot.lane.b32.xlu1 %v1807_v1, %s4370_s2  ;;  %v1817_v52 = vmul.f32 %v5716_v45, %v1681_v7  ;;  %v7319_v1 = vld [vmem:[#allocation32_spill] sm:$0xff] }
 0x290   :  { %v1922_v54 = vpop.permute.xlu1 %1921 }
 0x291   :  { %v1679_v25 = vpop.permute.xlu0 %1678  ;;  %2617 = vst.msk [vmem:[%s7089_s5 + $0x50] sm:$0xff] %vm2029_vm2, %v1922_v54  ;;  %3766 = vmatprep.mubr.msk.f32.mxu1 %vm2029_vm2, %v1922_v54 }
 0x292   :  { %v1816_v58 = vmul.f32 %v5730_v42, %v1679_v25  ;;  %3767 = vmatmul.mubr.msk.f32.gmra.mrb[10].mxu1 %vm2029_vm2, %v1924_v24  ;;  %1995 = vrot.lane.b32.xlu1 %v1809_v31, %s4370_s2  ;;  %v7321_v31 = vld [vmem:[#allocation34_spill] sm:$0xff]  ;;  %v7322_v25 = vld [vmem:[#allocation37_spill] sm:$0xff] }
 0x294   :  { %2009 = vrot.lane.b32.xlu0 %v1816_v58, %s4370_s2  ;;  %v1928_v6 = vpop.permute.xlu1 %1927  ;;  %v7323_v58 = vld [vmem:[#allocation36_spill] sm:$0xff] }
 0x295   :  { %v1685_v4 = vpop.permute.xlu0 %1684  ;;  %2620 = vst.msk [vmem:[%s7089_s5 + $0x68] sm:$0xff] %vm2029_vm2, %v1928_v6 }
 0x296   :  { %1999 = vrot.lane.b32.xlu1 %v1811_v13, %s4370_s2  ;;  %v1819_v34 = vmul.f32 %v5743_v37, %v1685_v4  ;;  %v7324_v4 = vld [vmem:[#allocation39_spill] sm:$0xff] }
 0x298   :  { %v1926_v42 = vpop.permute.xlu1 %1925 }
 0x299   :  { %v1683_v8 = vpop.permute.xlu0 %1682  ;;  %2619 = vst.msk [vmem:[%s7089_s5 + $0x60] sm:$0xff] %vm2029_vm2, %v1926_v42  ;;  %3769 = vmatprep.mubr.msk.f32.mxu1 %vm2029_vm2, %v1926_v42 }
 0x29a   :  { %v1818_v30 = vmul.f32 %v5756_v20, %v1683_v8  ;;  %3770 = vmatmul.mubr.msk.f32.gmra.mrb[12].mxu1 %vm2029_vm2, %v1928_v6  ;;  %2003 = vrot.lane.b32.xlu1 %v1813_v56, %s4370_s2  ;;  %v7325_v56 = vld [vmem:[#allocation38_spill] sm:$0xff]  ;;  %v7326_v8 = vld [vmem:[#allocation41_spill] sm:$0xff] }
 0x29c   :  { %2013 = vrot.lane.b32.xlu0 %v1818_v30, %s4370_s2  ;;  %v1932_v38 = vpop.permute.xlu1 %1931  ;;  %v7327_v30 = vld [vmem:[#allocation40_spill] sm:$0xff] }
 0x29d   :  { %v1689_v63 = vpop.permute.xlu0 %1688  ;;  %2622 = vst.msk [vmem:[%s7089_s5 + $0x78] sm:$0xff] %vm2029_vm2, %v1932_v38 }
 0x29e   :  { %2007 = vrot.lane.b32.xlu1 %v1815_v33, %s4370_s2  ;;  %v1821_v49 = vmul.f32 %v5768_v2, %v1689_v63  ;;  %v7328_v63 = vld [vmem:[#allocation43_spill] sm:$0xff] }
 0x2a0   :  { %v1930_v20 = vpop.permute.xlu1 %1929 }
 0x2a1   :  { %v1687_v23 = vpop.permute.xlu0 %1686  ;;  %2621 = vst.msk [vmem:[%s7089_s5 + $0x70] sm:$0xff] %vm2029_vm2, %v1930_v20  ;;  %3772 = vmatprep.mubr.msk.f32.mxu1 %vm2029_vm2, %v1930_v20 }
 0x2a2   :  { %v1820_v17 = vmul.f32 %v5781_v39, %v1687_v23  ;;  %3773 = vmatmul.mubr.msk.f32.gmra.mrb[14].mxu1 %vm2029_vm2, %v1932_v38  ;;  %2011 = vrot.lane.b32.xlu1 %v1817_v52, %s4370_s2  ;;  %v7329_v52 = vld [vmem:[#allocation42_spill] sm:$0xff]  ;;  %v7330_v23 = vld [vmem:[#allocation45_spill] sm:$0xff] }
 0x2a4   :  { %2017 = vrot.lane.b32.xlu0 %v1820_v17, %s4370_s2  ;;  %v1936_v45 = vpop.permute.xlu1 %1935  ;;  %v7331_v17 = vld [vmem:[#allocation44_spill] sm:$0xff] }
 0x2a5   :  { %v1693_v51 = vpop.permute.xlu0 %1692  ;;  %2624 = vst.msk [vmem:[%s7089_s5 + $0x88] sm:$0xff] %vm2029_vm2, %v1936_v45 }
 0x2a6   :  { %2015 = vrot.lane.b32.xlu1 %v1819_v34, %s4370_s2  ;;  %v1823_v57 = vmul.f32 %v5793_v3, %v1693_v51  ;;  %v7332_v51 = vld [vmem:[#allocation47_spill] sm:$0xff] }
 0x2a8   :  { %v1934_v39 = vpop.permute.xlu1 %1933 }
 0x2a9   :  { %v1691_v46 = vpop.permute.xlu0 %1690  ;;  %2623 = vst.msk [vmem:[%s7089_s5 + $0x80] sm:$0xff] %vm2029_vm2, %v1934_v39  ;;  %3775 = vmatprep.mubr.msk.f32.mxu1 %vm2029_vm2, %v1934_v39 }
 0x2aa   :  { %v1822_v37 = vmul.f32 %v5806_v22, %v1691_v46  ;;  %3776 = vmatmul.mubr.msk.f32.gmra.mrb[16].mxu1 %vm2029_vm2, %v1936_v45  ;;  %2019 = vrot.lane.b32.xlu1 %v1821_v49, %s4370_s2  ;;  %v7333_v49 = vld [vmem:[#allocation46_spill] sm:$0xff] }
 0x2ab   :  { %v7334_v46 = vld [vmem:[#allocation2_spill] sm:$0xff] }
 0x2ac   :  { %2021 = vrot.lane.b32.xlu0 %v1822_v37, %s4370_s2  ;;  %v1940_v2 = vpop.permute.xlu1 %1939  ;;  %v7335_v37 = vld [vmem:[#allocation48_spill] sm:$0xff] }
 0x2ad   :  { %v1697_v44 = vpop.permute.xlu0 %1696  ;;  %2626 = vst.msk [vmem:[%s7089_s5 + $0x98] sm:$0xff] %vm2029_vm2, %v1940_v2 }
 0x2ae   :  { %2023 = vrot.lane.b32.xlu1 %v1823_v57, %s4370_s2  ;;  %v1825_v0 = vmul.f32 %v5818_v12, %v1697_v44  ;;  %v7336_v44 = vld [vmem:[#allocation51_spill] sm:$0xff] }
 0x2b0   :  { %v1938_v22 = vpop.permute.xlu1 %1937 }
 0x2b1   :  { %v1695_v48 = vpop.permute.xlu0 %1694  ;;  %2625 = vst.msk [vmem:[%s7089_s5 + $0x90] sm:$0xff] %vm2029_vm2, %v1938_v22  ;;  %3778 = vmatprep.mubr.msk.f32.mxu1 %vm2029_vm2, %v1938_v22 }
 0x2b2   :  { %v1824_v3 = vmul.f32 %v5831_v10, %v1695_v48  ;;  %3779 = vmatmul.mubr.msk.f32.gmra.mrb[18].mxu1 %vm2029_vm2, %v1940_v2  ;;  %2027 = vrot.lane.b32.xlu1 %v1825_v0, %s4370_s2  ;;  %v7313_v10 = vld [vmem:[#allocation26_spill] sm:$0xff]  ;;  %v7337_v0 = vld [vmem:[#allocation49_spill] sm:$0xff]  ;;  %v7338_v48 = vld [vmem:[#allocation52_spill] sm:$0xff] }
 0x2b4   :  { %2025 = vrot.lane.b32.xlu0 %v1824_v3, %s4370_s2  ;;  %v1944_v60 = vpop.permute.xlu1 %1943  ;;  %v7339_v3 = vld [vmem:[#allocation4_spill] sm:$0xff] }
 0x2b5   :  { %2628 = vst.msk [vmem:[%s7089_s5 + $0xa8] sm:$0xff] %vm2029_vm2, %v1944_v60 }
 0x2b6   :  { %v6080_v12 = vpop.permute.xlu0 %1969  ;;  %2737 = vrot.lane.b32.xlu1 %v7312_v43, %s4369_s0 }
 0x2b7   :  { %2641 = vst.msk [vmem:[%s7089_s5 + $0x110] sm:$0xff] %vm2029_vm2, %v6080_v12 }
 0x2b8   :  { %2735 = vrot.lane.b32.xlu0 %v7313_v10, %s4369_s0  ;;  %v1942_v21 = vpop.permute.xlu1 %1941  ;;  %v7340_v10 = vld [vmem:[#allocation3_spill] sm:$0xff] }
 0x2b9   :  { %2627 = vst.msk [vmem:[%s7089_s5 + $0xa0] sm:$0xff] %vm2029_vm2, %v1942_v21  ;;  %3781 = vmatprep.mubr.msk.f32.mxu1 %vm2029_vm2, %v1942_v21 }
 0x2ba   :  { %3782 = vmatmul.mubr.msk.f32.gmra.mrb[20].mxu1 %vm2029_vm2, %v1944_v60  ;;  %2741 = vrot.lane.b32.xlu1 %v7314_v35, %s4369_s0  ;;  %v7342_v35 = vld [vmem:[#allocation6_spill] sm:$0xff] }
 0x2bc   :  { %2739 = vrot.lane.b32.xlu0 %v7315_v53, %s4369_s0  ;;  %v1948_v47 = vpop.permute.xlu1 %1947  ;;  %v7343_v53 = vld [vmem:[#allocation7_spill] sm:$0xff] }
 0x2bd   :  { %2630 = vst.msk [vmem:[%s7089_s5 + $0xb8] sm:$0xff] %vm2029_vm2, %v1948_v47 }
 0x2be   :  { %v6105_v36 = vpop.permute.xlu0 %1973  ;;  %2745 = vrot.lane.b32.xlu1 %v7316_v41, %s4369_s0  ;;  %v7344_v41 = vld [vmem:[#allocation8_spill] sm:$0xff] }
 0x2bf   :  { %2643 = vst.msk [vmem:[%s7089_s5 + $0x120] sm:$0xff] %vm2029_vm2, %v6105_v36 }
 0x2c0   :  { %2743 = vrot.lane.b32.xlu0 %v7317_v11, %s4369_s0  ;;  %v1946_v27 = vpop.permute.xlu1 %1945  ;;  %v7345_v11 = vld [vmem:[#allocation59_spill] sm:$0xff] }
 0x2c1   :  { %2629 = vst.msk [vmem:[%s7089_s5 + $0xb0] sm:$0xff] %vm2029_vm2, %v1946_v27  ;;  %3784 = vmatprep.mubr.msk.f32.mxu1 %vm2029_vm2, %v1946_v27 }
 0x2c2   :  { %3785 = vmatmul.mubr.msk.f32.gmra.mrb[22].mxu1 %vm2029_vm2, %v1948_v47  ;;  %2749 = vrot.lane.b32.xlu1 %v7318_v19, %s4369_s0  ;;  %v7346_v19 = vld [vmem:[#allocation61_spill] sm:$0xff] }
 0x2c4   :  { %2747 = vrot.lane.b32.xlu0 %v7319_v1, %s4369_s0  ;;  %v1952_v24 = vpop.permute.xlu1 %1951  ;;  %v7347_v1 = vld [vmem:[#allocation62_spill] sm:$0xff] }
 0x2c5   :  { %2632 = vst.msk [vmem:[%s7089_s5 + $0xc8] sm:$0xff] %vm2029_vm2, %v1952_v24 }
 0x2c6   :  { %v6130_v7 = vpop.permute.xlu0 %1977  ;;  %2753 = vrot.lane.b32.xlu1 %v7320_v29, %s4369_s0  ;;  %v7348_v29 = vld [vmem:[#allocation9_spill] sm:$0xff] }
 0x2c7   :  { %2645 = vst.msk [vmem:[%s7089_s5 + $0x130] sm:$0xff] %vm2029_vm2, %v6130_v7 }
 0x2c8   :  { %2751 = vrot.lane.b32.xlu0 %v7321_v31, %s4369_s0  ;;  %v1950_v54 = vpop.permute.xlu1 %1949  ;;  %v7349_v31 = vld [vmem:[#allocation10_spill] sm:$0xff] }
 0x2c9   :  { %2631 = vst.msk [vmem:[%s7089_s5 + $0xc0] sm:$0xff] %vm2029_vm2, %v1950_v54  ;;  %3787 = vmatprep.mubr.msk.f32.mxu1 %vm2029_vm2, %v1950_v54 }
 0x2ca   :  { %3788 = vmatmul.mubr.msk.f32.gmra.mrb[24].mxu1 %vm2029_vm2, %v1952_v24  ;;  %2757 = vrot.lane.b32.xlu1 %v7322_v25, %s4369_s0  ;;  %v7350_v25 = vld [vmem:[#allocation11_spill] sm:$0xff] }
 0x2cc   :  { %2755 = vrot.lane.b32.xlu0 %v7323_v58, %s4369_s0  ;;  %v1956_v13 = vpop.permute.xlu1 %1955  ;;  %v7351_v58 = vld [vmem:[#allocation12_spill] sm:$0xff] }
 0x2cd   :  { %2634 = vst.msk [vmem:[%s7089_s5 + $0xd8] sm:$0xff] %vm2029_vm2, %v1956_v13 }
 0x2ce   :  { %v6155_v6 = vpop.permute.xlu0 %1981  ;;  %2761 = vrot.lane.b32.xlu1 %v7324_v4, %s4369_s0  ;;  %v7352_v4 = vld [vmem:[#allocation66_spill] sm:$0xff] }
 0x2cf   :  { %2647 = vst.msk [vmem:[%s7089_s5 + $0x140] sm:$0xff] %vm2029_vm2, %v6155_v6 }
 0x2d0   :  { %2759 = vrot.lane.b32.xlu0 %v7325_v56, %s4369_s0  ;;  %v1954_v42 = vpop.permute.xlu1 %1953  ;;  %v7353_v56 = vld [vmem:[#allocation13_spill] sm:$0xff] }
 0x2d1   :  { %2633 = vst.msk [vmem:[%s7089_s5 + $0xd0] sm:$0xff] %vm2029_vm2, %v1954_v42  ;;  %3790 = vmatprep.mubr.msk.f32.mxu1 %vm2029_vm2, %v1954_v42 }
 0x2d2   :  { %3791 = vmatmul.mubr.msk.f32.gmra.mrb[26].mxu1 %vm2029_vm2, %v1956_v13  ;;  %2765 = vrot.lane.b32.xlu1 %v7326_v8, %s4369_s0  ;;  %v7354_v8 = vld [vmem:[#allocation69_spill] sm:$0xff] }
 0x2d4   :  { %2763 = vrot.lane.b32.xlu0 %v7327_v30, %s4369_s0  ;;  %v1960_v33 = vpop.permute.xlu1 %1959  ;;  %v7355_v30 = vld [vmem:[#allocation14_spill] sm:$0xff] }
 0x2d5   :  { %2636 = vst.msk [vmem:[%s7089_s5 + $0xe8] sm:$0xff] %vm2029_vm2, %v1960_v33 }
 0x2d6   :  { %v1986_v38 = vpop.permute.xlu0 %1985  ;;  %2769 = vrot.lane.b32.xlu1 %v7328_v63, %s4369_s0  ;;  %v7356_v63 = vld [vmem:[#allocation15_spill] sm:$0xff] }
 0x2d7   :  { %2649 = vst.msk [vmem:[%s7089_s5 + $0x150] sm:$0xff] %vm2029_vm2, %v1986_v38 }
 0x2d8   :  { %2767 = vrot.lane.b32.xlu0 %v7329_v52, %s4369_s0  ;;  %v1958_v20 = vpop.permute.xlu1 %1957  ;;  %v7357_v52 = vld [vmem:[#allocation16_spill] sm:$0xff] }
 0x2d9   :  { %2635 = vst.msk [vmem:[%s7089_s5 + $0xe0] sm:$0xff] %vm2029_vm2, %v1958_v20  ;;  %3793 = vmatprep.mubr.msk.f32.mxu1 %vm2029_vm2, %v1958_v20 }
 0x2da   :  { %3794 = vmatmul.mubr.msk.f32.gmra.mrb[28].mxu1 %vm2029_vm2, %v1960_v33  ;;  %2773 = vrot.lane.b32.xlu1 %v7330_v23, %s4369_s0  ;;  %v7358_v23 = vld [vmem:[#allocation17_spill] sm:$0xff] }
 0x2dc   :  { %2771 = vrot.lane.b32.xlu0 %v7331_v17, %s4369_s0  ;;  %v1964_v34 = vpop.permute.xlu1 %1963 }
 0x2dd   :  { %2638 = vst.msk [vmem:[%s7089_s5 + $0xf8] sm:$0xff] %vm2029_vm2, %v1964_v34 }
 0x2de   :  { %v1990_v45 = vpop.permute.xlu0 %1989  ;;  %2777 = vrot.lane.b32.xlu1 %v7332_v51, %s4369_s0  ;;  %v7360_v51 = vld [vmem:[#allocation19_spill] sm:$0xff] }
 0x2df   :  { %2651 = vst.msk [vmem:[%s7089_s5 + $0x160] sm:$0xff] %vm2029_vm2, %v1990_v45 }
 0x2e0   :  { %2775 = vrot.lane.b32.xlu0 %v7333_v49, %s4369_s0  ;;  %v1962_v39 = vpop.permute.xlu1 %1961 }
 0x2e1   :  { %2637 = vst.msk [vmem:[%s7089_s5 + $0xf0] sm:$0xff] %vm2029_vm2, %v1962_v39  ;;  %3796 = vmatprep.mubr.msk.f32.mxu1 %vm2029_vm2, %v1962_v39 }
 0x2e2   :  { %3797 = vmatmul.mubr.msk.f32.gmra.mrb[30].mxu1 %vm2029_vm2, %v1964_v34  ;;  %2781 = vrot.lane.b32.xlu1 %v7334_v46, %s4369_s0 }
 0x2e4   :  { %2779 = vrot.lane.b32.xlu0 %v7335_v37, %s4369_s0  ;;  %v1966_v57 = vpop.permute.xlu1 %1965 }
 0x2e5   :  { %2639 = vst.msk [vmem:[%s7089_s5 + $0x100] sm:$0xff] %vm2029_vm2, %v1966_v57  ;;  %3799 = vmatprep.mubr.msk.f32.mxu1 %vm2029_vm2, %v1966_v57 }
 0x2e6   :  { %v1994_v2 = vpop.permute.xlu0 %1993  ;;  %2785 = vrot.lane.b32.xlu1 %v7336_v44, %s4369_s0 }
 0x2e7   :  { %2653 = vst.msk [vmem:[%s7089_s5 + $0x170] sm:$0xff] %vm2029_vm2, %v1994_v2 }
 0x2e8   :  { %2783 = vrot.lane.b32.xlu0 %v7337_v0, %s4369_s0  ;;  %v1968_v22 = vpop.permute.xlu1 %1967 }
 0x2e9   :  { %2640 = vst.msk [vmem:[%s7089_s5 + $0x108] sm:$0xff] %vm2029_vm2, %v1968_v22  ;;  %3800 = vmatmul.mubr.msk.f32.gmra.mrb[32].mxu1 %vm2029_vm2, %v1968_v22 }
 0x2ea   :  { %2789 = vrot.lane.b32.xlu1 %v7338_v48, %s4369_s0  ;;  %3802 = vmatprep.mubr.msk.f32.mxu1 %vm2029_vm2, %v6080_v12  ;;  %v7341_v12 = vld [vmem:[#allocation5_spill] sm:$0xff] }
 0x2ec   :  { %2787 = vrot.lane.b32.xlu0 %v7339_v3, %s4369_s0  ;;  %v1972_v60 = vpop.permute.xlu1 %1971 }
 0x2ed   :  { %2642 = vst.msk [vmem:[%s7089_s5 + $0x118] sm:$0xff] %vm2029_vm2, %v1972_v60  ;;  %3803 = vmatmul.mubr.msk.f32.gmra.mrb[34].mxu1 %vm2029_vm2, %v1972_v60 }
 0x2ee   :  { %v1998_v43 = vpop.permute.xlu0 %1997  ;;  %2793 = vrot.lane.b32.xlu1 %v7340_v10, %s4369_s0  ;;  %3805 = vmatprep.mubr.msk.f32.mxu1 %vm2029_vm2, %v6105_v36 }
 0x2ef   :  { %2655 = vst.msk [vmem:[%s7089_s5 + $0x180] sm:$0xff] %vm2029_vm2, %v1998_v43 }
 0x2f0   :  { %2791 = vrot.lane.b32.xlu0 %v7341_v12, %s4369_s0  ;;  %v1976_v21 = vpop.permute.xlu1 %1975 }
 0x2f1   :  { %2644 = vst.msk [vmem:[%s7089_s5 + $0x128] sm:$0xff] %vm2029_vm2, %v1976_v21  ;;  %3806 = vmatmul.mubr.msk.f32.gmra.mrb[36].mxu1 %vm2029_vm2, %v1976_v21 }
 0x2f2   :  { %2797 = vrot.lane.b32.xlu1 %v7342_v35, %s4369_s0  ;;  %3808 = vmatprep.mubr.msk.f32.mxu1 %vm2029_vm2, %v6130_v7 }
 0x2f4   :  { %2795 = vrot.lane.b32.xlu0 %v7343_v53, %s4369_s0  ;;  %v1980_v47 = vpop.permute.xlu1 %1979 }
 0x2f5   :  { %2646 = vst.msk [vmem:[%s7089_s5 + $0x138] sm:$0xff] %vm2029_vm2, %v1980_v47  ;;  %3809 = vmatmul.mubr.msk.f32.gmra.mrb[38].mxu1 %vm2029_vm2, %v1980_v47 }
 0x2f6   :  { %v2002_v36 = vpop.permute.xlu0 %2001  ;;  %2801 = vrot.lane.b32.xlu1 %v7344_v41, %s4369_s0  ;;  %3811 = vmatprep.mubr.msk.f32.mxu1 %vm2029_vm2, %v6155_v6 }
 0x2f7   :  { %2657 = vst.msk [vmem:[%s7089_s5 + $0x190] sm:$0xff] %vm2029_vm2, %v2002_v36 }
 0x2f8   :  { %2799 = vrot.lane.b32.xlu0 %v7345_v11, %s4369_s0  ;;  %v1984_v27 = vpop.permute.xlu1 %1983 }
 0x2f9   :  { %2648 = vst.msk [vmem:[%s7089_s5 + $0x148] sm:$0xff] %vm2029_vm2, %v1984_v27  ;;  %3812 = vmatmul.mubr.msk.f32.gmra.mrb[40].mxu1 %vm2029_vm2, %v1984_v27 }
 0x2fa   :  { %2805 = vrot.lane.b32.xlu1 %v7346_v19, %s4369_s0  ;;  %3814 = vmatprep.mubr.msk.f32.mxu1 %vm2029_vm2, %v1986_v38 }
 0x2fc   :  { %2803 = vrot.lane.b32.xlu0 %v7347_v1, %s4369_s0  ;;  %v1988_v24 = vpop.permute.xlu1 %1987 }
 0x2fd   :  { %2650 = vst.msk [vmem:[%s7089_s5 + $0x158] sm:$0xff] %vm2029_vm2, %v1988_v24  ;;  %3815 = vmatmul.mubr.msk.f32.gmra.mrb[42].mxu1 %vm2029_vm2, %v1988_v24 }
 0x2fe   :  { %v2006_v7 = vpop.permute.xlu0 %2005  ;;  %2809 = vrot.lane.b32.xlu1 %v7348_v29, %s4369_s0  ;;  %3817 = vmatprep.mubr.msk.f32.mxu1 %vm2029_vm2, %v1990_v45  ;;  %v7359_v45 = vld [vmem:[#allocation18_spill] sm:$0xff] }
 0x2ff   :  { %2659 = vst.msk [vmem:[%s7089_s5 + $0x1a0] sm:$0xff] %vm2029_vm2, %v2006_v7 }
 0x300   :  { %2807 = vrot.lane.b32.xlu0 %v7349_v31, %s4369_s0  ;;  %v1992_v54 = vpop.permute.xlu1 %1991 }
 0x301   :  { %2652 = vst.msk [vmem:[%s7089_s5 + $0x168] sm:$0xff] %vm2029_vm2, %v1992_v54  ;;  %3818 = vmatmul.mubr.msk.f32.gmra.mrb[44].mxu1 %vm2029_vm2, %v1992_v54 }
 0x302   :  { %2813 = vrot.lane.b32.xlu1 %v7350_v25, %s4369_s0  ;;  %3820 = vmatprep.mubr.msk.f32.mxu1 %vm2029_vm2, %v1994_v2 }
 0x304   :  { %2811 = vrot.lane.b32.xlu0 %v7351_v58, %s4369_s0  ;;  %v1996_v13 = vpop.permute.xlu1 %1995 }
 0x305   :  { %2654 = vst.msk [vmem:[%s7089_s5 + $0x178] sm:$0xff] %vm2029_vm2, %v1996_v13  ;;  %3821 = vmatmul.mubr.msk.f32.gmra.mrb[46].mxu1 %vm2029_vm2, %v1996_v13 }
 0x306   :  { %v2010_v6 = vpop.permute.xlu0 %2009  ;;  %2817 = vrot.lane.b32.xlu1 %v7352_v4, %s4369_s0  ;;  %3823 = vmatprep.mubr.msk.f32.mxu1 %vm2029_vm2, %v1998_v43 }
 0x307   :  { %2661 = vst.msk [vmem:[%s7089_s5 + $0x1b0] sm:$0xff] %vm2029_vm2, %v2010_v6 }
 0x308   :  { %2815 = vrot.lane.b32.xlu0 %v7353_v56, %s4369_s0  ;;  %v2000_v42 = vpop.permute.xlu1 %1999 }
 0x309   :  { %2656 = vst.msk [vmem:[%s7089_s5 + $0x188] sm:$0xff] %vm2029_vm2, %v2000_v42  ;;  %3824 = vmatmul.mubr.msk.f32.gmra.mrb[48].mxu1 %vm2029_vm2, %v2000_v42 }
 0x30a   :  { %2821 = vrot.lane.b32.xlu1 %v7354_v8, %s4369_s0  ;;  %3826 = vmatprep.mubr.msk.f32.mxu1 %vm2029_vm2, %v2002_v36 }
 0x30c   :  { %2819 = vrot.lane.b32.xlu0 %v7355_v30, %s4369_s0  ;;  %v2004_v33 = vpop.permute.xlu1 %2003 }
 0x30d   :  { %2658 = vst.msk [vmem:[%s7089_s5 + $0x198] sm:$0xff] %vm2029_vm2, %v2004_v33  ;;  %3827 = vmatmul.mubr.msk.f32.gmra.mrb[50].mxu1 %vm2029_vm2, %v2004_v33 }
 0x30e   :  { %v2014_v38 = vpop.permute.xlu0 %2013  ;;  %2825 = vrot.lane.b32.xlu1 %v7356_v63, %s4369_s0  ;;  %3829 = vmatprep.mubr.msk.f32.mxu1 %vm2029_vm2, %v2006_v7 }
 0x30f   :  { %2663 = vst.msk [vmem:[%s7089_s5 + $0x1c0] sm:$0xff] %vm2029_vm2, %v2014_v38 }
 0x310   :  { %2823 = vrot.lane.b32.xlu0 %v7357_v52, %s4369_s0  ;;  %v2008_v20 = vpop.permute.xlu1 %2007 }
 0x311   :  { %2660 = vst.msk [vmem:[%s7089_s5 + $0x1a8] sm:$0xff] %vm2029_vm2, %v2008_v20  ;;  %3830 = vmatmul.mubr.msk.f32.gmra.mrb[52].mxu1 %vm2029_vm2, %v2008_v20 }
 0x312   :  { %2829 = vrot.lane.b32.xlu1 %v7358_v23, %s4369_s0  ;;  %3832 = vmatprep.mubr.msk.f32.mxu1 %vm2029_vm2, %v2010_v6 }
 0x314   :  { %2827 = vrot.lane.b32.xlu0 %v5635_v18, %s4369_s0  ;;  %v2012_v17 = vpop.permute.xlu1 %2011 }
 0x315   :  { %2662 = vst.msk [vmem:[%s7089_s5 + $0x1b8] sm:$0xff] %vm2029_vm2, %v2012_v17  ;;  %3833 = vmatmul.mubr.msk.f32.gmra.mrb[54].mxu1 %vm2029_vm2, %v2012_v17 }
 0x316   :  { %v2018_v34 = vpop.permute.xlu0 %2017  ;;  %2833 = vrot.lane.b32.xlu1 %v7359_v45, %s4369_s0  ;;  %3835 = vmatprep.mubr.msk.f32.mxu1 %vm2029_vm2, %v2014_v38 }
 0x317   :  { %2665 = vst.msk [vmem:[%s7089_s5 + $0x1d0] sm:$0xff] %vm2029_vm2, %v2018_v34 }
 0x318   :  { %2831 = vrot.lane.b32.xlu0 %v5657_v9, %s4369_s0  ;;  %v2016_v18 = vpop.permute.xlu1 %2015 }
 0x319   :  { %2664 = vst.msk [vmem:[%s7089_s5 + $0x1c8] sm:$0xff] %vm2029_vm2, %v2016_v18  ;;  %3836 = vmatmul.mubr.msk.f32.gmra.mrb[56].mxu1 %vm2029_vm2, %v2016_v18 }
 0x31a   :  { %2837 = vrot.lane.b32.xlu1 %v7360_v51, %s4369_s0  ;;  %3838 = vmatprep.mubr.msk.f32.mxu1 %vm2029_vm2, %v2018_v34 }
 0x31c   :  { %2835 = vrot.lane.b32.xlu0 %v5683_v32, %s4369_s0  ;;  %v2020_v49 = vpop.permute.xlu1 %2019 }
 0x31d   :  { %2666 = vst.msk [vmem:[%s7089_s5 + $0x1d8] sm:$0xff] %vm2029_vm2, %v2020_v49  ;;  %3839 = vmatmul.mubr.msk.f32.gmra.mrb[58].mxu1 %vm2029_vm2, %v2020_v49 }
 0x31e   :  { %v2022_v9 = vpop.permute.xlu0 %2021  ;;  %2841 = vrot.lane.b32.xlu1 %v5697_v59, %s4369_s0 }
 0x31f   :  { %2667 = vst.msk [vmem:[%s7089_s5 + $0x1e0] sm:$0xff] %vm2029_vm2, %v2022_v9  ;;  %3841 = vmatprep.mubr.msk.f32.mxu1 %vm2029_vm2, %v2022_v9 }
 0x320   :  { %2839 = vrot.lane.b32.xlu0 %v5709_v40, %s4369_s0  ;;  %v2024_v32 = vpop.permute.xlu1 %2023 }
 0x321   :  { %2668 = vst.msk [vmem:[%s7089_s5 + $0x1e8] sm:$0xff] %vm2029_vm2, %v2024_v32  ;;  %3842 = vmatmul.mubr.msk.f32.gmra.mrb[60].mxu1 %vm2029_vm2, %v2024_v32 }
 0x322   :  { %2845 = vrot.lane.b32.xlu1 %v5723_v50, %s4369_s0 }
 0x324   :  { %2843 = vrot.lane.b32.xlu0 %v5736_v62, %s4369_s0  ;;  %v2028_v59 = vpop.permute.xlu1 %2027 }
 0x325   :  { %2670 = vst.msk [vmem:[%s7089_s5 + $0x1f8] sm:$0xff] %vm2029_vm2, %v2028_v59 }
 0x326   :  { %v2026_v40 = vpop.permute.xlu0 %2025  ;;  %2849 = vrot.lane.b32.xlu1 %v5749_v16, %s4369_s0 }
 0x327   :  { %2669 = vst.msk [vmem:[%s7089_s5 + $0x1f0] sm:$0xff] %vm2029_vm2, %v2026_v40  ;;  %3844 = vmatprep.mubr.msk.f32.mxu1 %vm2029_vm2, %v2026_v40 }
 0x328   :  { %2847 = vrot.lane.b32.xlu0 %v5761_v55, %s4369_s0  ;;  %3845 = vmatmul.mubr.msk.f32.gmra.mrb[62].mxu1 %vm2029_vm2, %v2028_v59  ;;  %v2738_v50 = vpop.permute.xlu1 %2737 }
 0x329   :  { %2929 = vst.msk [vmem:[%s7089_s5 + $0x8] sm:$0xff] %vm2927_vm3, %v2738_v50 }
 0x32a   :  { %v2736_v62 = vpop.permute.xlu0 %2735  ;;  %2853 = vrot.lane.b32.xlu1 %v5774_v5, %s4369_s0 }
 0x32b   :  { %2928 = vst.msk [vmem:[%s7089_s5] sm:$0xff] %vm2927_vm3, %v2736_v62 }
 0x32c   :  { %2851 = vrot.lane.b32.xlu0 %v5786_v28, %s4369_s0  ;;  %v2742_v16 = vpop.permute.xlu1 %2741 }
 0x32d   :  { %2931 = vst.msk [vmem:[%s7089_s5 + $0x18] sm:$0xff] %vm2927_vm3, %v2742_v16 }
 0x32e   :  { %v2740_v55 = vpop.permute.xlu0 %2739  ;;  %2857 = vrot.lane.b32.xlu1 %v5799_v26, %s4369_s0 }
 0x32f   :  { %2930 = vst.msk [vmem:[%s7089_s5 + $0x10] sm:$0xff] %vm2927_vm3, %v2740_v55 }
 0x330   :  { %2855 = vrot.lane.b32.xlu0 %v5811_v61, %s4369_s0  ;;  %v2746_v5 = vpop.permute.xlu1 %2745 }
 0x331   :  { %2933 = vst.msk [vmem:[%s7089_s5 + $0x28] sm:$0xff] %vm2927_vm3, %v2746_v5 }
 0x332   :  { %v2744_v28 = vpop.permute.xlu0 %2743  ;;  %2861 = vrot.lane.b32.xlu1 %v5824_v15, %s4369_s0 }
 0x333   :  { %2932 = vst.msk [vmem:[%s7089_s5 + $0x20] sm:$0xff] %vm2927_vm3, %v2744_v28 }
 0x334   :  { %2859 = vrot.lane.b32.xlu0 %v5837_v14, %s4369_s0  ;;  %v2750_v26 = vpop.permute.xlu1 %2749  ;;  %v6483_v14 = vld [vmem:[%s7090_s4] ss:$0 sm:$0xff] }
 0x335   :  { %2935 = vst.msk [vmem:[%s7089_s5 + $0x38] sm:$0xff] %vm2927_vm3, %v2750_v26 }
 0x336   :  { %v2748_v61 = vpop.permute.xlu0 %2747 }
 0x337   :  { %2934 = vst.msk [vmem:[%s7089_s5 + $0x30] sm:$0xff] %vm2927_vm3, %v2748_v61 }
 0x338   :  { %v2754_v15 = vpop.permute.xlu1 %2753 }
 0x339   :  { %2937 = vst.msk [vmem:[%s7089_s5 + $0x48] sm:$0xff] %vm2927_vm3, %v2754_v15 }
 0x33a   :  { %v2752_v39 = vpop.permute.xlu0 %2751 }
 0x33b   :  { %2936 = vst.msk [vmem:[%s7089_s5 + $0x40] sm:$0xff] %vm2927_vm3, %v2752_v39 }
 0x33c   :  { %v2758_v46 = vpop.permute.xlu1 %2757 }
 0x33d   :  { %2939 = vst.msk [vmem:[%s7089_s5 + $0x58] sm:$0xff] %vm2927_vm3, %v2758_v46  ;;  %v3753_v37 = vpop.f32.mrb[0].mxu1 }
 0x33e   :  { %v2756_v57 = vpop.permute.xlu0 %2755  ;;  %v2230_v2 = vadd.f32 %v3753_v37, %v6483_v14  ;;  %v2224_v44 = vpop.f32.mrb[1].mxu1 }
 0x33f   :  { %2938 = vst.msk [vmem:[%s7089_s5 + $0x50] sm:$0xff] %vm2927_vm3, %v2756_v57  ;;  %v2225_v0 = vadd.f32 %v6483_v14, %v2224_v44 }
 0x340   :  { %3058 = vrot.lane.b32.xlu1 %v2230_v2, %s4370_s2  ;;  %v2762_v22 = vpop.permute.xlu1 %2761 }
 0x341   :  { %2941 = vst.msk [vmem:[%s7089_s5 + $0x68] sm:$0xff] %vm2927_vm3, %v2762_v22  ;;  %3056 = vrot.lane.b32.xlu0 %v2225_v0, %s4370_s2 }
 0x342   :  { %v2760_v48 = vpop.permute.xlu0 %2759 }
 0x343   :  { %2940 = vst.msk [vmem:[%s7089_s5 + $0x60] sm:$0xff] %vm2927_vm3, %v2760_v48 }
 0x344   :  { %v2766_v3 = vpop.permute.xlu1 %2765 }
 0x345   :  { %2943 = vst.msk [vmem:[%s7089_s5 + $0x78] sm:$0xff] %vm2927_vm3, %v2766_v3  ;;  %v3756_v60 = vpop.f32.mrb[2].mxu1 }
 0x346   :  { %v2764_v43 = vpop.permute.xlu0 %2763  ;;  %v2240_v10 = vadd.f32 %v3756_v60, %v6483_v14  ;;  %v2234_v12 = vpop.f32.mrb[3].mxu1 }
 0x347   :  { %2942 = vst.msk [vmem:[%s7089_s5 + $0x70] sm:$0xff] %vm2927_vm3, %v2764_v43  ;;  %v2235_v21 = vadd.f32 %v6483_v14, %v2234_v12 }
 0x348   :  { %3062 = vrot.lane.b32.xlu1 %v2240_v10, %s4370_s2  ;;  %v2770_v35 = vpop.permute.xlu1 %2769 }
 0x349   :  { %2945 = vst.msk [vmem:[%s7089_s5 + $0x88] sm:$0xff] %vm2927_vm3, %v2770_v35  ;;  %3060 = vrot.lane.b32.xlu0 %v2235_v21, %s4370_s2 }
 0x34a   :  { %v2768_v53 = vpop.permute.xlu0 %2767 }
 0x34b   :  { %2944 = vst.msk [vmem:[%s7089_s5 + $0x80] sm:$0xff] %vm2927_vm3, %v2768_v53 }
 0x34c   :  { %v2774_v47 = vpop.permute.xlu1 %2773 }
 0x34d   :  { %2947 = vst.msk [vmem:[%s7089_s5 + $0x98] sm:$0xff] %vm2927_vm3, %v2774_v47  ;;  %v3759_v36 = vpop.f32.mrb[4].mxu1 }
 0x34e   :  { %v2772_v41 = vpop.permute.xlu0 %2771  ;;  %v2250_v11 = vadd.f32 %v3759_v36, %v6483_v14  ;;  %v2244_v27 = vpop.f32.mrb[5].mxu1 }
 0x34f   :  { %2946 = vst.msk [vmem:[%s7089_s5 + $0x90] sm:$0xff] %vm2927_vm3, %v2772_v41  ;;  %v2245_v19 = vadd.f32 %v6483_v14, %v2244_v27 }
 0x350   :  { %3066 = vrot.lane.b32.xlu1 %v2250_v11, %s4370_s2  ;;  %v2778_v1 = vpop.permute.xlu1 %2777 }
 0x351   :  { %2949 = vst.msk [vmem:[%s7089_s5 + $0xa8] sm:$0xff] %vm2927_vm3, %v2778_v1  ;;  %3064 = vrot.lane.b32.xlu0 %v2245_v19, %s4370_s2 }
 0x352   :  { %v2776_v24 = vpop.permute.xlu0 %2775 }
 0x353   :  { %2948 = vst.msk [vmem:[%s7089_s5 + $0xa0] sm:$0xff] %vm2927_vm3, %v2776_v24 }
 0x354   :  { %v2782_v7 = vpop.permute.xlu1 %2781 }
 0x355   :  { %2951 = vst.msk [vmem:[%s7089_s5 + $0xb8] sm:$0xff] %vm2927_vm3, %v2782_v7  ;;  %v3762_v29 = vpop.f32.mrb[6].mxu1 }
 0x356   :  { %v2780_v31 = vpop.permute.xlu0 %2779  ;;  %v2260_v54 = vadd.f32 %v3762_v29, %v6483_v14  ;;  %v2254_v25 = vpop.f32.mrb[7].mxu1 }
 0x357   :  { %2950 = vst.msk [vmem:[%s7089_s5 + $0xb0] sm:$0xff] %vm2927_vm3, %v2780_v31  ;;  %v2255_v58 = vadd.f32 %v6483_v14, %v2254_v25 }
 0x358   :  { %3070 = vrot.lane.b32.xlu1 %v2260_v54, %s4370_s2  ;;  %v2786_v13 = vpop.permute.xlu1 %2785 }
 0x359   :  { %2953 = vst.msk [vmem:[%s7089_s5 + $0xc8] sm:$0xff] %vm2927_vm3, %v2786_v13  ;;  %3068 = vrot.lane.b32.xlu0 %v2255_v58, %s4370_s2 }
 0x35a   :  { %v2784_v6 = vpop.permute.xlu0 %2783 }
 0x35b   :  { %2952 = vst.msk [vmem:[%s7089_s5 + $0xc0] sm:$0xff] %vm2927_vm3, %v2784_v6 }
 0x35c   :  { %v2790_v4 = vpop.permute.xlu1 %2789 }
 0x35d   :  { %2955 = vst.msk [vmem:[%s7089_s5 + $0xd8] sm:$0xff] %vm2927_vm3, %v2790_v4  ;;  %v3765_v56 = vpop.f32.mrb[8].mxu1 }
 0x35e   :  { %v2788_v42 = vpop.permute.xlu0 %2787  ;;  %v2270_v8 = vadd.f32 %v3765_v56, %v6483_v14  ;;  %v2264_v30 = vpop.f32.mrb[9].mxu1 }
 0x35f   :  { %2954 = vst.msk [vmem:[%s7089_s5 + $0xd0] sm:$0xff] %vm2927_vm3, %v2788_v42  ;;  %v2265_v33 = vadd.f32 %v6483_v14, %v2264_v30 }
 0x360   :  { %3074 = vrot.lane.b32.xlu1 %v2270_v8, %s4370_s2  ;;  %v2794_v38 = vpop.permute.xlu1 %2793 }
 0x361   :  { %2957 = vst.msk [vmem:[%s7089_s5 + $0xe8] sm:$0xff] %vm2927_vm3, %v2794_v38  ;;  %3072 = vrot.lane.b32.xlu0 %v2265_v33, %s4370_s2 }
 0x362   :  { %v2792_v63 = vpop.permute.xlu0 %2791 }
 0x363   :  { %2956 = vst.msk [vmem:[%s7089_s5 + $0xe0] sm:$0xff] %vm2927_vm3, %v2792_v63 }
 0x364   :  { %v2798_v52 = vpop.permute.xlu1 %2797 }
 0x365   :  { %2959 = vst.msk [vmem:[%s7089_s5 + $0xf8] sm:$0xff] %vm2927_vm3, %v2798_v52  ;;  %v3768_v20 = vpop.f32.mrb[10].mxu1 }
 0x366   :  { %v2796_v23 = vpop.permute.xlu0 %2795  ;;  %v2280_v17 = vadd.f32 %v3768_v20, %v6483_v14  ;;  %v2274_v34 = vpop.f32.mrb[11].mxu1 }
 0x367   :  { %2958 = vst.msk [vmem:[%s7089_s5 + $0xf0] sm:$0xff] %vm2927_vm3, %v2796_v23  ;;  %v2275_v45 = vadd.f32 %v6483_v14, %v2274_v34 }
 0x368   :  { %3078 = vrot.lane.b32.xlu1 %v2280_v17, %s4370_s2  ;;  %v2802_v18 = vpop.permute.xlu1 %2801 }
 0x369   :  { %2961 = vst.msk [vmem:[%s7089_s5 + $0x108] sm:$0xff] %vm2927_vm3, %v2802_v18  ;;  %3076 = vrot.lane.b32.xlu0 %v2275_v45, %s4370_s2 }
 0x36a   :  { %v2800_v51 = vpop.permute.xlu0 %2799 }
 0x36b   :  { %2960 = vst.msk [vmem:[%s7089_s5 + $0x100] sm:$0xff] %vm2927_vm3, %v2800_v51 }
 0x36c   :  { %v2806_v49 = vpop.permute.xlu1 %2805 }
 0x36d   :  { %2963 = vst.msk [vmem:[%s7089_s5 + $0x118] sm:$0xff] %vm2927_vm3, %v2806_v49  ;;  %v3771_v9 = vpop.f32.mrb[12].mxu1 }
 0x36e   :  { %v2804_v32 = vpop.permute.xlu0 %2803  ;;  %v2290_v59 = vadd.f32 %v3771_v9, %v6483_v14  ;;  %v2284_v40 = vpop.f32.mrb[13].mxu1 }
 0x36f   :  { %2962 = vst.msk [vmem:[%s7089_s5 + $0x110] sm:$0xff] %vm2927_vm3, %v2804_v32  ;;  %v2285_v50 = vadd.f32 %v6483_v14, %v2284_v40 }
 0x370   :  { %3082 = vrot.lane.b32.xlu1 %v2290_v59, %s4370_s2  ;;  %v2810_v62 = vpop.permute.xlu1 %2809 }
 0x371   :  { %2965 = vst.msk [vmem:[%s7089_s5 + $0x128] sm:$0xff] %vm2927_vm3, %v2810_v62  ;;  %3080 = vrot.lane.b32.xlu0 %v2285_v50, %s4370_s2 }
 0x372   :  { %v2808_v16 = vpop.permute.xlu0 %2807 }
 0x373   :  { %2964 = vst.msk [vmem:[%s7089_s5 + $0x120] sm:$0xff] %vm2927_vm3, %v2808_v16 }
 0x374   :  { %v2814_v55 = vpop.permute.xlu1 %2813 }
 0x375   :  { %2967 = vst.msk [vmem:[%s7089_s5 + $0x138] sm:$0xff] %vm2927_vm3, %v2814_v55  ;;  %v3774_v5 = vpop.f32.mrb[14].mxu1 }
 0x376   :  { %v2812_v28 = vpop.permute.xlu0 %2811  ;;  %v2300_v26 = vadd.f32 %v3774_v5, %v6483_v14  ;;  %v2294_v61 = vpop.f32.mrb[15].mxu1 }
 0x377   :  { %2966 = vst.msk [vmem:[%s7089_s5 + $0x130] sm:$0xff] %vm2927_vm3, %v2812_v28  ;;  %v2295_v15 = vadd.f32 %v6483_v14, %v2294_v61 }
 0x378   :  { %3086 = vrot.lane.b32.xlu1 %v2300_v26, %s4370_s2  ;;  %v2818_v39 = vpop.permute.xlu1 %2817 }
 0x379   :  { %2969 = vst.msk [vmem:[%s7089_s5 + $0x148] sm:$0xff] %vm2927_vm3, %v2818_v39  ;;  %3084 = vrot.lane.b32.xlu0 %v2295_v15, %s4370_s2 }
 0x37a   :  { %v2816_v46 = vpop.permute.xlu0 %2815 }
 0x37b   :  { %2968 = vst.msk [vmem:[%s7089_s5 + $0x140] sm:$0xff] %vm2927_vm3, %v2816_v46 }
 0x37c   :  { %v2822_v37 = vpop.permute.xlu1 %2821 }
 0x37d   :  { %2971 = vst.msk [vmem:[%s7089_s5 + $0x158] sm:$0xff] %vm2927_vm3, %v2822_v37  ;;  %v3777_v57 = vpop.f32.mrb[16].mxu1 }
 0x37e   :  { %v2820_v2 = vpop.permute.xlu0 %2819  ;;  %v2310_v44 = vadd.f32 %v3777_v57, %v6483_v14  ;;  %v2304_v0 = vpop.f32.mrb[17].mxu1 }
 0x37f   :  { %2970 = vst.msk [vmem:[%s7089_s5 + $0x150] sm:$0xff] %vm2927_vm3, %v2820_v2  ;;  %v2305_v22 = vadd.f32 %v6483_v14, %v2304_v0 }
 0x380   :  { %3090 = vrot.lane.b32.xlu1 %v2310_v44, %s4370_s2  ;;  %v2826_v48 = vpop.permute.xlu1 %2825 }
 0x381   :  { %2973 = vst.msk [vmem:[%s7089_s5 + $0x168] sm:$0xff] %vm2927_vm3, %v2826_v48  ;;  %3088 = vrot.lane.b32.xlu0 %v2305_v22, %s4370_s2 }
 0x382   :  { %v2824_v3 = vpop.permute.xlu0 %2823 }
 0x383   :  { %2972 = vst.msk [vmem:[%s7089_s5 + $0x160] sm:$0xff] %vm2927_vm3, %v2824_v3 }
 0x384   :  { %v2830_v60 = vpop.permute.xlu1 %2829 }
 0x385   :  { %2975 = vst.msk [vmem:[%s7089_s5 + $0x178] sm:$0xff] %vm2927_vm3, %v2830_v60  ;;  %v3780_v43 = vpop.f32.mrb[18].mxu1 }
 0x386   :  { %v2828_v10 = vpop.permute.xlu0 %2827  ;;  %v2320_v12 = vadd.f32 %v3780_v43, %v6483_v14  ;;  %v2314_v21 = vpop.f32.mrb[19].mxu1 }
 0x387   :  { %2974 = vst.msk [vmem:[%s7089_s5 + $0x170] sm:$0xff] %vm2927_vm3, %v2828_v10  ;;  %v2315_v35 = vadd.f32 %v6483_v14, %v2314_v21 }
 0x388   :  { %3094 = vrot.lane.b32.xlu1 %v2320_v12, %s4370_s2  ;;  %v2834_v53 = vpop.permute.xlu1 %2833 }
 0x389   :  { %2977 = vst.msk [vmem:[%s7089_s5 + $0x188] sm:$0xff] %vm2927_vm3, %v2834_v53  ;;  %3092 = vrot.lane.b32.xlu0 %v2315_v35, %s4370_s2 }
 0x38a   :  { %v2832_v47 = vpop.permute.xlu0 %2831 }
 0x38b   :  { %2976 = vst.msk [vmem:[%s7089_s5 + $0x180] sm:$0xff] %vm2927_vm3, %v2832_v47 }
 0x38c   :  { %v2838_v36 = vpop.permute.xlu1 %2837 }
 0x38d   :  { %2979 = vst.msk [vmem:[%s7089_s5 + $0x198] sm:$0xff] %vm2927_vm3, %v2838_v36  ;;  %v3783_v41 = vpop.f32.mrb[20].mxu1 }
 0x38e   :  { %v2836_v11 = vpop.permute.xlu0 %2835  ;;  %v2330_v27 = vadd.f32 %v3783_v41, %v6483_v14  ;;  %v2324_v19 = vpop.f32.mrb[21].mxu1 }
 0x38f   :  { %2978 = vst.msk [vmem:[%s7089_s5 + $0x190] sm:$0xff] %vm2927_vm3, %v2836_v11  ;;  %v2325_v1 = vadd.f32 %v6483_v14, %v2324_v19 }
 0x390   :  { %3098 = vrot.lane.b32.xlu1 %v2330_v27, %s4370_s2  ;;  %v2842_v24 = vpop.permute.xlu1 %2841 }
 0x391   :  { %2981 = vst.msk [vmem:[%s7089_s5 + $0x1a8] sm:$0xff] %vm2927_vm3, %v2842_v24  ;;  %3096 = vrot.lane.b32.xlu0 %v2325_v1, %s4370_s2 }
 0x392   :  { %v2840_v7 = vpop.permute.xlu0 %2839 }
 0x393   :  { %2980 = vst.msk [vmem:[%s7089_s5 + $0x1a0] sm:$0xff] %vm2927_vm3, %v2840_v7 }
 0x394   :  { %v2846_v29 = vpop.permute.xlu1 %2845 }
 0x395   :  { %2983 = vst.msk [vmem:[%s7089_s5 + $0x1b8] sm:$0xff] %vm2927_vm3, %v2846_v29  ;;  %v3786_v31 = vpop.f32.mrb[22].mxu1 }
 0x396   :  { %v2844_v54 = vpop.permute.xlu0 %2843  ;;  %v2340_v25 = vadd.f32 %v3786_v31, %v6483_v14  ;;  %v2334_v58 = vpop.f32.mrb[23].mxu1 }
 0x397   :  { %2982 = vst.msk [vmem:[%s7089_s5 + $0x1b0] sm:$0xff] %vm2927_vm3, %v2844_v54  ;;  %v2335_v13 = vadd.f32 %v6483_v14, %v2334_v58 }
 0x398   :  { %3102 = vrot.lane.b32.xlu1 %v2340_v25, %s4370_s2  ;;  %v2850_v6 = vpop.permute.xlu1 %2849 }
 0x399   :  { %2985 = vst.msk [vmem:[%s7089_s5 + $0x1c8] sm:$0xff] %vm2927_vm3, %v2850_v6  ;;  %3100 = vrot.lane.b32.xlu0 %v2335_v13, %s4370_s2 }
 0x39a   :  { %v2848_v4 = vpop.permute.xlu0 %2847 }
 0x39b   :  { %2984 = vst.msk [vmem:[%s7089_s5 + $0x1c0] sm:$0xff] %vm2927_vm3, %v2848_v4 }
 0x39c   :  { %v2854_v56 = vpop.permute.xlu1 %2853 }
 0x39d   :  { %2987 = vst.msk [vmem:[%s7089_s5 + $0x1d8] sm:$0xff] %vm2927_vm3, %v2854_v56  ;;  %v3789_v42 = vpop.f32.mrb[24].mxu1 }
 0x39e   :  { %v2852_v8 = vpop.permute.xlu0 %2851  ;;  %v2350_v30 = vadd.f32 %v3789_v42, %v6483_v14  ;;  %v2344_v33 = vpop.f32.mrb[25].mxu1 }
 0x39f   :  { %2986 = vst.msk [vmem:[%s7089_s5 + $0x1d0] sm:$0xff] %vm2927_vm3, %v2852_v8  ;;  %v2345_v38 = vadd.f32 %v6483_v14, %v2344_v33 }
 0x3a0   :  { %3106 = vrot.lane.b32.xlu1 %v2350_v30, %s4370_s2  ;;  %v2858_v63 = vpop.permute.xlu1 %2857 }
 0x3a1   :  { %2989 = vst.msk [vmem:[%s7089_s5 + $0x1e8] sm:$0xff] %vm2927_vm3, %v2858_v63  ;;  %3104 = vrot.lane.b32.xlu0 %v2345_v38, %s4370_s2 }
 0x3a2   :  { %v2856_v52 = vpop.permute.xlu0 %2855 }
 0x3a3   :  { %2988 = vst.msk [vmem:[%s7089_s5 + $0x1e0] sm:$0xff] %vm2927_vm3, %v2856_v52 }
 0x3a4   :  { %v2862_v20 = vpop.permute.xlu1 %2861 }
 0x3a5   :  { %2991 = vst.msk [vmem:[%s7089_s5 + $0x1f8] sm:$0xff] %vm2927_vm3, %v2862_v20  ;;  %v3792_v23 = vpop.f32.mrb[26].mxu1 }
 0x3a6   :  { %v2860_v17 = vpop.permute.xlu0 %2859  ;;  %v2360_v34 = vadd.f32 %v3792_v23, %v6483_v14  ;;  %v2354_v45 = vpop.f32.mrb[27].mxu1 }
 0x3a7   :  { %2990 = vst.msk [vmem:[%s7089_s5 + $0x1f0] sm:$0xff] %vm2927_vm3, %v2860_v17  ;;  %v2355_v18 = vadd.f32 %v6483_v14, %v2354_v45 }
 0x3a8   :  { %3110 = vrot.lane.b32.xlu1 %v2360_v34, %s4370_s2 }
 0x3a9   :  { %3108 = vrot.lane.b32.xlu0 %v2355_v18, %s4370_s2 }
 0x3ad   :  { %v3795_v51 = vpop.f32.mrb[28].mxu1 }
 0x3ae   :  { %v2370_v49 = vadd.f32 %v3795_v51, %v6483_v14  ;;  %v2364_v9 = vpop.f32.mrb[29].mxu1 }
 0x3af   :  { %v2365_v32 = vadd.f32 %v6483_v14, %v2364_v9 }
 0x3b0   :  { %3114 = vrot.lane.b32.xlu1 %v2370_v49, %s4370_s2 }
 0x3b1   :  { %3112 = vrot.lane.b32.xlu0 %v2365_v32, %s4370_s2 }
 0x3b2   :  { %v3059_v59 = vpop.permute.xlu1 %3058 }
 0x3b3   :  { %3250 = vst.msk [vmem:[%s7089_s5 + $0x8] sm:$0xff] %vm3248_vm4, %v3059_v59  ;;  %v3057_v40 = vpop.permute.xlu0 %3056 }
 0x3b4   :  { %3249 = vst.msk [vmem:[%s7089_s5] sm:$0xff] %vm3248_vm4, %v3057_v40 }
 0x3b5   :  { %v3798_v50 = vpop.f32.mrb[30].mxu1 }
 0x3b6   :  { %v2380_v62 = vadd.f32 %v3798_v50, %v6483_v14  ;;  %v2374_v16 = vpop.f32.mrb[31].mxu1 }
 0x3b7   :  { %v2375_v55 = vadd.f32 %v6483_v14, %v2374_v16 }
 0x3b8   :  { %3118 = vrot.lane.b32.xlu1 %v2380_v62, %s4370_s2 }
 0x3b9   :  { %3116 = vrot.lane.b32.xlu0 %v2375_v55, %s4370_s2 }
 0x3ba   :  { %v3063_v5 = vpop.permute.xlu1 %3062 }
 0x3bb   :  { %3252 = vst.msk [vmem:[%s7089_s5 + $0x18] sm:$0xff] %vm3248_vm4, %v3063_v5  ;;  %v3061_v28 = vpop.permute.xlu0 %3060 }
 0x3bc   :  { %3251 = vst.msk [vmem:[%s7089_s5 + $0x10] sm:$0xff] %vm3248_vm4, %v3061_v28  ;;  %v3801_v26 = vpop.f32.mrb[32].mxu1 }
 0x3bd   :  { %v2390_v61 = vadd.f32 %v3801_v26, %v6483_v14  ;;  %v2384_v15 = vpop.f32.mrb[33].mxu1 }
 0x3be   :  { %v2385_v39 = vadd.f32 %v6483_v14, %v2384_v15 }
 0x3bf   :  { %3122 = vrot.lane.b32.xlu1 %v2390_v61, %s4370_s2 }
 0x3c0   :  { %v3804_v46 = vpop.f32.mrb[34].mxu1  ;;  %3120 = vrot.lane.b32.xlu0 %v2385_v39, %s4370_s2 }
 0x3c1   :  { %v2400_v37 = vadd.f32 %v3804_v46, %v6483_v14  ;;  %v2394_v57 = vpop.f32.mrb[35].mxu1 }
 0x3c2   :  { %v2395_v2 = vadd.f32 %v6483_v14, %v2394_v57  ;;  %v3067_v44 = vpop.permute.xlu1 %3066 }
 0x3c3   :  { %3254 = vst.msk [vmem:[%s7089_s5 + $0x28] sm:$0xff] %vm3248_vm4, %v3067_v44  ;;  %3126 = vrot.lane.b32.xlu1 %v2400_v37, %s4370_s2  ;;  %v3065_v0 = vpop.permute.xlu0 %3064 }
 0x3c4   :  { %3253 = vst.msk [vmem:[%s7089_s5 + $0x20] sm:$0xff] %vm3248_vm4, %v3065_v0  ;;  %v3807_v22 = vpop.f32.mrb[36].mxu1  ;;  %3124 = vrot.lane.b32.xlu0 %v2395_v2, %s4370_s2 }
 0x3c5   :  { %v2410_v48 = vadd.f32 %v3807_v22, %v6483_v14  ;;  %v2404_v3 = vpop.f32.mrb[37].mxu1 }
 0x3c6   :  { %v2405_v60 = vadd.f32 %v6483_v14, %v2404_v3 }
 0x3c7   :  { %3130 = vrot.lane.b32.xlu1 %v2410_v48, %s4370_s2 }
 0x3c8   :  { %v3810_v43 = vpop.f32.mrb[38].mxu1  ;;  %3128 = vrot.lane.b32.xlu0 %v2405_v60, %s4370_s2 }
 0x3c9   :  { %v2420_v10 = vadd.f32 %v3810_v43, %v6483_v14  ;;  %v2414_v12 = vpop.f32.mrb[39].mxu1 }
 0x3ca   :  { %v2415_v21 = vadd.f32 %v6483_v14, %v2414_v12  ;;  %v3071_v35 = vpop.permute.xlu1 %3070 }
 0x3cb   :  { %3256 = vst.msk [vmem:[%s7089_s5 + $0x38] sm:$0xff] %vm3248_vm4, %v3071_v35  ;;  %3134 = vrot.lane.b32.xlu1 %v2420_v10, %s4370_s2  ;;  %v3069_v53 = vpop.permute.xlu0 %3068 }
 0x3cc   :  { %3255 = vst.msk [vmem:[%s7089_s5 + $0x30] sm:$0xff] %vm3248_vm4, %v3069_v53  ;;  %v3813_v47 = vpop.f32.mrb[40].mxu1  ;;  %3132 = vrot.lane.b32.xlu0 %v2415_v21, %s4370_s2 }
 0x3cd   :  { %v2430_v36 = vadd.f32 %v3813_v47, %v6483_v14  ;;  %v2424_v41 = vpop.f32.mrb[41].mxu1 }
 0x3ce   :  { %v2425_v11 = vadd.f32 %v6483_v14, %v2424_v41 }
 0x3cf   :  { %3138 = vrot.lane.b32.xlu1 %v2430_v36, %s4370_s2 }
 0x3d0   :  { %v3816_v27 = vpop.f32.mrb[42].mxu1  ;;  %3136 = vrot.lane.b32.xlu0 %v2425_v11, %s4370_s2 }
 0x3d1   :  { %v2440_v19 = vadd.f32 %v3816_v27, %v6483_v14  ;;  %v2434_v1 = vpop.f32.mrb[43].mxu1 }
 0x3d2   :  { %v2435_v24 = vadd.f32 %v6483_v14, %v2434_v1  ;;  %v3075_v7 = vpop.permute.xlu1 %3074 }
 0x3d3   :  { %3258 = vst.msk [vmem:[%s7089_s5 + $0x48] sm:$0xff] %vm3248_vm4, %v3075_v7  ;;  %3142 = vrot.lane.b32.xlu1 %v2440_v19, %s4370_s2  ;;  %v3073_v29 = vpop.permute.xlu0 %3072 }
 0x3d4   :  { %3257 = vst.msk [vmem:[%s7089_s5 + $0x40] sm:$0xff] %vm3248_vm4, %v3073_v29  ;;  %v3819_v31 = vpop.f32.mrb[44].mxu1  ;;  %3140 = vrot.lane.b32.xlu0 %v2435_v24, %s4370_s2 }
 0x3d5   :  { %v2450_v54 = vadd.f32 %v3819_v31, %v6483_v14  ;;  %v2444_v25 = vpop.f32.mrb[45].mxu1 }
 0x3d6   :  { %v2445_v58 = vadd.f32 %v6483_v14, %v2444_v25 }
 0x3d7   :  { %3146 = vrot.lane.b32.xlu1 %v2450_v54, %s4370_s2 }
 0x3d8   :  { %v3822_v13 = vpop.f32.mrb[46].mxu1  ;;  %3144 = vrot.lane.b32.xlu0 %v2445_v58, %s4370_s2 }
 0x3d9   :  { %v2460_v6 = vadd.f32 %v3822_v13, %v6483_v14  ;;  %v2454_v4 = vpop.f32.mrb[47].mxu1 }
 0x3da   :  { %v2455_v56 = vadd.f32 %v6483_v14, %v2454_v4  ;;  %v3079_v42 = vpop.permute.xlu1 %3078 }
 0x3db   :  { %3260 = vst.msk [vmem:[%s7089_s5 + $0x58] sm:$0xff] %vm3248_vm4, %v3079_v42  ;;  %3150 = vrot.lane.b32.xlu1 %v2460_v6, %s4370_s2  ;;  %v3077_v8 = vpop.permute.xlu0 %3076 }
 0x3dc   :  { %3259 = vst.msk [vmem:[%s7089_s5 + $0x50] sm:$0xff] %vm3248_vm4, %v3077_v8  ;;  %v3825_v30 = vpop.f32.mrb[48].mxu1  ;;  %3148 = vrot.lane.b32.xlu0 %v2455_v56, %s4370_s2 }
 0x3dd   :  { %v2470_v33 = vadd.f32 %v3825_v30, %v6483_v14  ;;  %v2464_v38 = vpop.f32.mrb[49].mxu1 }
 0x3de   :  { %v2465_v63 = vadd.f32 %v6483_v14, %v2464_v38 }
 0x3df   :  { %3154 = vrot.lane.b32.xlu1 %v2470_v33, %s4370_s2 }
 0x3e0   :  { %v3828_v52 = vpop.f32.mrb[50].mxu1  ;;  %3152 = vrot.lane.b32.xlu0 %v2465_v63, %s4370_s2 }
 0x3e1   :  { %v2480_v20 = vadd.f32 %v3828_v52, %v6483_v14  ;;  %v2474_v23 = vpop.f32.mrb[51].mxu1 }
 0x3e2   :  { %v2475_v17 = vadd.f32 %v6483_v14, %v2474_v23  ;;  %v3083_v34 = vpop.permute.xlu1 %3082 }
 0x3e3   :  { %3262 = vst.msk [vmem:[%s7089_s5 + $0x68] sm:$0xff] %vm3248_vm4, %v3083_v34  ;;  %3158 = vrot.lane.b32.xlu1 %v2480_v20, %s4370_s2  ;;  %v3081_v45 = vpop.permute.xlu0 %3080 }
 0x3e4   :  { %3261 = vst.msk [vmem:[%s7089_s5 + $0x60] sm:$0xff] %vm3248_vm4, %v3081_v45  ;;  %v3831_v18 = vpop.f32.mrb[52].mxu1  ;;  %3156 = vrot.lane.b32.xlu0 %v2475_v17, %s4370_s2 }
 0x3e5   :  { %v2490_v51 = vadd.f32 %v3831_v18, %v6483_v14  ;;  %v2484_v49 = vpop.f32.mrb[53].mxu1 }
 0x3e6   :  { %v2485_v9 = vadd.f32 %v6483_v14, %v2484_v49 }
 0x3e7   :  { %3162 = vrot.lane.b32.xlu1 %v2490_v51, %s4370_s2 }
 0x3e8   :  { %v3834_v32 = vpop.f32.mrb[54].mxu1  ;;  %3160 = vrot.lane.b32.xlu0 %v2485_v9, %s4370_s2 }
 0x3e9   :  { %v2500_v59 = vadd.f32 %v3834_v32, %v6483_v14  ;;  %v2494_v40 = vpop.f32.mrb[55].mxu1 }
 0x3ea   :  { %v2495_v50 = vadd.f32 %v6483_v14, %v2494_v40  ;;  %v3087_v62 = vpop.permute.xlu1 %3086 }
 0x3eb   :  { %3264 = vst.msk [vmem:[%s7089_s5 + $0x78] sm:$0xff] %vm3248_vm4, %v3087_v62  ;;  %3166 = vrot.lane.b32.xlu1 %v2500_v59, %s4370_s2  ;;  %v3085_v16 = vpop.permute.xlu0 %3084 }
 0x3ec   :  { %3263 = vst.msk [vmem:[%s7089_s5 + $0x70] sm:$0xff] %vm3248_vm4, %v3085_v16  ;;  %v3837_v55 = vpop.f32.mrb[56].mxu1  ;;  %3164 = vrot.lane.b32.xlu0 %v2495_v50, %s4370_s2 }
 0x3ed   :  { %v2510_v5 = vadd.f32 %v3837_v55, %v6483_v14  ;;  %v2504_v28 = vpop.f32.mrb[57].mxu1 }
 0x3ee   :  { %v2505_v26 = vadd.f32 %v6483_v14, %v2504_v28 }
 0x3ef   :  { %3170 = vrot.lane.b32.xlu1 %v2510_v5, %s4370_s2 }
 0x3f0   :  { %v3840_v61 = vpop.f32.mrb[58].mxu1  ;;  %3168 = vrot.lane.b32.xlu0 %v2505_v26, %s4370_s2 }
 0x3f1   :  { %v2520_v15 = vadd.f32 %v3840_v61, %v6483_v14  ;;  %v2514_v39 = vpop.f32.mrb[59].mxu1 }
 0x3f2   :  { %v2515_v46 = vadd.f32 %v6483_v14, %v2514_v39  ;;  %v3091_v37 = vpop.permute.xlu1 %3090 }
 0x3f3   :  { %3266 = vst.msk [vmem:[%s7089_s5 + $0x88] sm:$0xff] %vm3248_vm4, %v3091_v37  ;;  %3174 = vrot.lane.b32.xlu1 %v2520_v15, %s4370_s2  ;;  %v3089_v57 = vpop.permute.xlu0 %3088 }
 0x3f4   :  { %3265 = vst.msk [vmem:[%s7089_s5 + $0x80] sm:$0xff] %vm3248_vm4, %v3089_v57  ;;  %v3843_v2 = vpop.f32.mrb[60].mxu1  ;;  %3172 = vrot.lane.b32.xlu0 %v2515_v46, %s4370_s2 }
 0x3f5   :  { %v2530_v44 = vadd.f32 %v3843_v2, %v6483_v14  ;;  %v2524_v0 = vpop.f32.mrb[61].mxu1 }
 0x3f6   :  { %v2525_v22 = vadd.f32 %v6483_v14, %v2524_v0 }
 0x3f7   :  { %3178 = vrot.lane.b32.xlu1 %v2530_v44, %s4370_s2 }
 0x3f8   :  { %3176 = vrot.lane.b32.xlu0 %v2525_v22, %s4370_s2 }
 0x3fa   :  { %v3095_v48 = vpop.permute.xlu1 %3094 }
 0x3fb   :  { %v3846_v3 = vpop.f32.mrb[62].mxu1  ;;  %3268 = vst.msk [vmem:[%s7089_s5 + $0x98] sm:$0xff] %vm3248_vm4, %v3095_v48  ;;  %v3093_v60 = vpop.permute.xlu0 %3092 }
 0x3fc   :  { %v2540_v43 = vadd.f32 %v3846_v3, %v6483_v14  ;;  %v2534_v10 = vpop.f32.mrb[63].mxu1  ;;  %3267 = vst.msk [vmem:[%s7089_s5 + $0x90] sm:$0xff] %vm3248_vm4, %v3093_v60 }
 0x3fd   :  { %v2535_v12 = vadd.f32 %v6483_v14, %v2534_v10 }
 0x3fe   :  { %3182 = vrot.lane.b32.xlu1 %v2540_v43, %s4370_s2 }
 0x3ff   :  { %3180 = vrot.lane.b32.xlu0 %v2535_v12, %s4370_s2 }
 0x402   :  { %v3099_v21 = vpop.permute.xlu1 %3098 }
 0x403   :  { %3270 = vst.msk [vmem:[%s7089_s5 + $0xa8] sm:$0xff] %vm3248_vm4, %v3099_v21  ;;  %v3097_v35 = vpop.permute.xlu0 %3096 }
 0x404   :  { %3269 = vst.msk [vmem:[%s7089_s5 + $0xa0] sm:$0xff] %vm3248_vm4, %v3097_v35 }
 0x40a   :  { %v3103_v53 = vpop.permute.xlu1 %3102 }
 0x40b   :  { %3272 = vst.msk [vmem:[%s7089_s5 + $0xb8] sm:$0xff] %vm3248_vm4, %v3103_v53  ;;  %v3101_v14 = vpop.permute.xlu0 %3100 }
 0x40c   :  { %3271 = vst.msk [vmem:[%s7089_s5 + $0xb0] sm:$0xff] %vm3248_vm4, %v3101_v14 }
 0x412   :  { %v3107_v47 = vpop.permute.xlu1 %3106 }
 0x413   :  { %3274 = vst.msk [vmem:[%s7089_s5 + $0xc8] sm:$0xff] %vm3248_vm4, %v3107_v47  ;;  %v3105_v36 = vpop.permute.xlu0 %3104 }
 0x414   :  { %3273 = vst.msk [vmem:[%s7089_s5 + $0xc0] sm:$0xff] %vm3248_vm4, %v3105_v36 }
 0x41a   :  { %v3111_v41 = vpop.permute.xlu1 %3110 }
 0x41b   :  { %3276 = vst.msk [vmem:[%s7089_s5 + $0xd8] sm:$0xff] %vm3248_vm4, %v3111_v41  ;;  %v3109_v11 = vpop.permute.xlu0 %3108 }
 0x41c   :  { %3275 = vst.msk [vmem:[%s7089_s5 + $0xd0] sm:$0xff] %vm3248_vm4, %v3109_v11 }
 0x422   :  { %v3115_v27 = vpop.permute.xlu1 %3114 }
 0x423   :  { %3278 = vst.msk [vmem:[%s7089_s5 + $0xe8] sm:$0xff] %vm3248_vm4, %v3115_v27  ;;  %v3113_v19 = vpop.permute.xlu0 %3112 }
 0x424   :  { %3277 = vst.msk [vmem:[%s7089_s5 + $0xe0] sm:$0xff] %vm3248_vm4, %v3113_v19 }
 0x42a   :  { %v3119_v1 = vpop.permute.xlu1 %3118 }
 0x42b   :  { %3280 = vst.msk [vmem:[%s7089_s5 + $0xf8] sm:$0xff] %vm3248_vm4, %v3119_v1  ;;  %v3117_v24 = vpop.permute.xlu0 %3116 }
 0x42c   :  { %3279 = vst.msk [vmem:[%s7089_s5 + $0xf0] sm:$0xff] %vm3248_vm4, %v3117_v24 }
 0x431   :  { %v3123_v7 = vpop.permute.xlu1 %3122 }
 0x432   :  { %3282 = vst.msk [vmem:[%s7089_s5 + $0x108] sm:$0xff] %vm3248_vm4, %v3123_v7  ;;  %v3121_v29 = vpop.permute.xlu0 %3120 }
 0x433   :  { %3281 = vst.msk [vmem:[%s7089_s5 + $0x100] sm:$0xff] %vm3248_vm4, %v3121_v29 }
 0x435   :  { %v3127_v31 = vpop.permute.xlu1 %3126 }
 0x436   :  { %3284 = vst.msk [vmem:[%s7089_s5 + $0x118] sm:$0xff] %vm3248_vm4, %v3127_v31  ;;  %v3125_v54 = vpop.permute.xlu0 %3124 }
 0x437   :  { %3283 = vst.msk [vmem:[%s7089_s5 + $0x110] sm:$0xff] %vm3248_vm4, %v3125_v54 }
 0x439   :  { %v3131_v25 = vpop.permute.xlu1 %3130 }
 0x43a   :  { %3286 = vst.msk [vmem:[%s7089_s5 + $0x128] sm:$0xff] %vm3248_vm4, %v3131_v25  ;;  %v3129_v58 = vpop.permute.xlu0 %3128 }
 0x43b   :  { %3285 = vst.msk [vmem:[%s7089_s5 + $0x120] sm:$0xff] %vm3248_vm4, %v3129_v58 }
 0x43d   :  { %v3135_v13 = vpop.permute.xlu1 %3134 }
 0x43e   :  { %3288 = vst.msk [vmem:[%s7089_s5 + $0x138] sm:$0xff] %vm3248_vm4, %v3135_v13  ;;  %v3133_v6 = vpop.permute.xlu0 %3132 }
 0x43f   :  { %3287 = vst.msk [vmem:[%s7089_s5 + $0x130] sm:$0xff] %vm3248_vm4, %v3133_v6 }
 0x441   :  { %v3139_v4 = vpop.permute.xlu1 %3138 }
 0x442   :  { %3290 = vst.msk [vmem:[%s7089_s5 + $0x148] sm:$0xff] %vm3248_vm4, %v3139_v4  ;;  %v3137_v56 = vpop.permute.xlu0 %3136 }
 0x443   :  { %3289 = vst.msk [vmem:[%s7089_s5 + $0x140] sm:$0xff] %vm3248_vm4, %v3137_v56 }
 0x445   :  { %v3143_v42 = vpop.permute.xlu1 %3142 }
 0x446   :  { %3292 = vst.msk [vmem:[%s7089_s5 + $0x158] sm:$0xff] %vm3248_vm4, %v3143_v42  ;;  %v3141_v8 = vpop.permute.xlu0 %3140 }
 0x447   :  { %3291 = vst.msk [vmem:[%s7089_s5 + $0x150] sm:$0xff] %vm3248_vm4, %v3141_v8 }
 0x449   :  { %v3147_v30 = vpop.permute.xlu1 %3146 }
 0x44a   :  { %3294 = vst.msk [vmem:[%s7089_s5 + $0x168] sm:$0xff] %vm3248_vm4, %v3147_v30  ;;  %v3145_v33 = vpop.permute.xlu0 %3144 }
 0x44b   :  { %3293 = vst.msk [vmem:[%s7089_s5 + $0x160] sm:$0xff] %vm3248_vm4, %v3145_v33 }
 0x44d   :  { %v3151_v38 = vpop.permute.xlu1 %3150 }
 0x44e   :  { %3296 = vst.msk [vmem:[%s7089_s5 + $0x178] sm:$0xff] %vm3248_vm4, %v3151_v38  ;;  %v3149_v63 = vpop.permute.xlu0 %3148 }
 0x44f   :  { %3295 = vst.msk [vmem:[%s7089_s5 + $0x170] sm:$0xff] %vm3248_vm4, %v3149_v63 }
 0x451   :  { %v3155_v52 = vpop.permute.xlu1 %3154 }
 0x452   :  { %3298 = vst.msk [vmem:[%s7089_s5 + $0x188] sm:$0xff] %vm3248_vm4, %v3155_v52  ;;  %v3153_v20 = vpop.permute.xlu0 %3152 }
 0x453   :  { %3297 = vst.msk [vmem:[%s7089_s5 + $0x180] sm:$0xff] %vm3248_vm4, %v3153_v20 }
 0x455   :  { %v3159_v23 = vpop.permute.xlu1 %3158 }
 0x456   :  { %3300 = vst.msk [vmem:[%s7089_s5 + $0x198] sm:$0xff] %vm3248_vm4, %v3159_v23  ;;  %v3157_v17 = vpop.permute.xlu0 %3156 }
 0x457   :  { %3299 = vst.msk [vmem:[%s7089_s5 + $0x190] sm:$0xff] %vm3248_vm4, %v3157_v17 }
 0x459   :  { %v3163_v34 = vpop.permute.xlu1 %3162 }
 0x45a   :  { %3302 = vst.msk [vmem:[%s7089_s5 + $0x1a8] sm:$0xff] %vm3248_vm4, %v3163_v34  ;;  %v3161_v45 = vpop.permute.xlu0 %3160 }
 0x45b   :  { %3301 = vst.msk [vmem:[%s7089_s5 + $0x1a0] sm:$0xff] %vm3248_vm4, %v3161_v45 }
 0x45d   :  { %v3167_v18 = vpop.permute.xlu1 %3166 }
 0x45e   :  { %3304 = vst.msk [vmem:[%s7089_s5 + $0x1b8] sm:$0xff] %vm3248_vm4, %v3167_v18  ;;  %v3165_v51 = vpop.permute.xlu0 %3164 }
 0x45f   :  { %3303 = vst.msk [vmem:[%s7089_s5 + $0x1b0] sm:$0xff] %vm3248_vm4, %v3165_v51 }
 0x461   :  { %v3171_v49 = vpop.permute.xlu1 %3170 }
 0x462   :  { %3306 = vst.msk [vmem:[%s7089_s5 + $0x1c8] sm:$0xff] %vm3248_vm4, %v3171_v49  ;;  %v3169_v9 = vpop.permute.xlu0 %3168 }
 0x463   :  { %3305 = vst.msk [vmem:[%s7089_s5 + $0x1c0] sm:$0xff] %vm3248_vm4, %v3169_v9 }
 0x465   :  { %v3175_v32 = vpop.permute.xlu1 %3174 }
 0x466   :  { %3308 = vst.msk [vmem:[%s7089_s5 + $0x1d8] sm:$0xff] %vm3248_vm4, %v3175_v32  ;;  %v3173_v59 = vpop.permute.xlu0 %3172 }
 0x467   :  { %3307 = vst.msk [vmem:[%s7089_s5 + $0x1d0] sm:$0xff] %vm3248_vm4, %v3173_v59 }
 0x469   :  { %v3179_v40 = vpop.permute.xlu1 %3178 }
 0x46a   :  { %3310 = vst.msk [vmem:[%s7089_s5 + $0x1e8] sm:$0xff] %vm3248_vm4, %v3179_v40  ;;  %v3177_v50 = vpop.permute.xlu0 %3176 }
 0x46b   :  { %3309 = vst.msk [vmem:[%s7089_s5 + $0x1e0] sm:$0xff] %vm3248_vm4, %v3177_v50 }
 0x470   :  { %v3183_v62 = vpop.permute.xlu1 %3182 }
 0x471   :  { %3312 = vst.msk [vmem:[%s7089_s5 + $0x1f8] sm:$0xff] %vm3248_vm4, %v3183_v62  ;;  %v3181_v16 = vpop.permute.xlu0 %3180 }
 0x472   :  { %3311 = vst.msk [vmem:[%s7089_s5 + $0x1f0] sm:$0xff] %vm3248_vm4, %v3181_v16 }

</bundles_post_ra>
